<compile_context>
chip_gen: v5e
topology: v5e:2x2
jax: 0.10.0
libtpu: 0.0.40
codegen_flags: <defaults>
</compile_context>

<pallas_src>
import functools

import numpy as np
import jax
import jax.numpy as jnp
from jax.experimental import pallas as pl
from jax.experimental.pallas import tpu as pltpu

EPS = 1e-5

# Hyperparameters (mirror timematch.py constants).
INPUT_CHANNELS = 10
PSE_MLP1_DIMS = [32, 64]
PSE_MLP2_DIMS = [256, 128]
LTAE_D_MODEL = PSE_MLP2_DIMS[-1]          # 128
LTAE_NHEAD = 8
LTAE_D_K = 16
LTAE_MLP_DIMS = [512, 256, 128]
CLASSIFIER_HIDDEN_DIMS = [64, 32]
MAX_POSITION = 366
PE_T = 1000.0
NUM_CLASSES = 10
LOGITS_PAD = 128                          # lane-dense logits block

_BF16 = jnp.bfloat16
_F32 = jnp.float32


# ----------------------------------------------------------------------------
# Kernels
# ----------------------------------------------------------------------------
def pse_kernel(x_ref, w1a, b1a, w1b, b1b, w2a_m, w2a_s, b2a, w2b, b2b,
               out_ref, *, s):
    """PixelSetEncoder for one row-tile.

    x_ref: [TM*S, C] (bf16)  ->  out_ref: [TM, 128] (f32)

    mlp1 (BN folded) -> mean/std pooling over the pixel set -> mlp2 (BN folded).
    The mean/std lane-concat is avoided by splitting the first mlp2 weight into
    a mean-half and a std-half and summing two MXU dots.
    """
    rows = x_ref.shape[0]                       # TM * S
    tm = rows // s

    h = jnp.dot(x_ref[...], w1a[...], preferred_element_type=_F32) + b1a[...]
    h = jnp.maximum(h, 0.0)
    h = jnp.dot(h.astype(_BF16), w1b[...], preferred_element_type=_F32) + b1b[...]

    # mean / unbiased std pooling over the pixel-set dimension (f32).
    # (Sublane-dim split; layout-trivial when S is a multiple of 8.)
    h3 = h.reshape(tm, s, h.shape[-1])
    mean = jnp.mean(h3, axis=1)
    diff = h3 - mean[:, None, :]
    std = jnp.sqrt(jnp.sum(diff * diff, axis=1) / (s - 1))

    g = (jnp.dot(mean.astype(_BF16), w2a_m[...], preferred_element_type=_F32)
         + jnp.dot(std.astype(_BF16), w2a_s[...], preferred_element_type=_F32)
         + b2a[...])
    g = jnp.maximum(g, 0.0)
    out_ref[...] = (jnp.dot(g.astype(_BF16), w2b[...],
                            preferred_element_type=_F32) + b2b[...])


def ltae_kernel(feat_ref, pe_ref, ln_g, ln_b, in_w, in_b, qfc_w, qfc_b,
                k_w, k_b, pool_ref, m1_w, m1_b, m2_w, m2_b, m3_w, m3_b,
                og, ob, c1_w, c1_b, c2_w, c2_b, c3_w, c3_b,
                logits_ref, attn_ref, *, n_head):
    """LTAE (LayerNorm + PE + inconv + master-query MHA + MLP + LayerNorm)
    fused with the classifier MLP, for one batch tile.

    feat_ref / pe_ref: [TB, T, D] f32
    -> logits_ref: [TB, 128] (first NUM_CLASSES lanes valid), attn_ref: [TB, T, H]
    """
    x = feat_ref[...]
    tb, t, d = x.shape

    # in-LayerNorm (f32 statistics).
    mu = jnp.mean(x, axis=-1, keepdims=True)
    var = jnp.mean((x - mu) ** 2, axis=-1, keepdims=True)
    xn = (x - mu) * jax.lax.rsqrt(var + EPS) * ln_g[...] + ln_b[...]

    # Add the precomputed sinusoidal encodings (gathered in the wrapper); inconv.
    e_in = (xn + pe_ref[...]).reshape(tb * t, d)
    e2 = jnp.dot(e_in.astype(_BF16), in_w[...], preferred_element_type=_F32) + in_b[...]
    e2_bf = e2.astype(_BF16)                                    # hoisted, reused

    # Master query: fc1_q, time-mean and (BN+fc2) are folded into one matmul on
    # mean_t(e2); the 1/sqrt(d_k) temperature is folded into qfc_w/qfc_b.
    em = jnp.mean(e2.reshape(tb, t, d), axis=1)                 # [TB, D]
    q = jnp.dot(em.astype(_BF16), qfc_w[...], preferred_element_type=_F32) + qfc_b[...]

    # Keys for all heads at once.
    k = jnp.dot(e2_bf, k_w[...], preferred_element_type=_F32) + k_b[...]
    k3 = k.reshape(tb, t, k.shape[-1])                          # [TB, T, H*dk]

    # scores[b,t,h] = sum_d q[b,h*dk+d] * k[b,t,h*dk+d]  (scale already in q):
    # elementwise product on the VPU + exact 0/1 bf16 head-pool matmul.
    qk = q[:, None, :] * k3                                     # [TB, T, H*dk] f32
    scores = jnp.dot(qk.reshape(tb * t, qk.shape[-1]).astype(_BF16), pool_ref[...],
                     preferred_element_type=_F32).reshape(tb, t, n_head)
    scores = scores - jnp.max(scores, axis=1, keepdims=True)
    ps = jnp.exp(scores)
    p = ps / jnp.sum(ps, axis=1, keepdims=True)                 # softmax over T
    attn_ref[...] = p                                           # single store

    # Attention-weighted values for all heads:
    #   of[b, h, d] = sum_t p[b,t,h] * e2[b,t,d]
    # as one bf16 batched matmul (standard [b,m,k]x[b,k,n] form, f32 accumulate).
    pT = jnp.swapaxes(p, 1, 2).astype(_BF16)                    # [TB, H, T]
    of = jax.lax.dot_general(
        pT, e2_bf.reshape(tb, t, d),
        dimension_numbers=(((2,), (1,)), ((0,), (0,))),
        preferred_element_type=_F32)                            # [TB, H, D]
    of = of.reshape(tb, n_head * d)                             # head-major concat

    # Decoder MLP (BN folded) + out-LayerNorm (dropout = identity).
    g = jnp.dot(of.astype(_BF16), m1_w[...], preferred_element_type=_F32) + m1_b[...]
    g = jnp.maximum(g, 0.0)
    g = jnp.dot(g.astype(_BF16), m2_w[...], preferred_element_type=_F32) + m2_b[...]
    g = jnp.maximum(g, 0.0)
    g = jnp.dot(g.astype(_BF16), m3_w[...], preferred_element_type=_F32) + m3_b[...]
    mu2 = jnp.mean(g, axis=-1, keepdims=True)
    var2 = jnp.mean((g - mu2) ** 2, axis=-1, keepdims=True)
    enc = (g - mu2) * jax.lax.rsqrt(var2 + EPS) * og[...] + ob[...]

    # Classifier MLP fused in (128 -> 64 -> 32 -> 128-padded logits, lane-dense).
    h = jnp.maximum(jnp.dot(enc.astype(_BF16), c1_w[...],
                            preferred_element_type=_F32) + c1_b[...], 0.0)
    h = jnp.maximum(jnp.dot(h.astype(_BF16), c2_w[...],
                            preferred_element_type=_F32) + c2_b[...], 0.0)
    logits_ref[...] = (jnp.dot(h.astype(_BF16), c3_w[...],
                               preferred_element_type=_F32) + c3_b[...])


# ----------------------------------------------------------------------------
# Wrapper
# ----------------------------------------------------------------------------
def _resident(a):
    """Full-array block that maps to block (0,...,0) for every grid step."""
    n = a.ndim
    return pl.BlockSpec(a.shape, lambda i, n=n: (0,) * n)


def _pad_rows(a, n):
    if a.shape[0] == n:
        return a
    return jnp.pad(a, [(0, n - a.shape[0])] + [(0, 0)] * (a.ndim - 1))


def _pick_tile(n, cap, mult):
    """Largest tile <= cap, multiple of `mult`, leaving >= 2 grid steps whenever
    the problem can be split (so a v7x megacore can shard the parallel axis).
    Tiny problems get a single full-array block (always layout-legal)."""
    if n < 2 * mult:
        return n
    half = -(-n // 2)
    half = -(-half // mult) * mult
    return max(mult, min(cap, half))


_COMPILER_PARAMS = pltpu.CompilerParams(
    dimension_semantics=("parallel",),
    vmem_limit_bytes=32 * 1024 * 1024,
)


def timematch_forward(params, pixels, positions):
    p = params
    B, T, C, S = pixels.shape
    D = LTAE_D_MODEL
    BT = B * T
    # NOTE: torch.std is unbiased (divides by S-1); S == 1 yields NaN exactly
    # like the PyTorch reference.

    # ---- PSE: grid over B*T rows, resident weights, bf16 MXU operands ------
    # [B,T,C,S] -> channels-last 2-D slab [BT*S, C].
    # TODO(synk): C=10 leaves the PSE input at 10/128 lane occupancy; a channel
    # repack into a lane-dense layout would cut the padded DMA ~12x.
    x = jnp.transpose(pixels, (0, 1, 3, 2)).reshape(BT * S, C).astype(_BF16)
    TM = _pick_tile(BT, 512, 8)
    BT_pad = -(-BT // TM) * TM
    x = _pad_rows(x, BT_pad * S)

    pse_weights = (p['pse_w1a'], p['pse_b1a'], p['pse_w1b'], p['pse_b1b'],
                   p['pse_w2a_m'], p['pse_w2a_s'], p['pse_b2a'],
                   p['pse_w2b'], p['pse_b2b'])
    pse_out = pl.pallas_call(
        functools.partial(pse_kernel, s=S),
        grid=(BT_pad // TM,),
        in_specs=[pl.BlockSpec((TM * S, C), lambda i: (i, 0))]
                 + [_resident(w) for w in pse_weights],
        out_specs=pl.BlockSpec((TM, D), lambda i: (i, 0)),
        out_shape=jax.ShapeDtypeStruct((BT_pad, D), _F32),
        compiler_params=_COMPILER_PARAMS,
    )(x, *pse_weights)
    feats = pse_out[:BT].reshape(B, T, D)

    # ---- LTAE + classifier (fused): grid over batch ------------------------
    TB = _pick_tile(B, 128, 8)
    B_pad = -(-B // TB) * TB
    feats = _pad_rows(feats, B_pad)
    # Positional encodings gathered outside the kernel (tiny [B,T,128] slab).
    pos_idx = jnp.clip(positions.astype(jnp.int32), 0, MAX_POSITION - 1)
    pe = _pad_rows(p['pe_table'][pos_idx], B_pad)

    ltae_weights = (p['ln_g'], p['ln_b'], p['in_w'], p['in_b'],
                    p['qfc_w'], p['qfc_b'], p['k_w'], p['k_b'], p['head_pool'],
                    p['m1_w'], p['m1_b'], p['m2_w'], p['m2_b'],
                    p['m3_w'], p['m3_b'], p['og'], p['ob'],
                    p['c1_w'], p['c1_b'], p['c2_w'], p['c2_b'],
                    p['c3_w'], p['c3_b'])
    logits_p, attn_p = pl.pallas_call(
        functools.partial(ltae_kernel, n_head=LTAE_NHEAD),
        grid=(B_pad // TB,),
        in_specs=[pl.BlockSpec((TB, T, D), lambda i: (i, 0, 0)),
                  pl.BlockSpec((TB, T, D), lambda i: (i, 0, 0))]
                 + [_resident(w) for w in ltae_weights],
        out_specs=(pl.BlockSpec((TB, LOGITS_PAD), lambda i: (i, 0)),
                   pl.BlockSpec((TB, T, LTAE_NHEAD), lambda i: (i, 0, 0))),
        out_shape=(jax.ShapeDtypeStruct((B_pad, LOGITS_PAD), _F32),
                   jax.ShapeDtypeStruct((B_pad, T, LTAE_NHEAD), _F32)),
        compiler_params=_COMPILER_PARAMS,
    )(feats, pe, *ltae_weights)

    logits = logits_p[:B, :NUM_CLASSES]
    attn = jnp.transpose(attn_p[:B], (2, 0, 1))       # [H, B, T] like PyTorch
    return logits, attn


# ----------------------------------------------------------------------------
# Deterministic parameter initialization (synthetic eval-mode model; BN folded)
# ----------------------------------------------------------------------------
def init_params(key):
    keys = iter(jax.random.split(key, 96))

    def normal(shape, scale):
        return scale * jax.random.normal(next(keys), shape, _F32)

    def lin(din, dout, std=None):
        w = normal((din, dout), std if std is not None else 1.0 / np.sqrt(din))
        b = normal((1, dout), 0.02)
        return w, b

    def bn(dim):  # eval-mode BatchNorm1d -> per-channel scale/shift
        gamma = 1.0 + normal((1, dim), 0.1)
        beta = normal((1, dim), 0.1)
        rmean = normal((1, dim), 0.1)
        rvar = 1.0 + 0.1 * jax.random.uniform(next(keys), (1, dim), _F32)
        scale = gamma / jnp.sqrt(rvar + EPS)
        shift = beta - rmean * scale
        return scale, shift

    def ln_params(dim):
        return 1.0 + normal((1, dim), 0.1), normal((1, dim), 0.1)

    def fold_post_bn(w, b, scale, shift):
        # Linear(., d) followed by BatchNorm1d(d):  (x@W + b)*s + t
        return w * scale, b * scale + shift

    def fold_pre_bn(scale, shift, w, b):
        # BatchNorm1d(d) followed by Linear(d, .):  ((x*s + t)@W + b)
        return w * scale.reshape(-1, 1), shift @ w + b

    p = {}
    D, H, dk = LTAE_D_MODEL, LTAE_NHEAD, LTAE_D_K

    # PixelSetEncoder
    w, b = lin(INPUT_CHANNELS, PSE_MLP1_DIMS[0])
    w, b = fold_post_bn(w, b, *bn(PSE_MLP1_DIMS[0]))
    p['pse_w1a'], p['pse_b1a'] = w.astype(_BF16), b
    w, b = lin(PSE_MLP1_DIMS[0], PSE_MLP1_DIMS[1])
    p['pse_w1b'], p['pse_b1b'] = w.astype(_BF16), b
    w, b = lin(2 * PSE_MLP1_DIMS[1], PSE_MLP2_DIMS[0])
    w, b = fold_post_bn(w, b, *bn(PSE_MLP2_DIMS[0]))
    p['pse_w2a_m'] = w[:PSE_MLP1_DIMS[1]].astype(_BF16)   # multiplies the mean
    p['pse_w2a_s'] = w[PSE_MLP1_DIMS[1]:].astype(_BF16)   # multiplies the std
    p['pse_b2a'] = b
    w, b = lin(PSE_MLP2_DIMS[0], PSE_MLP2_DIMS[1])
    p['pse_w2b'], p['pse_b2b'] = w.astype(_BF16), b

    # LTAE
    p['ln_g'], p['ln_b'] = ln_params(D)
    w, b = lin(D, D)
    p['in_w'], p['in_b'] = w.astype(_BF16), b
    q_w, q_b = lin(D, H * dk, std=np.sqrt(2.0 / dk))
    k_w, k_b = lin(D, H * dk, std=np.sqrt(2.0 / dk))
    p['k_w'], p['k_b'] = k_w.astype(_BF16), k_b
    s_bn, t_bn = bn(H * dk)
    fw, fb = lin(H * dk, H * dk)
    fw, fb = fold_pre_bn(s_bn, t_bn, fw, fb)
    # Fold fc1_q -> time-mean -> (BN + fc2) into a single linear on mean_t(e),
    # with the 1/sqrt(d_k) attention temperature folded in as well (exact math,
    # composed in f32, then cast to bf16).
    inv_temp = 1.0 / np.sqrt(dk)
    p['qfc_w'] = ((q_w @ fw) * inv_temp).astype(_BF16)
    p['qfc_b'] = (q_b @ fw + fb) * inv_temp
    # Exact 0/1 per-head pooling matrix (sums each head's d_k lanes), bf16.
    p['head_pool'] = jnp.asarray(np.kron(np.eye(H), np.ones((dk, 1))), _BF16)

    dims = [H * D] + LTAE_MLP_DIMS
    w, b = lin(dims[0], dims[1]); w, b = fold_post_bn(w, b, *bn(dims[1]))
    p['m1_w'], p['m1_b'] = w.astype(_BF16), b
    w, b = lin(dims[1], dims[2]); w, b = fold_post_bn(w, b, *bn(dims[2]))
    p['m2_w'], p['m2_b'] = w.astype(_BF16), b
    w, b = lin(dims[2], dims[3])
    p['m3_w'], p['m3_b'] = w.astype(_BF16), b
    p['og'], p['ob'] = ln_params(LTAE_MLP_DIMS[-1])

    # Classifier; final layer zero-padded to 128 lanes for a lane-dense store.
    w, b = lin(LTAE_MLP_DIMS[-1], CLASSIFIER_HIDDEN_DIMS[0])
    p['c1_w'], p['c1_b'] = w.astype(_BF16), b
    w, b = lin(CLASSIFIER_HIDDEN_DIMS[0], CLASSIFIER_HIDDEN_DIMS[1])
    p['c2_w'], p['c2_b'] = w.astype(_BF16), b
    w, b = lin(CLASSIFIER_HIDDEN_DIMS[1], NUM_CLASSES)
    p['c3_w'] = jnp.pad(w, ((0, 0), (0, LOGITS_PAD - NUM_CLASSES))).astype(_BF16)
    p['c3_b'] = jnp.pad(b, ((0, 0), (0, LOGITS_PAD - NUM_CLASSES)))

    # Sinusoidal positional-encoding table [366, D]; gathered in the wrapper.
    pos = jnp.arange(MAX_POSITION, dtype=_F32)[:, None]
    div = jnp.exp(jnp.arange(0, D, 2, dtype=_F32) * (-np.log(PE_T) / D))
    p['pe_table'] = jnp.stack([jnp.sin(pos * div), jnp.cos(pos * div)],
                              axis=-1).reshape(MAX_POSITION, D)
    return p


# ----------------------------------------------------------------------------
# Pure-JAX reference (same folded params, same bf16 matmul operands)
# ----------------------------------------------------------------------------
def reference_forward(params, pixels, positions):
    p = params
    B, T, C, S = pixels.shape
    D, H, dk = LTAE_D_MODEL, LTAE_NHEAD, LTAE_D_K

    def dot(a, w):
        return jnp.dot(a.astype(_BF16), w, preferred_element_type=_F32)

    x = jnp.transpose(pixels, (0, 1, 3, 2)).reshape(B * T * S, C)
    h = jnp.maximum(dot(x, p['pse_w1a']) + p['pse_b1a'], 0.0)
    h = (dot(h, p['pse_w1b']) + p['pse_b1b']).reshape(B * T, S, -1)
    mean = h.mean(axis=1)
    std = jnp.sqrt(jnp.sum((h - mean[:, None, :]) ** 2, axis=1) / (S - 1))
    g = jnp.maximum(dot(mean, p['pse_w2a_m']) + dot(std, p['pse_w2a_s'])
                    + p['pse_b2a'], 0.0)
    feats = (dot(g, p['pse_w2b']) + p['pse_b2b']).reshape(B, T, D)

    def layer_norm(v, gm, bt):
        mu = v.mean(-1, keepdims=True)
        var = ((v - mu) ** 2).mean(-1, keepdims=True)
        return (v - mu) / jnp.sqrt(var + EPS) * gm + bt

    xn = layer_norm(feats, p['ln_g'], p['ln_b'])
    pe = p['pe_table'][jnp.clip(positions, 0, MAX_POSITION - 1)]
    e = dot((xn + pe).reshape(B * T, D), p['in_w']) + p['in_b']
    q = dot(e.reshape(B, T, D).mean(axis=1), p['qfc_w']) + p['qfc_b']
    k = dot(e, p['k_w']) + p['k_b']
    qk = q[:, None, :] * k.reshape(B, T, H * dk)
    scores = jnp.dot(qk.reshape(B * T, H * dk).astype(_BF16), p['head_pool'],
                     preferred_element_type=_F32).reshape(B, T, H)
    attn = jax.nn.softmax(scores, axis=1)                         # over time
    of = jnp.einsum('bth,btd->bhd', attn.astype(_BF16),
                    e.astype(_BF16).reshape(B, T, D),
                    preferred_element_type=_F32).reshape(B, H * D)
    g = jnp.maximum(dot(of, p['m1_w']) + p['m1_b'], 0.0)
    g = jnp.maximum(dot(g, p['m2_w']) + p['m2_b'], 0.0)
    enc = layer_norm(dot(g, p['m3_w']) + p['m3_b'], p['og'], p['ob'])
    h = jnp.maximum(dot(enc, p['c1_w']) + p['c1_b'], 0.0)
    h = jnp.maximum(dot(h, p['c2_w']) + p['c2_b'], 0.0)
    logits = (dot(h, p['c3_w']) + p['c3_b'])[:, :NUM_CLASSES]
    return logits, jnp.transpose(attn, (2, 0, 1))


if __name__ == "__main__":
    key = jax.random.PRNGKey(0)
    kp, kx, kpos = jax.random.split(key, 3)
    params = init_params(kp)

    B, T, C, S = 2, 8, INPUT_CHANNELS, 16
    pixels = jax.random.normal(kx, (B, T, C, S), jnp.float32)
    positions = jax.random.randint(kpos, (B, T), 0, 366, jnp.int32)

    logits, attn = jax.jit(timematch_forward)(params, pixels, positions)
    logits, attn = jax.block_until_ready((logits, attn))

    assert logits.shape == (B, NUM_CLASSES)
    assert attn.shape == (LTAE_NHEAD, B, T)

    ref_logits, ref_attn = reference_forward(params, pixels, positions)
    np.testing.assert_allclose(np.asarray(logits), np.asarray(ref_logits),
                               rtol=2e-2, atol=2e-2)
    np.testing.assert_allclose(np.asarray(attn), np.asarray(ref_attn),
                               rtol=2e-2, atol=2e-2)
    print("KERNEL_OK")
</pallas_src>

<mosaic_0001>
module attributes {stable_mosaic.version = 11 : i64} {
  func.func @pse_kernel(%arg0: i32, %arg1: memref<128x10xbf16, #tpu.memory_space<vmem>>, %arg2: memref<10x32xbf16, #tpu.memory_space<vmem>>, %arg3: memref<1x32xf32, #tpu.memory_space<vmem>>, %arg4: memref<32x64xbf16, #tpu.memory_space<vmem>>, %arg5: memref<1x64xf32, #tpu.memory_space<vmem>>, %arg6: memref<64x256xbf16, #tpu.memory_space<vmem>>, %arg7: memref<64x256xbf16, #tpu.memory_space<vmem>>, %arg8: memref<1x256xf32, #tpu.memory_space<vmem>>, %arg9: memref<256x128xbf16, #tpu.memory_space<vmem>>, %arg10: memref<1x128xf32, #tpu.memory_space<vmem>>, %arg11: memref<8x128xf32, #tpu.memory_space<vmem>>) attributes {dimension_semantics = [#tpu.dimension_semantics<parallel>], iteration_bounds = array<i64: 2>, scalar_prefetch = 0 : i64, scratch_operands = 0 : i64, tpu.core_type = #tpu.core_type<tc>, window_params = [{transform_indices = @transform_0, window_bounds = array<i64: 128, 10>}, {pipeline_mode = #tpu.pipeline_mode<synchronous>, transform_indices = @transform_1, window_bounds = array<i64: 10, 32>}, {pipeline_mode = #tpu.pipeline_mode<synchronous>, transform_indices = @transform_2, window_bounds = array<i64: 1, 32>}, {pipeline_mode = #tpu.pipeline_mode<synchronous>, transform_indices = @transform_3, window_bounds = array<i64: 32, 64>}, {pipeline_mode = #tpu.pipeline_mode<synchronous>, transform_indices = @transform_4, window_bounds = array<i64: 1, 64>}, {pipeline_mode = #tpu.pipeline_mode<synchronous>, transform_indices = @transform_5, window_bounds = array<i64: 64, 256>}, {pipeline_mode = #tpu.pipeline_mode<synchronous>, transform_indices = @transform_6, window_bounds = array<i64: 64, 256>}, {pipeline_mode = #tpu.pipeline_mode<synchronous>, transform_indices = @transform_7, window_bounds = array<i64: 1, 256>}, {pipeline_mode = #tpu.pipeline_mode<synchronous>, transform_indices = @transform_8, window_bounds = array<i64: 256, 128>}, {pipeline_mode = #tpu.pipeline_mode<synchronous>, transform_indices = @transform_9, window_bounds = array<i64: 1, 128>}, {transform_indices = @transform_10, window_bounds = array<i64: 8, 128>}]} {
    %c0 = arith.constant 0 : index
    %c0_0 = arith.constant 0 : index
    %0 = vector.load %arg1[%c0, %c0_0] : memref<128x10xbf16, #tpu.memory_space<vmem>>, vector<128x10xbf16>
    %c0_1 = arith.constant 0 : index
    %c0_2 = arith.constant 0 : index
    %1 = vector.load %arg2[%c0_1, %c0_2] : memref<10x32xbf16, #tpu.memory_space<vmem>>, vector<10x32xbf16>
    %cst = arith.constant dense<0.000000e+00> : vector<128x32xf32>
    %2 = tpu.matmul %0, %1, %cst {dimension_numbers = #tpu.dot_dimension_numbers<[1], [0], [0], [1], [0, 0, 1, 1], [], []>} : vector<128x10xbf16>, vector<10x32xbf16>, vector<128x32xf32> -> vector<128x32xf32>
    %c0_3 = arith.constant 0 : index
    %c0_4 = arith.constant 0 : index
    %3 = vector.load %arg3[%c0_3, %c0_4] : memref<1x32xf32, #tpu.memory_space<vmem>>, vector<1x32xf32>
    %4 = vector.broadcast %3 : vector<1x32xf32> to vector<128x32xf32>
    %5 = arith.addf %2, %4 : vector<128x32xf32>
    %cst_5 = arith.constant 0.000000e+00 : f32
    %6 = vector.broadcast %cst_5 : f32 to vector<128x32xf32>
    %7 = arith.maximumf %5, %6 : vector<128x32xf32>
    %8 = arith.truncf %7 : vector<128x32xf32> to vector<128x32xbf16>
    %c0_6 = arith.constant 0 : index
    %c0_7 = arith.constant 0 : index
    %9 = vector.load %arg4[%c0_6, %c0_7] : memref<32x64xbf16, #tpu.memory_space<vmem>>, vector<32x64xbf16>
    %cst_8 = arith.constant dense<0.000000e+00> : vector<128x64xf32>
    %10 = tpu.matmul %8, %9, %cst_8 {dimension_numbers = #tpu.dot_dimension_numbers<[1], [0], [0], [1], [0, 0, 1, 1], [], []>} : vector<128x32xbf16>, vector<32x64xbf16>, vector<128x64xf32> -> vector<128x64xf32>
    %c0_9 = arith.constant 0 : index
    %c0_10 = arith.constant 0 : index
    %11 = vector.load %arg5[%c0_9, %c0_10] : memref<1x64xf32, #tpu.memory_space<vmem>>, vector<1x64xf32>
    %12 = vector.broadcast %11 : vector<1x64xf32> to vector<128x64xf32>
    %13 = arith.addf %10, %12 : vector<128x64xf32>
    %14 = vector.shape_cast %13 : vector<128x64xf32> to vector<8x16x64xf32>
    %cst_11 = arith.constant dense<0.000000e+00> : vector<8x64xf32>
    %15 = vector.multi_reduction <add>, %14, %cst_11 [1] : vector<8x16x64xf32> to vector<8x64xf32>
    %cst_12 = arith.constant 1.600000e+01 : f32
    %16 = vector.broadcast %cst_12 : f32 to vector<8x64xf32>
    %17 = arith.divf %15, %16 : vector<8x64xf32>
    %18 = vector.shape_cast %17 : vector<8x64xf32> to vector<8x1x64xf32>
    %19 = vector.broadcast %18 : vector<8x1x64xf32> to vector<8x16x64xf32>
    %20 = arith.subf %14, %19 : vector<8x16x64xf32>
    %21 = arith.mulf %20, %20 : vector<8x16x64xf32>
    %cst_13 = arith.constant dense<0.000000e+00> : vector<8x64xf32>
    %22 = vector.multi_reduction <add>, %21, %cst_13 [1] : vector<8x16x64xf32> to vector<8x64xf32>
    %cst_14 = arith.constant 1.500000e+01 : f32
    %23 = vector.broadcast %cst_14 : f32 to vector<8x64xf32>
    %24 = arith.divf %22, %23 : vector<8x64xf32>
    %25 = math.sqrt %24 : vector<8x64xf32>
    %26 = arith.truncf %17 : vector<8x64xf32> to vector<8x64xbf16>
    %c0_15 = arith.constant 0 : index
    %c0_16 = arith.constant 0 : index
    %27 = vector.load %arg6[%c0_15, %c0_16] : memref<64x256xbf16, #tpu.memory_space<vmem>>, vector<64x256xbf16>
    %cst_17 = arith.constant dense<0.000000e+00> : vector<8x256xf32>
    %28 = tpu.matmul %26, %27, %cst_17 {dimension_numbers = #tpu.dot_dimension_numbers<[1], [0], [0], [1], [0, 0, 1, 1], [], []>} : vector<8x64xbf16>, vector<64x256xbf16>, vector<8x256xf32> -> vector<8x256xf32>
    %29 = arith.truncf %25 : vector<8x64xf32> to vector<8x64xbf16>
    %c0_18 = arith.constant 0 : index
    %c0_19 = arith.constant 0 : index
    %30 = vector.load %arg7[%c0_18, %c0_19] : memref<64x256xbf16, #tpu.memory_space<vmem>>, vector<64x256xbf16>
    %cst_20 = arith.constant dense<0.000000e+00> : vector<8x256xf32>
    %31 = tpu.matmul %29, %30, %cst_20 {dimension_numbers = #tpu.dot_dimension_numbers<[1], [0], [0], [1], [0, 0, 1, 1], [], []>} : vector<8x64xbf16>, vector<64x256xbf16>, vector<8x256xf32> -> vector<8x256xf32>
    %32 = arith.addf %28, %31 : vector<8x256xf32>
    %c0_21 = arith.constant 0 : index
    %c0_22 = arith.constant 0 : index
    %33 = vector.load %arg8[%c0_21, %c0_22] : memref<1x256xf32, #tpu.memory_space<vmem>>, vector<1x256xf32>
    %34 = vector.broadcast %33 : vector<1x256xf32> to vector<8x256xf32>
    %35 = arith.addf %32, %34 : vector<8x256xf32>
    %cst_23 = arith.constant 0.000000e+00 : f32
    %36 = vector.broadcast %cst_23 : f32 to vector<8x256xf32>
    %37 = arith.maximumf %35, %36 : vector<8x256xf32>
    %38 = arith.truncf %37 : vector<8x256xf32> to vector<8x256xbf16>
    %c0_24 = arith.constant 0 : index
    %c0_25 = arith.constant 0 : index
    %39 = vector.load %arg9[%c0_24, %c0_25] : memref<256x128xbf16, #tpu.memory_space<vmem>>, vector<256x128xbf16>
    %cst_26 = arith.constant dense<0.000000e+00> : vector<8x128xf32>
    %40 = tpu.matmul %38, %39, %cst_26 {dimension_numbers = #tpu.dot_dimension_numbers<[1], [0], [0], [1], [0, 0, 1, 1], [], []>} : vector<8x256xbf16>, vector<256x128xbf16>, vector<8x128xf32> -> vector<8x128xf32>
    %c0_27 = arith.constant 0 : index
    %c0_28 = arith.constant 0 : index
    %41 = vector.load %arg10[%c0_27, %c0_28] : memref<1x128xf32, #tpu.memory_space<vmem>>, vector<1x128xf32>
    %42 = vector.broadcast %41 : vector<1x128xf32> to vector<8x128xf32>
    %43 = arith.addf %40, %42 : vector<8x128xf32>
    %c0_29 = arith.constant 0 : index
    %c0_30 = arith.constant 0 : index
    %44 = vector.load %arg11[%c0_29, %c0_30] : memref<8x128xf32, #tpu.memory_space<vmem>>, vector<8x128xf32>
    tpu.vector_store %arg11[%c0_29, %c0_30], %43 {strides = array<i32>} : memref<8x128xf32, #tpu.memory_space<vmem>>, vector<8x128xf32>,
    return
  }
  func.func @transform_0(%arg0: i32) -> (i32, i32) {
    %c0_i32 = arith.constant 0 : i32
    %c0_i32_0 = arith.constant 0 : i32
    return %arg0, %c0_i32 : i32, i32
  }
  func.func @transform_1(%arg0: i32) -> (i32, i32) {
    %c0_i32 = arith.constant 0 : i32
    %c0_i32_0 = arith.constant 0 : i32
    %c0_i32_1 = arith.constant 0 : i32
    return %c0_i32, %c0_i32_0 : i32, i32
  }
  func.func @transform_2(%arg0: i32) -> (i32, i32) {
    %c0_i32 = arith.constant 0 : i32
    %c0_i32_0 = arith.constant 0 : i32
    %c0_i32_1 = arith.constant 0 : i32
    return %c0_i32, %c0_i32_0 : i32, i32
  }
  func.func @transform_3(%arg0: i32) -> (i32, i32) {
    %c0_i32 = arith.constant 0 : i32
    %c0_i32_0 = arith.constant 0 : i32
    %c0_i32_1 = arith.constant 0 : i32
    return %c0_i32, %c0_i32_0 : i32, i32
  }
  func.func @transform_4(%arg0: i32) -> (i32, i32) {
    %c0_i32 = arith.constant 0 : i32
    %c0_i32_0 = arith.constant 0 : i32
    %c0_i32_1 = arith.constant 0 : i32
    return %c0_i32, %c0_i32_0 : i32, i32
  }
  func.func @transform_5(%arg0: i32) -> (i32, i32) {
    %c0_i32 = arith.constant 0 : i32
    %c0_i32_0 = arith.constant 0 : i32
    %c0_i32_1 = arith.constant 0 : i32
    return %c0_i32, %c0_i32_0 : i32, i32
  }
  func.func @transform_6(%arg0: i32) -> (i32, i32) {
    %c0_i32 = arith.constant 0 : i32
    %c0_i32_0 = arith.constant 0 : i32
    %c0_i32_1 = arith.constant 0 : i32
    return %c0_i32, %c0_i32_0 : i32, i32
  }
  func.func @transform_7(%arg0: i32) -> (i32, i32) {
    %c0_i32 = arith.constant 0 : i32
    %c0_i32_0 = arith.constant 0 : i32
    %c0_i32_1 = arith.constant 0 : i32
    return %c0_i32, %c0_i32_0 : i32, i32
  }
  func.func @transform_8(%arg0: i32) -> (i32, i32) {
    %c0_i32 = arith.constant 0 : i32
    %c0_i32_0 = arith.constant 0 : i32
    %c0_i32_1 = arith.constant 0 : i32
    return %c0_i32, %c0_i32_0 : i32, i32
  }
  func.func @transform_9(%arg0: i32) -> (i32, i32) {
    %c0_i32 = arith.constant 0 : i32
    %c0_i32_0 = arith.constant 0 : i32
    %c0_i32_1 = arith.constant 0 : i32
    return %c0_i32, %c0_i32_0 : i32, i32
  }
  func.func @transform_10(%arg0: i32) -> (i32, i32) {
    %c0_i32 = arith.constant 0 : i32
    %c0_i32_0 = arith.constant 0 : i32
    return %arg0, %c0_i32 : i32, i32
  }
}

module attributes {stable_mosaic.version = 11 : i64} {
  func.func @ltae_kernel(%arg0: i32, %arg1: memref<2x8x128xf32, #tpu.memory_space<vmem>>, %arg2: memref<2x8x128xf32, #tpu.memory_space<vmem>>, %arg3: memref<1x128xf32, #tpu.memory_space<vmem>>, %arg4: memref<1x128xf32, #tpu.memory_space<vmem>>, %arg5: memref<128x128xbf16, #tpu.memory_space<vmem>>, %arg6: memref<1x128xf32, #tpu.memory_space<vmem>>, %arg7: memref<128x128xbf16, #tpu.memory_space<vmem>>, %arg8: memref<1x128xf32, #tpu.memory_space<vmem>>, %arg9: memref<128x128xbf16, #tpu.memory_space<vmem>>, %arg10: memref<1x128xf32, #tpu.memory_space<vmem>>, %arg11: memref<128x8xbf16, #tpu.memory_space<vmem>>, %arg12: memref<1024x512xbf16, #tpu.memory_space<vmem>>, %arg13: memref<1x512xf32, #tpu.memory_space<vmem>>, %arg14: memref<512x256xbf16, #tpu.memory_space<vmem>>, %arg15: memref<1x256xf32, #tpu.memory_space<vmem>>, %arg16: memref<256x128xbf16, #tpu.memory_space<vmem>>, %arg17: memref<1x128xf32, #tpu.memory_space<vmem>>, %arg18: memref<1x128xf32, #tpu.memory_space<vmem>>, %arg19: memref<1x128xf32, #tpu.memory_space<vmem>>, %arg20: memref<128x64xbf16, #tpu.memory_space<vmem>>, %arg21: memref<1x64xf32, #tpu.memory_space<vmem>>, %arg22: memref<64x32xbf16, #tpu.memory_space<vmem>>, %arg23: memref<1x32xf32, #tpu.memory_space<vmem>>, %arg24: memref<32x128xbf16, #tpu.memory_space<vmem>>, %arg25: memref<1x128xf32, #tpu.memory_space<vmem>>, %arg26: memref<2x128xf32, #tpu.memory_space<vmem>>, %arg27: memref<2x8x8xf32, #tpu.memory_space<vmem>>) attributes {dimension_semantics = [#tpu.dimension_semantics<parallel>], iteration_bounds = array<i64: 1>, scalar_prefetch = 0 : i64, scratch_operands = 0 : i64, tpu.core_type = #tpu.core_type<tc>, window_params = [{transform_indices = @transform_0, window_bounds = array<i64: 2, 8, 128>}, {transform_indices = @transform_1, window_bounds = array<i64: 2, 8, 128>}, {pipeline_mode = #tpu.pipeline_mode<synchronous>, transform_indices = @transform_2, window_bounds = array<i64: 1, 128>}, {pipeline_mode = #tpu.pipeline_mode<synchronous>, transform_indices = @transform_3, window_bounds = array<i64: 1, 128>}, {pipeline_mode = #tpu.pipeline_mode<synchronous>, transform_indices = @transform_4, window_bounds = array<i64: 128, 128>}, {pipeline_mode = #tpu.pipeline_mode<synchronous>, transform_indices = @transform_5, window_bounds = array<i64: 1, 128>}, {pipeline_mode = #tpu.pipeline_mode<synchronous>, transform_indices = @transform_6, window_bounds = array<i64: 128, 128>}, {pipeline_mode = #tpu.pipeline_mode<synchronous>, transform_indices = @transform_7, window_bounds = array<i64: 1, 128>}, {pipeline_mode = #tpu.pipeline_mode<synchronous>, transform_indices = @transform_8, window_bounds = array<i64: 128, 128>}, {pipeline_mode = #tpu.pipeline_mode<synchronous>, transform_indices = @transform_9, window_bounds = array<i64: 1, 128>}, {pipeline_mode = #tpu.pipeline_mode<synchronous>, transform_indices = @transform_10, window_bounds = array<i64: 128, 8>}, {pipeline_mode = #tpu.pipeline_mode<synchronous>, transform_indices = @transform_11, window_bounds = array<i64: 1024, 512>}, {pipeline_mode = #tpu.pipeline_mode<synchronous>, transform_indices = @transform_12, window_bounds = array<i64: 1, 512>}, {pipeline_mode = #tpu.pipeline_mode<synchronous>, transform_indices = @transform_13, window_bounds = array<i64: 512, 256>}, {pipeline_mode = #tpu.pipeline_mode<synchronous>, transform_indices = @transform_14, window_bounds = array<i64: 1, 256>}, {pipeline_mode = #tpu.pipeline_mode<synchronous>, transform_indices = @transform_15, window_bounds = array<i64: 256, 128>}, {pipeline_mode = #tpu.pipeline_mode<synchronous>, transform_indices = @transform_16, window_bounds = array<i64: 1, 128>}, {pipeline_mode = #tpu.pipeline_mode<synchronous>, transform_indices = @transform_17, window_bounds = array<i64: 1, 128>}, {pipeline_mode = #tpu.pipeline_mode<synchronous>, transform_indices = @transform_18, window_bounds = array<i64: 1, 128>}, {pipeline_mode = #tpu.pipeline_mode<synchronous>, transform_indices = @transform_19, window_bounds = array<i64: 128, 64>}, {pipeline_mode = #tpu.pipeline_mode<synchronous>, transform_indices = @transform_20, window_bounds = array<i64: 1, 64>}, {pipeline_mode = #tpu.pipeline_mode<synchronous>, transform_indices = @transform_21, window_bounds = array<i64: 64, 32>}, {pipeline_mode = #tpu.pipeline_mode<synchronous>, transform_indices = @transform_22, window_bounds = array<i64: 1, 32>}, {pipeline_mode = #tpu.pipeline_mode<synchronous>, transform_indices = @transform_23, window_bounds = array<i64: 32, 128>}, {pipeline_mode = #tpu.pipeline_mode<synchronous>, transform_indices = @transform_24, window_bounds = array<i64: 1, 128>}, {transform_indices = @transform_25, window_bounds = array<i64: 2, 128>}, {transform_indices = @transform_26, window_bounds = array<i64: 2, 8, 8>}]} {
    %c0 = arith.constant 0 : index
    %c0_0 = arith.constant 0 : index
    %c0_1 = arith.constant 0 : index
    %0 = vector.load %arg1[%c0, %c0_0, %c0_1] : memref<2x8x128xf32, #tpu.memory_space<vmem>>, vector<2x8x128xf32>
    %cst = arith.constant dense<0.000000e+00> : vector<2x8xf32>
    %1 = vector.multi_reduction <add>, %0, %cst [2] : vector<2x8x128xf32> to vector<2x8xf32>
    %2 = vector.shape_cast %1 : vector<2x8xf32> to vector<2x8x1xf32>
    %cst_2 = arith.constant 1.280000e+02 : f32
    %3 = vector.broadcast %cst_2 : f32 to vector<2x8x1xf32>
    %4 = arith.divf %2, %3 : vector<2x8x1xf32>
    %5 = vector.broadcast %4 : vector<2x8x1xf32> to vector<2x8x128xf32>
    %6 = arith.subf %0, %5 : vector<2x8x128xf32>
    %7 = arith.mulf %6, %6 : vector<2x8x128xf32>
    %cst_3 = arith.constant dense<0.000000e+00> : vector<2x8xf32>
    %8 = vector.multi_reduction <add>, %7, %cst_3 [2] : vector<2x8x128xf32> to vector<2x8xf32>
    %9 = vector.shape_cast %8 : vector<2x8xf32> to vector<2x8x1xf32>
    %cst_4 = arith.constant 1.280000e+02 : f32
    %10 = vector.broadcast %cst_4 : f32 to vector<2x8x1xf32>
    %11 = arith.divf %9, %10 : vector<2x8x1xf32>
    %12 = vector.broadcast %4 : vector<2x8x1xf32> to vector<2x8x128xf32>
    %13 = arith.subf %0, %12 : vector<2x8x128xf32>
    %cst_5 = arith.constant 9.99999974E-6 : f32
    %14 = vector.broadcast %cst_5 : f32 to vector<2x8x1xf32>
    %15 = arith.addf %11, %14 : vector<2x8x1xf32>
    %16 = math.rsqrt %15 : vector<2x8x1xf32>
    %17 = vector.broadcast %16 : vector<2x8x1xf32> to vector<2x8x128xf32>
    %18 = arith.mulf %13, %17 : vector<2x8x128xf32>
    %c0_6 = arith.constant 0 : index
    %c0_7 = arith.constant 0 : index
    %19 = vector.load %arg3[%c0_6, %c0_7] : memref<1x128xf32, #tpu.memory_space<vmem>>, vector<1x128xf32>
    %20 = vector.shape_cast %19 : vector<1x128xf32> to vector<1x1x128xf32>
    %21 = vector.broadcast %20 : vector<1x1x128xf32> to vector<2x8x128xf32>
    %22 = arith.mulf %18, %21 : vector<2x8x128xf32>
    %c0_8 = arith.constant 0 : index
    %c0_9 = arith.constant 0 : index
    %23 = vector.load %arg4[%c0_8, %c0_9] : memref<1x128xf32, #tpu.memory_space<vmem>>, vector<1x128xf32>
    %24 = vector.shape_cast %23 : vector<1x128xf32> to vector<1x1x128xf32>
    %25 = vector.broadcast %24 : vector<1x1x128xf32> to vector<2x8x128xf32>
    %26 = arith.addf %22, %25 : vector<2x8x128xf32>
    %c0_10 = arith.constant 0 : index
    %c0_11 = arith.constant 0 : index
    %c0_12 = arith.constant 0 : index
    %27 = vector.load %arg2[%c0_10, %c0_11, %c0_12] : memref<2x8x128xf32, #tpu.memory_space<vmem>>, vector<2x8x128xf32>
    %28 = arith.addf %26, %27 : vector<2x8x128xf32>
    %29 = vector.shape_cast %28 : vector<2x8x128xf32> to vector<16x128xf32>
    %30 = arith.truncf %29 : vector<16x128xf32> to vector<16x128xbf16>
    %c0_13 = arith.constant 0 : index
    %c0_14 = arith.constant 0 : index
    %31 = vector.load %arg5[%c0_13, %c0_14] : memref<128x128xbf16, #tpu.memory_space<vmem>>, vector<128x128xbf16>
    %cst_15 = arith.constant dense<0.000000e+00> : vector<16x128xf32>
    %32 = tpu.matmul %30, %31, %cst_15 {dimension_numbers = #tpu.dot_dimension_numbers<[1], [0], [0], [1], [0, 0, 1, 1], [], []>} : vector<16x128xbf16>, vector<128x128xbf16>, vector<16x128xf32> -> vector<16x128xf32>
    %c0_16 = arith.constant 0 : index
    %c0_17 = arith.constant 0 : index
    %33 = vector.load %arg6[%c0_16, %c0_17] : memref<1x128xf32, #tpu.memory_space<vmem>>, vector<1x128xf32>
    %34 = vector.broadcast %33 : vector<1x128xf32> to vector<16x128xf32>
    %35 = arith.addf %32, %34 : vector<16x128xf32>
    %36 = arith.truncf %35 : vector<16x128xf32> to vector<16x128xbf16>
    %37 = vector.shape_cast %35 : vector<16x128xf32> to vector<2x8x128xf32>
    %cst_18 = arith.constant dense<0.000000e+00> : vector<2x128xf32>
    %38 = vector.multi_reduction <add>, %37, %cst_18 [1] : vector<2x8x128xf32> to vector<2x128xf32>
    %cst_19 = arith.constant 8.000000e+00 : f32
    %39 = vector.broadcast %cst_19 : f32 to vector<2x128xf32>
    %40 = arith.divf %38, %39 : vector<2x128xf32>
    %41 = arith.truncf %40 : vector<2x128xf32> to vector<2x128xbf16>
    %c0_20 = arith.constant 0 : index
    %c0_21 = arith.constant 0 : index
    %42 = vector.load %arg7[%c0_20, %c0_21] : memref<128x128xbf16, #tpu.memory_space<vmem>>, vector<128x128xbf16>
    %cst_22 = arith.constant dense<0.000000e+00> : vector<2x128xf32>
    %43 = tpu.matmul %41, %42, %cst_22 {dimension_numbers = #tpu.dot_dimension_numbers<[1], [0], [0], [1], [0, 0, 1, 1], [], []>} : vector<2x128xbf16>, vector<128x128xbf16>, vector<2x128xf32> -> vector<2x128xf32>
    %c0_23 = arith.constant 0 : index
    %c0_24 = arith.constant 0 : index
    %44 = vector.load %arg8[%c0_23, %c0_24] : memref<1x128xf32, #tpu.memory_space<vmem>>, vector<1x128xf32>
    %45 = vector.broadcast %44 : vector<1x128xf32> to vector<2x128xf32>
    %46 = arith.addf %43, %45 : vector<2x128xf32>
    %c0_25 = arith.constant 0 : index
    %c0_26 = arith.constant 0 : index
    %47 = vector.load %arg9[%c0_25, %c0_26] : memref<128x128xbf16, #tpu.memory_space<vmem>>, vector<128x128xbf16>
    %cst_27 = arith.constant dense<0.000000e+00> : vector<16x128xf32>
    %48 = tpu.matmul %36, %47, %cst_27 {dimension_numbers = #tpu.dot_dimension_numbers<[1], [0], [0], [1], [0, 0, 1, 1], [], []>} : vector<16x128xbf16>, vector<128x128xbf16>, vector<16x128xf32> -> vector<16x128xf32>
    %c0_28 = arith.constant 0 : index
    %c0_29 = arith.constant 0 : index
    %49 = vector.load %arg10[%c0_28, %c0_29] : memref<1x128xf32, #tpu.memory_space<vmem>>, vector<1x128xf32>
    %50 = vector.broadcast %49 : vector<1x128xf32> to vector<16x128xf32>
    %51 = arith.addf %48, %50 : vector<16x128xf32>
    %52 = vector.shape_cast %51 : vector<16x128xf32> to vector<2x8x128xf32>
    %53 = vector.shape_cast %46 : vector<2x128xf32> to vector<2x1x128xf32>
    %54 = vector.broadcast %53 : vector<2x1x128xf32> to vector<2x8x128xf32>
    %55 = arith.mulf %54, %52 : vector<2x8x128xf32>
    %56 = vector.shape_cast %55 : vector<2x8x128xf32> to vector<16x128xf32>
    %57 = arith.truncf %56 : vector<16x128xf32> to vector<16x128xbf16>
    %c0_30 = arith.constant 0 : index
    %c0_31 = arith.constant 0 : index
    %58 = vector.load %arg11[%c0_30, %c0_31] : memref<128x8xbf16, #tpu.memory_space<vmem>>, vector<128x8xbf16>
    %cst_32 = arith.constant dense<0.000000e+00> : vector<16x8xf32>
    %59 = tpu.matmul %57, %58, %cst_32 {dimension_numbers = #tpu.dot_dimension_numbers<[1], [0], [0], [1], [0, 0, 1, 1], [], []>} : vector<16x128xbf16>, vector<128x8xbf16>, vector<16x8xf32> -> vector<16x8xf32>
    %60 = vector.shape_cast %59 : vector<16x8xf32> to vector<2x8x8xf32>
    %cst_33 = arith.constant dense<0xFF800000> : vector<2x8xf32>
    %61 = vector.multi_reduction <maximumf>, %60, %cst_33 [1] : vector<2x8x8xf32> to vector<2x8xf32>
    %62 = vector.shape_cast %61 : vector<2x8xf32> to vector<2x1x8xf32>
    %63 = vector.broadcast %62 : vector<2x1x8xf32> to vector<2x8x8xf32>
    %64 = arith.subf %60, %63 : vector<2x8x8xf32>
    %65 = math.exp %64 : vector<2x8x8xf32>
    %cst_34 = arith.constant dense<0.000000e+00> : vector<2x8xf32>
    %66 = vector.multi_reduction <add>, %65, %cst_34 [1] : vector<2x8x8xf32> to vector<2x8xf32>
    %67 = vector.shape_cast %66 : vector<2x8xf32> to vector<2x1x8xf32>
    %68 = vector.broadcast %67 : vector<2x1x8xf32> to vector<2x8x8xf32>
    %69 = arith.divf %65, %68 : vector<2x8x8xf32>
    %c0_35 = arith.constant 0 : index
    %c0_36 = arith.constant 0 : index
    %c0_37 = arith.constant 0 : index
    %70 = vector.load %arg27[%c0_35, %c0_36, %c0_37] : memref<2x8x8xf32, #tpu.memory_space<vmem>>, vector<2x8x8xf32>
    tpu.vector_store %arg27[%c0_35, %c0_36, %c0_37], %69 {strides = array<i32>} : memref<2x8x8xf32, #tpu.memory_space<vmem>>, vector<2x8x8xf32>,
    %71 = tpu.transpose %69, [0, 2, 1] : vector<2x8x8xf32> -> vector<2x8x8xf32>
    %72 = arith.truncf %71 : vector<2x8x8xf32> to vector<2x8x8xbf16>
    %73 = vector.shape_cast %36 : vector<16x128xbf16> to vector<2x8x128xbf16>
    %cst_38 = arith.constant dense<0.000000e+00> : vector<2x8x128xf32>
    %74 = tpu.matmul %72, %73, %cst_38 {dimension_numbers = #tpu.dot_dimension_numbers<[2], [1], [1], [2], [0, 0, 0, 1, 1, 2], [0], [0]>} : vector<2x8x8xbf16>, vector<2x8x128xbf16>, vector<2x8x128xf32> -> vector<2x8x128xf32>
    %75 = vector.shape_cast %74 : vector<2x8x128xf32> to vector<2x1024xf32>
    %76 = arith.truncf %75 : vector<2x1024xf32> to vector<2x1024xbf16>
    %c0_39 = arith.constant 0 : index
    %c0_40 = arith.constant 0 : index
    %77 = vector.load %arg12[%c0_39, %c0_40] : memref<1024x512xbf16, #tpu.memory_space<vmem>>, vector<1024x512xbf16>
    %cst_41 = arith.constant dense<0.000000e+00> : vector<2x512xf32>
    %78 = tpu.matmul %76, %77, %cst_41 {dimension_numbers = #tpu.dot_dimension_numbers<[1], [0], [0], [1], [0, 0, 1, 1], [], []>} : vector<2x1024xbf16>, vector<1024x512xbf16>, vector<2x512xf32> -> vector<2x512xf32>
    %c0_42 = arith.constant 0 : index
    %c0_43 = arith.constant 0 : index
    %79 = vector.load %arg13[%c0_42, %c0_43] : memref<1x512xf32, #tpu.memory_space<vmem>>, vector<1x512xf32>
    %80 = vector.broadcast %79 : vector<1x512xf32> to vector<2x512xf32>
    %81 = arith.addf %78, %80 : vector<2x512xf32>
    %cst_44 = arith.constant 0.000000e+00 : f32
    %82 = vector.broadcast %cst_44 : f32 to vector<2x512xf32>
    %83 = arith.maximumf %81, %82 : vector<2x512xf32>
    %84 = arith.truncf %83 : vector<2x512xf32> to vector<2x512xbf16>
    %c0_45 = arith.constant 0 : index
    %c0_46 = arith.constant 0 : index
    %85 = vector.load %arg14[%c0_45, %c0_46] : memref<512x256xbf16, #tpu.memory_space<vmem>>, vector<512x256xbf16>
    %cst_47 = arith.constant dense<0.000000e+00> : vector<2x256xf32>
    %86 = tpu.matmul %84, %85, %cst_47 {dimension_numbers = #tpu.dot_dimension_numbers<[1], [0], [0], [1], [0, 0, 1, 1], [], []>} : vector<2x512xbf16>, vector<512x256xbf16>, vector<2x256xf32> -> vector<2x256xf32>
    %c0_48 = arith.constant 0 : index
    %c0_49 = arith.constant 0 : index
    %87 = vector.load %arg15[%c0_48, %c0_49] : memref<1x256xf32, #tpu.memory_space<vmem>>, vector<1x256xf32>
    %88 = vector.broadcast %87 : vector<1x256xf32> to vector<2x256xf32>
    %89 = arith.addf %86, %88 : vector<2x256xf32>
    %cst_50 = arith.constant 0.000000e+00 : f32
    %90 = vector.broadcast %cst_50 : f32 to vector<2x256xf32>
    %91 = arith.maximumf %89, %90 : vector<2x256xf32>
    %92 = arith.truncf %91 : vector<2x256xf32> to vector<2x256xbf16>
    %c0_51 = arith.constant 0 : index
    %c0_52 = arith.constant 0 : index
    %93 = vector.load %arg16[%c0_51, %c0_52] : memref<256x128xbf16, #tpu.memory_space<vmem>>, vector<256x128xbf16>
    %cst_53 = arith.constant dense<0.000000e+00> : vector<2x128xf32>
    %94 = tpu.matmul %92, %93, %cst_53 {dimension_numbers = #tpu.dot_dimension_numbers<[1], [0], [0], [1], [0, 0, 1, 1], [], []>} : vector<2x256xbf16>, vector<256x128xbf16>, vector<2x128xf32> -> vector<2x128xf32>
    %c0_54 = arith.constant 0 : index
    %c0_55 = arith.constant 0 : index
    %95 = vector.load %arg17[%c0_54, %c0_55] : memref<1x128xf32, #tpu.memory_space<vmem>>, vector<1x128xf32>
    %96 = vector.broadcast %95 : vector<1x128xf32> to vector<2x128xf32>
    %97 = arith.addf %94, %96 : vector<2x128xf32>
    %cst_56 = arith.constant dense<0.000000e+00> : vector<2xf32>
    %98 = vector.multi_reduction <add>, %97, %cst_56 [1] : vector<2x128xf32> to vector<2xf32>
    %99 = vector.shape_cast %98 : vector<2xf32> to vector<2x1xf32>
    %cst_57 = arith.constant 1.280000e+02 : f32
    %100 = vector.broadcast %cst_57 : f32 to vector<2x1xf32>
    %101 = arith.divf %99, %100 : vector<2x1xf32>
    %102 = vector.broadcast %101 : vector<2x1xf32> to vector<2x128xf32>
    %103 = arith.subf %97, %102 : vector<2x128xf32>
    %104 = arith.mulf %103, %103 : vector<2x128xf32>
    %cst_58 = arith.constant dense<0.000000e+00> : vector<2xf32>
    %105 = vector.multi_reduction <add>, %104, %cst_58 [1] : vector<2x128xf32> to vector<2xf32>
    %106 = vector.shape_cast %105 : vector<2xf32> to vector<2x1xf32>
    %cst_59 = arith.constant 1.280000e+02 : f32
    %107 = vector.broadcast %cst_59 : f32 to vector<2x1xf32>
    %108 = arith.divf %106, %107 : vector<2x1xf32>
    %109 = vector.broadcast %101 : vector<2x1xf32> to vector<2x128xf32>
    %110 = arith.subf %97, %109 : vector<2x128xf32>
    %cst_60 = arith.constant 9.99999974E-6 : f32
    %111 = vector.broadcast %cst_60 : f32 to vector<2x1xf32>
    %112 = arith.addf %108, %111 : vector<2x1xf32>
    %113 = math.rsqrt %112 : vector<2x1xf32>
    %114 = vector.broadcast %113 : vector<2x1xf32> to vector<2x128xf32>
    %115 = arith.mulf %110, %114 : vector<2x128xf32>
    %c0_61 = arith.constant 0 : index
    %c0_62 = arith.constant 0 : index
    %116 = vector.load %arg18[%c0_61, %c0_62] : memref<1x128xf32, #tpu.memory_space<vmem>>, vector<1x128xf32>
    %117 = vector.broadcast %116 : vector<1x128xf32> to vector<2x128xf32>
    %118 = arith.mulf %115, %117 : vector<2x128xf32>
    %c0_63 = arith.constant 0 : index
    %c0_64 = arith.constant 0 : index
    %119 = vector.load %arg19[%c0_63, %c0_64] : memref<1x128xf32, #tpu.memory_space<vmem>>, vector<1x128xf32>
    %120 = vector.broadcast %119 : vector<1x128xf32> to vector<2x128xf32>
    %121 = arith.addf %118, %120 : vector<2x128xf32>
    %122 = arith.truncf %121 : vector<2x128xf32> to vector<2x128xbf16>
    %c0_65 = arith.constant 0 : index
    %c0_66 = arith.constant 0 : index
    %123 = vector.load %arg20[%c0_65, %c0_66] : memref<128x64xbf16, #tpu.memory_space<vmem>>, vector<128x64xbf16>
    %cst_67 = arith.constant dense<0.000000e+00> : vector<2x64xf32>
    %124 = tpu.matmul %122, %123, %cst_67 {dimension_numbers = #tpu.dot_dimension_numbers<[1], [0], [0], [1], [0, 0, 1, 1], [], []>} : vector<2x128xbf16>, vector<128x64xbf16>, vector<2x64xf32> -> vector<2x64xf32>
    %c0_68 = arith.constant 0 : index
    %c0_69 = arith.constant 0 : index
    %125 = vector.load %arg21[%c0_68, %c0_69] : memref<1x64xf32, #tpu.memory_space<vmem>>, vector<1x64xf32>
    %126 = vector.broadcast %125 : vector<1x64xf32> to vector<2x64xf32>
    %127 = arith.addf %124, %126 : vector<2x64xf32>
    %cst_70 = arith.constant 0.000000e+00 : f32
    %128 = vector.broadcast %cst_70 : f32 to vector<2x64xf32>
    %129 = arith.maximumf %127, %128 : vector<2x64xf32>
    %130 = arith.truncf %129 : vector<2x64xf32> to vector<2x64xbf16>
    %c0_71 = arith.constant 0 : index
    %c0_72 = arith.constant 0 : index
    %131 = vector.load %arg22[%c0_71, %c0_72] : memref<64x32xbf16, #tpu.memory_space<vmem>>, vector<64x32xbf16>
    %cst_73 = arith.constant dense<0.000000e+00> : vector<2x32xf32>
    %132 = tpu.matmul %130, %131, %cst_73 {dimension_numbers = #tpu.dot_dimension_numbers<[1], [0], [0], [1], [0, 0, 1, 1], [], []>} : vector<2x64xbf16>, vector<64x32xbf16>, vector<2x32xf32> -> vector<2x32xf32>
    %c0_74 = arith.constant 0 : index
    %c0_75 = arith.constant 0 : index
    %133 = vector.load %arg23[%c0_74, %c0_75] : memref<1x32xf32, #tpu.memory_space<vmem>>, vector<1x32xf32>
    %134 = vector.broadcast %133 : vector<1x32xf32> to vector<2x32xf32>
    %135 = arith.addf %132, %134 : vector<2x32xf32>
    %cst_76 = arith.constant 0.000000e+00 : f32
    %136 = vector.broadcast %cst_76 : f32 to vector<2x32xf32>
    %137 = arith.maximumf %135, %136 : vector<2x32xf32>
    %138 = arith.truncf %137 : vector<2x32xf32> to vector<2x32xbf16>
    %c0_77 = arith.constant 0 : index
    %c0_78 = arith.constant 0 : index
    %139 = vector.load %arg24[%c0_77, %c0_78] : memref<32x128xbf16, #tpu.memory_space<vmem>>, vector<32x128xbf16>
    %cst_79 = arith.constant dense<0.000000e+00> : vector<2x128xf32>
    %140 = tpu.matmul %138, %139, %cst_79 {dimension_numbers = #tpu.dot_dimension_numbers<[1], [0], [0], [1], [0, 0, 1, 1], [], []>} : vector<2x32xbf16>, vector<32x128xbf16>, vector<2x128xf32> -> vector<2x128xf32>
    %c0_80 = arith.constant 0 : index
    %c0_81 = arith.constant 0 : index
    %141 = vector.load %arg25[%c0_80, %c0_81] : memref<1x128xf32, #tpu.memory_space<vmem>>, vector<1x128xf32>
    %142 = vector.broadcast %141 : vector<1x128xf32> to vector<2x128xf32>
    %143 = arith.addf %140, %142 : vector<2x128xf32>
    %c0_82 = arith.constant 0 : index
    %c0_83 = arith.constant 0 : index
    %144 = vector.load %arg26[%c0_82, %c0_83] : memref<2x128xf32, #tpu.memory_space<vmem>>, vector<2x128xf32>
    tpu.vector_store %arg26[%c0_82, %c0_83], %143 {strides = array<i32>} : memref<2x128xf32, #tpu.memory_space<vmem>>, vector<2x128xf32>,
    return
  }
  func.func @transform_0(%arg0: i32) -> (i32, i32, i32) {
    %c0_i32 = arith.constant 0 : i32
    %c0_i32_0 = arith.constant 0 : i32
    %c0_i32_1 = arith.constant 0 : i32
    return %arg0, %c0_i32, %c0_i32_0 : i32, i32, i32
  }
  func.func @transform_1(%arg0: i32) -> (i32, i32, i32) {
    %c0_i32 = arith.constant 0 : i32
    %c0_i32_0 = arith.constant 0 : i32
    %c0_i32_1 = arith.constant 0 : i32
    return %arg0, %c0_i32, %c0_i32_0 : i32, i32, i32
  }
  func.func @transform_2(%arg0: i32) -> (i32, i32) {
    %c0_i32 = arith.constant 0 : i32
    %c0_i32_0 = arith.constant 0 : i32
    %c0_i32_1 = arith.constant 0 : i32
    return %c0_i32, %c0_i32_0 : i32, i32
  }
  func.func @transform_3(%arg0: i32) -> (i32, i32) {
    %c0_i32 = arith.constant 0 : i32
    %c0_i32_0 = arith.constant 0 : i32
    %c0_i32_1 = arith.constant 0 : i32
    return %c0_i32, %c0_i32_0 : i32, i32
  }
  func.func @transform_4(%arg0: i32) -> (i32, i32) {
    %c0_i32 = arith.constant 0 : i32
    %c0_i32_0 = arith.constant 0 : i32
    %c0_i32_1 = arith.constant 0 : i32
    return %c0_i32, %c0_i32_0 : i32, i32
  }
  func.func @transform_5(%arg0: i32) -> (i32, i32) {
    %c0_i32 = arith.constant 0 : i32
    %c0_i32_0 = arith.constant 0 : i32
    %c0_i32_1 = arith.constant 0 : i32
    return %c0_i32, %c0_i32_0 : i32, i32
  }
  func.func @transform_6(%arg0: i32) -> (i32, i32) {
    %c0_i32 = arith.constant 0 : i32
    %c0_i32_0 = arith.constant 0 : i32
    %c0_i32_1 = arith.constant 0 : i32
    return %c0_i32, %c0_i32_0 : i32, i32
  }
  func.func @transform_7(%arg0: i32) -> (i32, i32) {
    %c0_i32 = arith.constant 0 : i32
    %c0_i32_0 = arith.constant 0 : i32
    %c0_i32_1 = arith.constant 0 : i32
    return %c0_i32, %c0_i32_0 : i32, i32
  }
  func.func @transform_8(%arg0: i32) -> (i32, i32) {
    %c0_i32 = arith.constant 0 : i32
    %c0_i32_0 = arith.constant 0 : i32
    %c0_i32_1 = arith.constant 0 : i32
    return %c0_i32, %c0_i32_0 : i32, i32
  }
  func.func @transform_9(%arg0: i32) -> (i32, i32) {
    %c0_i32 = arith.constant 0 : i32
    %c0_i32_0 = arith.constant 0 : i32
    %c0_i32_1 = arith.constant 0 : i32
    return %c0_i32, %c0_i32_0 : i32, i32
  }
  func.func @transform_10(%arg0: i32) -> (i32, i32) {
    %c0_i32 = arith.constant 0 : i32
    %c0_i32_0 = arith.constant 0 : i32
    %c0_i32_1 = arith.constant 0 : i32
    return %c0_i32, %c0_i32_0 : i32, i32
  }
  func.func @transform_11(%arg0: i32) -> (i32, i32) {
    %c0_i32 = arith.constant 0 : i32
    %c0_i32_0 = arith.constant 0 : i32
    %c0_i32_1 = arith.constant 0 : i32
    return %c0_i32, %c0_i32_0 : i32, i32
  }
  func.func @transform_12(%arg0: i32) -> (i32, i32) {
    %c0_i32 = arith.constant 0 : i32
    %c0_i32_0 = arith.constant 0 : i32
    %c0_i32_1 = arith.constant 0 : i32
    return %c0_i32, %c0_i32_0 : i32, i32
  }
  func.func @transform_13(%arg0: i32) -> (i32, i32) {
    %c0_i32 = arith.constant 0 : i32
    %c0_i32_0 = arith.constant 0 : i32
    %c0_i32_1 = arith.constant 0 : i32
    return %c0_i32, %c0_i32_0 : i32, i32
  }
  func.func @transform_14(%arg0: i32) -> (i32, i32) {
    %c0_i32 = arith.constant 0 : i32
    %c0_i32_0 = arith.constant 0 : i32
    %c0_i32_1 = arith.constant 0 : i32
    return %c0_i32, %c0_i32_0 : i32, i32
  }
  func.func @transform_15(%arg0: i32) -> (i32, i32) {
    %c0_i32 = arith.constant 0 : i32
    %c0_i32_0 = arith.constant 0 : i32
    %c0_i32_1 = arith.constant 0 : i32
    return %c0_i32, %c0_i32_0 : i32, i32
  }
  func.func @transform_16(%arg0: i32) -> (i32, i32) {
    %c0_i32 = arith.constant 0 : i32
    %c0_i32_0 = arith.constant 0 : i32
    %c0_i32_1 = arith.constant 0 : i32
    return %c0_i32, %c0_i32_0 : i32, i32
  }
  func.func @transform_17(%arg0: i32) -> (i32, i32) {
    %c0_i32 = arith.constant 0 : i32
    %c0_i32_0 = arith.constant 0 : i32
    %c0_i32_1 = arith.constant 0 : i32
    return %c0_i32, %c0_i32_0 : i32, i32
  }
  func.func @transform_18(%arg0: i32) -> (i32, i32) {
    %c0_i32 = arith.constant 0 : i32
    %c0_i32_0 = arith.constant 0 : i32
    %c0_i32_1 = arith.constant 0 : i32
    return %c0_i32, %c0_i32_0 : i32, i32
  }
  func.func @transform_19(%arg0: i32) -> (i32, i32) {
    %c0_i32 = arith.constant 0 : i32
    %c0_i32_0 = arith.constant 0 : i32
    %c0_i32_1 = arith.constant 0 : i32
    return %c0_i32, %c0_i32_0 : i32, i32
  }
  func.func @transform_20(%arg0: i32) -> (i32, i32) {
    %c0_i32 = arith.constant 0 : i32
    %c0_i32_0 = arith.constant 0 : i32
    %c0_i32_1 = arith.constant 0 : i32
    return %c0_i32, %c0_i32_0 : i32, i32
  }
  func.func @transform_21(%arg0: i32) -> (i32, i32) {
    %c0_i32 = arith.constant 0 : i32
    %c0_i32_0 = arith.constant 0 : i32
    %c0_i32_1 = arith.constant 0 : i32
    return %c0_i32, %c0_i32_0 : i32, i32
  }
  func.func @transform_22(%arg0: i32) -> (i32, i32) {
    %c0_i32 = arith.constant 0 : i32
    %c0_i32_0 = arith.constant 0 : i32
    %c0_i32_1 = arith.constant 0 : i32
    return %c0_i32, %c0_i32_0 : i32, i32
  }
  func.func @transform_23(%arg0: i32) -> (i32, i32) {
    %c0_i32 = arith.constant 0 : i32
    %c0_i32_0 = arith.constant 0 : i32
    %c0_i32_1 = arith.constant 0 : i32
    return %c0_i32, %c0_i32_0 : i32, i32
  }
  func.func @transform_24(%arg0: i32) -> (i32, i32) {
    %c0_i32 = arith.constant 0 : i32
    %c0_i32_0 = arith.constant 0 : i32
    %c0_i32_1 = arith.constant 0 : i32
    return %c0_i32, %c0_i32_0 : i32, i32
  }
  func.func @transform_25(%arg0: i32) -> (i32, i32) {
    %c0_i32 = arith.constant 0 : i32
    %c0_i32_0 = arith.constant 0 : i32
    return %arg0, %c0_i32 : i32, i32
  }
  func.func @transform_26(%arg0: i32) -> (i32, i32, i32) {
    %c0_i32 = arith.constant 0 : i32
    %c0_i32_0 = arith.constant 0 : i32
    %c0_i32_1 = arith.constant 0 : i32
    return %arg0, %c0_i32, %c0_i32_0 : i32, i32, i32
  }
}

</mosaic_0001>

<bundles_post_ra>
// kernel: timematch_forward.2
= control target key start
LH: loop header
LB: loop body
LE: loop exit
PB: predicated region body
PF: predicated region fallthrough
CT: control target
= control target key end

     0   :  { %s1724_s13 = smov 0   ;;  %s2159_s0 = inlined_call_operand.vmem [shape: bf16[256,10], index: 0, kind: input, shape index: {}]   ;;  %s2160_s1 = inlined_call_operand.vmem [shape: bf16[10,32], index: 1, kind: input, shape index: {}]   ;;  %s2161_s2 = inlined_call_operand.vmem [shape: f32[1,32], index: 2, kind: input, shape index: {}]   ;;  %s2162_s3 = inlined_call_operand.vmem [shape: bf16[32,64], index: 3, kind: input, shape index: {}]   ;;  %s2163_s4 = inlined_call_operand.vmem [shape: f32[1,64], index: 4, kind: input, shape index: {}]   ;;  %s2164_s5 = inlined_call_operand.vmem [shape: bf16[64,256], index: 5, kind: input, shape index: {}]   ;;  %s2165_s6 = inlined_call_operand.vmem [shape: bf16[64,256], index: 6, kind: input, shape index: {}]   ;;  %s2166_s7 = inlined_call_operand.vmem [shape: f32[1,256], index: 7, kind: input, shape index: {}]   ;;  %s2167_s8 = inlined_call_operand.vmem [shape: bf16[256,128], index: 8, kind: input, shape index: {}]   ;;  %s2168_s9 = inlined_call_operand.vmem [shape: f32[1,128], index: 9, kind: input, shape index: {}]   ;;  %s2169_s10 = inlined_call_operand.vmem [shape: f32[16,128], index: 10, kind: output, shape index: {}]  }
   0x1 LB: > { %s1730_s14 = sadd.s32 4294967295, %s1665_s13   ;;  %p1380_p0 = scmp.ge.s32.totalorder %s1665_s13, 1  ;;  %s1665_s13 = sphi %s1724_s13, %s20_s13  }
   0x2   : > { %p313_p1 = scmp.lt.s32.totalorder %s1665_s13, 3 }
   0x4   : > { %p314_p2 = pnand %p1380_p0, %p313_p1 }
   0x5   : > { %s1381_s19 = sshll.u32 (!%p314_p2), %s1730_s14, 4  ;;  %p356_p4 = scmp.lt.s32.totalorder (!%p314_p2), %s1730_s14, 1 }
   0x6   : > { %317 = sbr.rel (%p314_p2) target bundleno = 759 (0x2f7), region = 60  ;;  %p351_p3 = scmp.lt.s32.totalorder (!%p314_p2), %s1381_s19, 31 }
   0xb   : > { %v1418_v0 = vld [vmem:[%s2160_s1] sm:$0xf]  ;;  %v1586_v1 = vld [vmem:[%s2160_s1] sm:$0x10]  ;;  %vm453_vm0 = vcmask 1044480   ;;  %s2171_s19 = smov (!%p351_p3, %s1381_s19), 31 }
   0xc   : > { %v1419_v2 = vor.u32 %v1586_v1, %v1418_v0  ;;  %s1382_s20 = sshll.u32 %s2171_s19, 2  ;;  %vm428_vm1 = vcmask 80896   ;;  %v1588_v12 = vld [vmem:[%s2162_s3 + $0x8] sm:$0xff]  ;;  %v1587_v13 = vld [vmem:[%s2162_s3] sm:$0xff]  ;;  %vm550_vm2 = vcmask 261120   ;;  %vm624_vm3 = vcmask 523264  }
   0xd   : > { %s354_s23 = scalar_lea.vmem %s2159_s0, %s1382_s20  ;;  %581 = vmatpush.bf16.msra.mxu1 %v1588_v12  ;;  %1622 = vmatpush.bf16.msra.mxu2 %v1588_v12  ;;  %v1636_v15 = vld [vmem:[%s2161_s2] ss:$0 sm:$0xff]  ;;  %vm975_vm6 = vcmask 1041409   ;;  %s2173_s14 = smov (!%p356_p4, %s1730_s14), 1 }
   0xe   : > { %v455_v3 = vsel %vm453_vm0, %v1419_v2, 0  ;;  %v1578_v4 = vld [vmem:[%s354_s23] sm:$0xff]  ;;  %v1585_v5 = vld [vmem:[%s354_s23 + $0x38] sm:$0xff]  ;;  %v1579_v6 = vld [vmem:[%s354_s23 + $0x8] sm:$0xff]  ;;  %s1383_s24 = sshll.u32 %s2173_s14, 3 }
   0xf   : > { %464 = vmatpush.bf16.msra.mxu0 %v455_v3  ;;  %1621 = vmatpush.bf16.msra.mxu3 %v455_v3  ;;  %v1580_v7 = vld [vmem:[%s354_s23 + $0x10] sm:$0xff]  ;;  %v1581_v8 = vld [vmem:[%s354_s23 + $0x18] sm:$0xff]  ;;  %v1582_v9 = vld [vmem:[%s354_s23 + $0x20] sm:$0xff]  ;;  %s359_s27 = scalar_lea.vmem %s2169_s10, %s1383_s24 }
  0x10   : > { %v1583_v10 = vld [vmem:[%s354_s23 + $0x28] sm:$0xff]  ;;  %v1584_v11 = vld [vmem:[%s354_s23 + $0x30] sm:$0xff] }
  0x11   : > { %582 = vmatpush.bf16.msra.mxu1 %v1587_v13  ;;  %1624 = vmatpush.bf16.msra.mxu2 %v1587_v13 }
  0x12   : > { %1420 = vmatmul.msk.bf16.vlgmr.msra.gmra.mxu0 %vm428_vm1, %v1578_v4  ;;  %1427 = vmatmul.msk.bf16.vlgmr.msra.gmra.mxu3 %vm428_vm1, %v1585_v5 }
  0x13   : > { %1623 = vmatpush.bf16.msrb.mxu3 %v1588_v12 }
  0x17   : > { %1625 = vmatpush.bf16.msrb.mxu3 %v1587_v13 }
  0x22   : > { %1421 = vmatmul.msk.bf16.gmra.mxu0 %vm428_vm1, %v1579_v6 }
  0x32   : > { %1422 = vmatmul.msk.bf16.gmra.mxu0 %vm428_vm1, %v1580_v7  ;;  %v1667_v7 = vmov 16.0  }
  0x33   : > { %1639 = vrcp.f32 %v1667_v7 }
  0x42   : > { %1423 = vmatmul.msk.bf16.gmra.mxu0 %vm428_vm1, %v1581_v8 }
  0x52   : > { %1424 = vmatmul.msk.bf16.gmra.mxu0 %vm428_vm1, %v1582_v9  ;;  %v1772_v9 = vld [vmem:[%s2163_s4] ss:$0 sm:$0xff] }
  0x62   : > { %1425 = vmatmul.msk.bf16.gmra.mxu0 %vm428_vm1, %v1583_v10  ;;  %v1640_v10 = vpop.eup %1639 }
  0x63   : > { %v698_v12 = vmul.f32 16.0, %v1640_v10  ;;  %vm702_vm4 = vweird.f32 %v1640_v10 }
  0x72   : > { %1426 = vmatmul.msk.bf16.gmra.mxu0 %vm428_vm1, %v1584_v11 }
  0x8f   : > { %v466_v14 = vpop.f32.mrf.mxu0 }
  0x90   : > { %v467_v16 = vadd.f32 %v1636_v15, %v466_v14 }
  0x92   : > { %v506_v20 = vmax.f32 %v467_v16, 0.0 }
  0x95   : > { %v501_v17 = vpop.f32.mrf.mxu3 }
  0x96   : > { %v502_v22 = vadd.f32 %v1636_v15, %v501_v17  ;;  %v699_v17 = vsub.f32 1.0, %v698_v12 }
  0x97   : > { %v468_v18 = vpop.f32.mrf.mxu0 }
  0x98   : > { %v469_v19 = vadd.f32 %v1636_v15, %v468_v18  ;;  %v520_v26 = vmax.f32 %v502_v22, 0.0 }
  0x9a   : > { %v507_v21 = vmax.f32 %v469_v19, 0.0 }
  0x9c   : > { %v522_v23 = vpack.c.bf16 %v507_v21, %v506_v20  ;;  %v700_v20 = vmul.f32 %v1640_v10, %v699_v17 }
  0x9d   : > { %v503_v24 = vpop.f32.mrf.mxu3 }
  0x9e   : > { %1436 = vmatmul.msk.bf16.vlgmr.msra.gmra.mxu1 %vm550_vm2, %v522_v23  ;;  %v504_v27 = vadd.f32 %v1636_v15, %v503_v24  ;;  %v1668_v24 = vmov 15.0  }
  0x9f   : > { %v471_v25 = vpop.f32.mrf.mxu0  ;;  %1641 = vrcp.f32 %v1668_v24 }
  0xa0   : > { %v521_v28 = vmax.f32 %v504_v27, 0.0  ;;  %v472_v30 = vadd.f32 %v1636_v15, %v471_v25  ;;  %v701_v25 = vadd.f32 %v1640_v10, %v700_v20 }
  0xa2   : > { %v529_v29 = vpack.c.bf16 %v521_v28, %v520_v26  ;;  %v508_v33 = vmax.f32 %v472_v30, 0.0  ;;  %v1778_v28 = vsel %vm702_vm4, %v1640_v10, %v701_v25 }
  0xa4   : > { %1443 = vmatmul.msk.bf16.vlgmr.msrb.gmra.mxu3 %vm550_vm2, %v529_v29 }
  0xa5   : > { %v1642_v30 = vpop.eup %1641 }
  0xa6   : > { %vm821_vm5 = vweird.f32 %v1642_v30 }
  0xa7   : > { %v473_v31 = vpop.f32.mrf.mxu0 }
  0xa8   : > { %v474_v32 = vadd.f32 %v1636_v15, %v473_v31 }
  0xaa   : > { %v509_v34 = vmax.f32 %v474_v32, 0.0 }
  0xac   : > { %v523_v35 = vpack.c.bf16 %v509_v34, %v508_v33 }
  0xae   : > { %1437 = vmatmul.msk.bf16.gmra.mxu1 %vm550_vm2, %v523_v35  ;;  %v817_v35 = vmul.f32 15.0, %v1642_v30 }
  0xaf   : > { %v476_v36 = vpop.f32.mrf.mxu0 }
  0xb0   : > { %v477_v37 = vadd.f32 %v1636_v15, %v476_v36 }
  0xb2   : > { %v510_v40 = vmax.f32 %v477_v37, 0.0 }
  0xb7   : > { %v478_v38 = vpop.f32.mrf.mxu0 }
  0xb8   : > { %v479_v39 = vadd.f32 %v1636_v15, %v478_v38 }
  0xba   : > { %v511_v41 = vmax.f32 %v479_v39, 0.0 }
  0xbc   : > { %v524_v42 = vpack.c.bf16 %v511_v41, %v510_v40 }
  0xbe   : > { %1438 = vmatmul.msk.bf16.gmra.mxu1 %vm550_vm2, %v524_v42 }
  0xbf   : > { %v481_v43 = vpop.f32.mrf.mxu0 }
  0xc0   : > { %v482_v44 = vadd.f32 %v1636_v15, %v481_v43 }
  0xc2   : > { %v512_v47 = vmax.f32 %v482_v44, 0.0 }
  0xc7   : > { %v483_v45 = vpop.f32.mrf.mxu0 }
  0xc8   : > { %v484_v46 = vadd.f32 %v1636_v15, %v483_v45  ;;  %v818_v45 = vsub.f32 1.0, %v817_v35 }
  0xca   : > { %v513_v48 = vmax.f32 %v484_v46, 0.0 }
  0xcc   : > { %v525_v49 = vpack.c.bf16 %v513_v48, %v512_v47 }
  0xce   : > { %1439 = vmatmul.msk.bf16.gmra.mxu1 %vm550_vm2, %v525_v49 }
  0xcf   : > { %v486_v50 = vpop.f32.mrf.mxu0 }
  0xd0   : > { %v487_v51 = vadd.f32 %v1636_v15, %v486_v50 }
  0xd2   : > { %v514_v54 = vmax.f32 %v487_v51, 0.0 }
  0xd7   : > { %v488_v52 = vpop.f32.mrf.mxu0 }
  0xd8   : > { %v489_v53 = vadd.f32 %v1636_v15, %v488_v52 }
  0xda   : > { %v515_v55 = vmax.f32 %v489_v53, 0.0  ;;  %v819_v53 = vmul.f32 %v1642_v30, %v818_v45 }
  0xdc   : > { %v526_v56 = vpack.c.bf16 %v515_v55, %v514_v54 }
  0xde   : > { %1440 = vmatmul.msk.bf16.gmra.mxu1 %vm550_vm2, %v526_v56 }
  0xdf   : > { %v491_v57 = vpop.f32.mrf.mxu0 }
  0xe0   : > { %v492_v58 = vadd.f32 %v1636_v15, %v491_v57 }
  0xe2   : > { %v516_v61 = vmax.f32 %v492_v58, 0.0  ;;  %v820_v58 = vadd.f32 %v1642_v30, %v819_v53 }
  0xe7   : > { %v493_v59 = vpop.f32.mrf.mxu0 }
  0xe8   : > { %v494_v60 = vadd.f32 %v1636_v15, %v493_v59 }
  0xea   : > { %v517_v62 = vmax.f32 %v494_v60, 0.0 }
  0xec   : > { %v527_v63 = vpack.c.bf16 %v517_v62, %v516_v61 }
  0xee   : > { %1441 = vmatmul.msk.bf16.gmra.mxu1 %vm550_vm2, %v527_v63 }
  0xef   : > { %v496_v0 = vpop.f32.mrf.mxu0 }
  0xf0   : > { %v497_v1 = vadd.f32 %v1636_v15, %v496_v0 }
  0xf2   : > { %v518_v4 = vmax.f32 %v497_v1, 0.0 }
  0xf7   : > { %v498_v2 = vpop.f32.mrf.mxu0 }
  0xf8   : > { %v499_v3 = vadd.f32 %v1636_v15, %v498_v2 }
  0xfa   : > { %v519_v5 = vmax.f32 %v499_v3, 0.0  ;;  %v1791_v3 = vsel %vm821_vm5, %v1642_v30, %v820_v58 }
  0xfc   : > { %v528_v6 = vpack.c.bf16 %v519_v5, %v518_v4 }
  0xfe   : > { %1442 = vmatmul.msk.bf16.vlgmr.msra.gmra.mxu2 %vm550_vm2, %v528_v6 }
 0x11b   : > { %v584_v8 = vpop.f32.mrf.mxu1 }
 0x11c   : > { %v585_v11 = vadd.f32 %v1772_v9, %v584_v8 }
 0x11e   : > { %v625_v15 = vsel %vm624_vm3, %v585_v11, 0.0 }
 0x123   : > { %v586_v13 = vpop.f32.mrf.mxu1 }
 0x124   : > { %v587_v14 = vadd.f32 %v1772_v9, %v586_v13 }
 0x126   : > { %v626_v16 = vsel %vm624_vm3, %v587_v14, 0.0 }
 0x127   : > { %v627_v18 = vadd.f32 %v626_v16, %v625_v15  ;;  %v619_v44 = vpop.f32.mrf.mxu3 }
 0x128   : > { %v1794_v4 = vadd.f32 %v1772_v9, %v619_v44 }
 0x129   : > { %v628_v19 = vrot.slane %v627_v18, 4 }
 0x12b   : > { %v629_v21 = vadd.f32 %v628_v19, %v627_v18  ;;  %v589_v22 = vpop.f32.mrf.mxu1  ;;  %v688_v18 = vsel %vm624_vm3, %v1794_v4, 0.0 }
 0x12c   : > { %v590_v29 = vadd.f32 %v1772_v9, %v589_v22 }
 0x12d   : > { %v630_v23 = vrot.slane %v629_v21, 2 }
 0x12e   : > { %v634_v36 = vsel %vm624_vm3, %v590_v29, 0.0 }
 0x12f   : > { %v631_v26 = vadd.f32 %v630_v23, %v629_v21  ;;  %v621_v61 = vpop.f32.mrf.mxu3 }
 0x130   : > { %v1797_v5 = vadd.f32 %v1772_v9, %v621_v61 }
 0x131   : > { %v632_v27 = vrot.slane %v631_v26, 1 }
 0x132   : > { %v689_v19 = vsel %vm624_vm3, %v1797_v5, 0.0 }
 0x133   : > { %v633_v31 = vadd.f32 %v632_v27, %v631_v26  ;;  %v591_v32 = vpop.f32.mrf.mxu1 }
 0x134   : > { %v592_v33 = vadd.f32 %v1772_v9, %v591_v32 }
 0x135   : > { %v704_v34 = vmul.f32 %v1778_v28, %v633_v31 }
 0x136   : > { %v635_v37 = vsel %vm624_vm3, %v592_v33, 0.0 }
 0x137   : > { %v712_v38 = vsub.f32 %v585_v11, %v704_v34  ;;  %v713_v39 = vsub.f32 %v587_v14, %v704_v34  ;;  %v636_v40 = vadd.f32 %v635_v37, %v634_v36  ;;  %v927_v63 = vpack.c.bf16 %v704_v34, %v704_v34 }
 0x139   : > { %v728_v41 = vmul.f32 %v712_v38, %v712_v38  ;;  %v729_v42 = vmul.f32 %v713_v39, %v713_v39  ;;  %v637_v43 = vrot.slane %v636_v40, 4  ;;  %v1067_v12 = vunpack.c.l.b16 %v927_v63 }
 0x13b   : > { %v744_v46 = vsel %vm624_vm3, %v728_v41, 0.0  ;;  %v745_v47 = vsel %vm624_vm3, %v729_v42, 0.0  ;;  %v638_v48 = vadd.f32 %v637_v43, %v636_v40  ;;  %v594_v49 = vpop.f32.mrf.mxu1 }
 0x13c   : > { %v746_v50 = vadd.f32 %v745_v47, %v744_v46  ;;  %v1800_v10 = vadd.f32 %v1772_v9, %v594_v49 }
 0x13d   : > { %v639_v51 = vrot.slane %v638_v48, 2 }
 0x13e   : > { %v747_v52 = vrot.slane %v746_v50, 4  ;;  %v643_v23 = vsel %vm624_vm3, %v1800_v10, 0.0 }
 0x13f   : > { %v640_v54 = vadd.f32 %v639_v51, %v638_v48 }
 0x140   : > { %v748_v55 = vadd.f32 %v747_v52, %v746_v50 }
 0x141   : > { %v641_v56 = vrot.slane %v640_v54, 1 }
 0x142   : > { %v749_v57 = vrot.slane %v748_v55, 2 }
 0x143   : > { %v642_v59 = vadd.f32 %v641_v56, %v640_v54  ;;  %v596_v60 = vpop.f32.mrf.mxu1 }
 0x144   : > { %v750_v62 = vadd.f32 %v749_v57, %v748_v55  ;;  %v1789_v1 = vadd.f32 %v1772_v9, %v596_v60 }
 0x145   : > { %v705_v0 = vmul.f32 %v1778_v28, %v642_v59 }
 0x146   : > { %v751_v2 = vrot.slane %v750_v62, 1  ;;  %v644_v16 = vsel %vm624_vm3, %v1789_v1, 0.0 }
 0x147   : > { %v714_v6 = vsub.f32 %v590_v29, %v705_v0  ;;  %v715_v7 = vsub.f32 %v592_v33, %v705_v0  ;;  %v928_v8 = vpack.c.bf16 %v705_v0, %v705_v0  ;;  %v645_v26 = vadd.f32 %v644_v16, %v643_v23 }
 0x148   : > { %v752_v11 = vadd.f32 %v751_v2, %v750_v62  ;;  %v690_v29 = vadd.f32 %v689_v19, %v688_v18 }
 0x149   : > { %v730_v13 = vmul.f32 %v714_v6, %v714_v6  ;;  %v731_v14 = vmul.f32 %v715_v7, %v715_v7  ;;  %v1068_v15 = vunpack.c.l.b16 %v928_v8  ;;  %v646_v31 = vrot.slane %v645_v26, 4 }
 0x14a   : > { %v1805_v17 = vmul.f32 %v1791_v3, %v752_v11  ;;  %v691_v34 = vrot.slane %v690_v29, 4 }
 0x14b   : > { %v753_v20 = vsel %vm624_vm3, %v730_v13, 0.0  ;;  %v754_v21 = vsel %vm624_vm3, %v731_v14, 0.0  ;;  %v1814_v22 = vsel %vm975_vm6, %v1068_v15, %v1067_v12  ;;  %v599_v24 = vpop.f32.mrf.mxu1  ;;  %v647_v39 = vadd.f32 %v646_v31, %v645_v26 }
 0x14c   : > { %1643 = vrsqrt.f32 %v1805_v17  ;;  %v755_v25 = vadd.f32 %v754_v21, %v753_v20  ;;  %v600_v36 = vadd.f32 %v1772_v9, %v599_v24  ;;  %v692_v43 = vadd.f32 %v691_v34, %v690_v29 }
 0x14d   : > { %v648_v47 = vrot.slane %v647_v39, 2  ;;  %vm838_vm7 = vcmp.eq.f32.partialorder %v1805_v17, inf  ;;  %v841_v26 = vand.u32 2147483648, %v1805_v17  ;;  %vm840_vm8 = vcmp.eq.f32.partialorder %v1805_v17, 0.0 }
 0x14e   : > { %v756_v27 = vrot.slane %v755_v25, 4  ;;  %v652_v45 = vsel %vm624_vm3, %v600_v36, 0.0  ;;  %v693_v51 = vrot.slane %v692_v43, 2 }
 0x14f   : > { %v649_v54 = vadd.f32 %v648_v47, %v647_v39 }
 0x150   : > { %v757_v30 = vadd.f32 %v756_v27, %v755_v25  ;;  %v694_v57 = vadd.f32 %v693_v51, %v692_v43 }
 0x151   : > { %v650_v59 = vrot.slane %v649_v54, 1 }
 0x152   : > { %v1644_v32 = vpop.eup %1643  ;;  %v758_v33 = vrot.slane %v757_v30, 2  ;;  %v695_v63 = vrot.slane %v694_v57, 1 }
 0x153   : > { %v832_v35 = vmul.f32 %v1644_v32, %v1805_v17  ;;  %v601_v37 = vpop.f32.mrf.mxu1  ;;  %v651_v8 = vadd.f32 %v650_v59, %v649_v54 }
 0x154   : > { %v759_v38 = vadd.f32 %v758_v33, %v757_v30  ;;  %v602_v40 = vadd.f32 %v1772_v9, %v601_v37  ;;  %v696_v15 = vadd.f32 %v695_v63, %v694_v57 }
 0x155   : > { %v833_v41 = vmul.f32 %v1644_v32, %v832_v35  ;;  %v1838_v21 = vmul.f32 %v1778_v28, %v651_v8 }
 0x156   : > { %v760_v42 = vrot.slane %v759_v38, 1  ;;  %v653_v44 = vsel %vm624_vm3, %v602_v40, 0.0  ;;  %v1846_v27 = vmul.f32 %v1778_v28, %v696_v15 }
 0x157   : > { %v654_v48 = vadd.f32 %v653_v44, %v652_v45  ;;  %v834_v49 = vmul.f32 0.5, %v833_v41  ;;  %v716_v33 = vsub.f32 %v1800_v10, %v1838_v21  ;;  %v717_v34 = vsub.f32 %v1789_v1, %v1838_v21 }
 0x158   : > { %v761_v46 = vadd.f32 %v760_v42, %v759_v38  ;;  %v727_v10 = vsub.f32 %v1797_v5, %v1846_v27 }
 0x159   : > { %v655_v52 = vrot.slane %v654_v48, 4  ;;  %v835_v55 = vsub.f32 1.5, %v834_v49  ;;  %v732_v1 = vmul.f32 %v716_v33, %v716_v33 }
 0x15a   : > { %v824_v50 = vmul.f32 %v1791_v3, %v761_v46  ;;  %v733_v46 = vmul.f32 %v717_v34, %v717_v34  ;;  %v743_v54 = vmul.f32 %v727_v10, %v727_v10 }
 0x15b   : > { %v604_v53 = vpop.f32.mrf.mxu1  ;;  %v656_v56 = vadd.f32 %v655_v52, %v654_v48  ;;  %v836_v60 = vmul.f32 %v1644_v32, %v835_v55 }
 0x15c   : > { %1645 = vrsqrt.f32 %v824_v50  ;;  %v1826_v0 = vadd.f32 %v1772_v9, %v604_v53  ;;  %vm850_vm9 = vcmp.eq.f32.partialorder %v824_v50, inf  ;;  %v853_v41 = vand.u32 2147483648, %v824_v50 }
 0x15d   : > { %v657_v58 = vrot.slane %v656_v56, 2  ;;  %v837_v12 = vmul.f32 %v836_v60, %v1805_v17  ;;  %vm852_vm10 = vcmp.eq.f32.partialorder %v824_v50, 0.0  ;;  %v808_v8 = vsel %vm624_vm3, %v743_v54, 0.0 }
 0x15e   : > { %v661_v16 = vsel %vm624_vm3, %v1826_v0, 0.0 }
 0x15f   : > { %v658_v61 = vadd.f32 %v657_v58, %v656_v56  ;;  %v839_v23 = vsel %vm838_vm7, %v1805_v17, %v837_v12  ;;  %v726_v17 = vsub.f32 %v1794_v4, %v1846_v27  ;;  %v763_v56 = vsel %vm624_vm3, %v733_v46, 0.0 }
 0x160   : > { %v842_v32 = vsel %vm840_vm8, %v841_v26, %v839_v23  ;;  %vm977_vm8 = vcmask 1042434  }
 0x161   : > { %v659_v6 = vrot.slane %v658_v61, 1  ;;  %v943_v44 = vpack.c.bf16 %v842_v32, %v842_v32  ;;  %v742_v4 = vmul.f32 %v726_v17, %v726_v17 }
 0x162   : > { %v1646_v62 = vpop.eup %1645 }
 0x163   : > { %v844_v2 = vmul.f32 %v1646_v62, %v824_v50  ;;  %v606_v7 = vpop.f32.mrf.mxu1  ;;  %v660_v14 = vadd.f32 %v659_v6, %v658_v61  ;;  %v967_v52 = vunpack.c.l.b16 %v943_v44  ;;  %v807_v6 = vsel %vm624_vm3, %v742_v4, 0.0 }
 0x164   : > { %v1829_v11 = vadd.f32 %v1772_v9, %v606_v7 }
 0x165   : > { %v845_v13 = vmul.f32 %v1646_v62, %v844_v2  ;;  %v1842_v25 = vmul.f32 %v1778_v28, %v660_v14 }
 0x166   : > { %v662_v18 = vsel %vm624_vm3, %v1829_v11, 0.0 }
 0x167   : > { %v846_v19 = vmul.f32 0.5, %v845_v13  ;;  %v663_v20 = vadd.f32 %v662_v18, %v661_v16  ;;  %v718_v38 = vsub.f32 %v600_v36, %v1842_v25  ;;  %v719_v39 = vsub.f32 %v602_v40, %v1842_v25 }
 0x169   : > { %v847_v24 = vsub.f32 1.5, %v846_v19  ;;  %v664_v29 = vrot.slane %v663_v20, 4  ;;  %v734_v36 = vmul.f32 %v718_v38, %v718_v38  ;;  %v735_v49 = vmul.f32 %v719_v39, %v719_v39 }
 0x16b   : > { %v848_v30 = vmul.f32 %v1646_v62, %v847_v24  ;;  %v609_v31 = vpop.f32.mrf.mxu1  ;;  %v665_v35 = vadd.f32 %v664_v29, %v663_v20  ;;  %v771_v59 = vsel %vm624_vm3, %v734_v36, 0.0  ;;  %v772_v60 = vsel %vm624_vm3, %v735_v49, 0.0 }
 0x16c   : > { %v610_v51 = vadd.f32 %v1772_v9, %v609_v31  ;;  %v773_v12 = vadd.f32 %v772_v60, %v771_v59  ;;  %v809_v20 = vadd.f32 %v808_v8, %v807_v6 }
 0x16d   : > { %v849_v37 = vmul.f32 %v848_v30, %v824_v50  ;;  %v666_v42 = vrot.slane %v665_v35, 2 }
 0x16e   : > { %v670_v62 = vsel %vm624_vm3, %v610_v51, 0.0  ;;  %v774_v24 = vrot.slane %v773_v12, 4  ;;  %v810_v33 = vrot.slane %v809_v20, 4 }
 0x16f   : > { %v851_v43 = vsel %vm850_vm9, %v824_v50, %v849_v37  ;;  %v667_v47 = vadd.f32 %v666_v42, %v665_v35  ;;  %v762_v50 = vsel %vm624_vm3, %v732_v1, 0.0  ;;  %vm979_vm9 = vcmask 1043459  }
 0x170   : > { %v854_v45 = vsel %vm852_vm10, %v853_v41, %v851_v43  ;;  %v764_v2 = vadd.f32 %v763_v56, %v762_v50  ;;  %v775_v35 = vadd.f32 %v774_v24, %v773_v12  ;;  %v811_v41 = vadd.f32 %v810_v33, %v809_v20  ;;  %v1472_v24 = vld [vmem:[%s2165_s6 + $0x38] sm:$0xf0]  ;;  %v1601_v33 = vld [vmem:[%s2165_s6 + $0x24] sm:$0xf] }
 0x171   : > { %v944_v48 = vpack.c.bf16 %v854_v45, %v854_v45  ;;  %v668_v40 = vrot.slane %v667_v47, 1  ;;  %vm981_vm10 = vcmask 1044484  }
 0x172   : > { %v765_v19 = vrot.slane %v764_v2, 4  ;;  %v776_v42 = vrot.slane %v775_v35, 2  ;;  %v812_v45 = vrot.slane %v811_v41, 2 }
 0x173   : > { %v968_v53 = vunpack.c.l.b16 %v944_v48  ;;  %v611_v55 = vpop.f32.mrf.mxu1  ;;  %v669_v5 = vadd.f32 %v668_v40, %v667_v47 }
 0x174   : > { %v612_v57 = vadd.f32 %v1772_v9, %v611_v55  ;;  %v766_v32 = vadd.f32 %v765_v19, %v764_v2  ;;  %v777_v47 = vadd.f32 %v776_v42, %v775_v35  ;;  %v813_v54 = vadd.f32 %v812_v45, %v811_v41  ;;  %v1600_v41 = vld [vmem:[%s2165_s6 + $0x14] sm:$0xf0] }
 0x175   : > { %v1864_v58 = vsel %vm975_vm6, %v968_v53, %v967_v52  ;;  %v1869_v61 = vmul.f32 %v1778_v28, %v669_v5 }
 0x176   : > { %v671_v63 = vsel %vm624_vm3, %v612_v57, 0.0  ;;  %v767_v39 = vrot.slane %v766_v32, 2 }
 0x177   : > { %v672_v7 = vadd.f32 %v671_v63, %v670_v62  ;;  %v720_v13 = vsub.f32 %v1826_v0, %v1869_v61  ;;  %v721_v14 = vsub.f32 %v1829_v11, %v1869_v61 }
 0x178   : > { %v768_v10 = vadd.f32 %v767_v39, %v766_v32  ;;  %v1602_v32 = vld [vmem:[%s2165_s6 + $0x24] sm:$0xf0]  ;;  %v1454_v39 = vld [vmem:[%s2165_s6 + $0x10] sm:$0xf] }
 0x179   : > { %v673_v15 = vrot.slane %v672_v7, 4  ;;  %v736_v16 = vmul.f32 %v720_v13, %v720_v13  ;;  %v737_v18 = vmul.f32 %v721_v14, %v721_v14  ;;  %v1470_v14 = vld [vmem:[%s2165_s6 + $0x30] sm:$0xf] }
 0x17a   : > { %v769_v4 = vrot.slane %v768_v10, 1 }
 0x17b   : > { %v674_v23 = vadd.f32 %v673_v15, %v672_v7  ;;  %v780_v26 = vsel %vm624_vm3, %v736_v16, 0.0  ;;  %v781_v29 = vsel %vm624_vm3, %v737_v18, 0.0  ;;  %v1604_v15 = vld [vmem:[%s2165_s6 + $0x34] sm:$0xf0] }
 0x17c   : > { %v782_v30 = vadd.f32 %v781_v29, %v780_v26  ;;  %v770_v63 = vadd.f32 %v769_v4, %v768_v10  ;;  %v1471_v20 = vor.u32 %v1604_v15, %v1470_v14  ;;  %v1456_v10 = vld [vmem:[%s2165_s6 + $0x18] sm:$0xf0]  ;;  %v1597_v4 = vld [vmem:[%s2165_s6 + $0x4] sm:$0xf] }
 0x17d   : > { %v675_v31 = vrot.slane %v674_v23, 2 }
 0x17e   : > { %v783_v34 = vrot.slane %v782_v30, 4  ;;  %v1905_v16 = vmul.f32 %v1791_v3, %v770_v63  ;;  %1037 = vmatpush.bf16.msrb.mxu2 %v1471_v20 }
 0x17f   : > { %v676_v0 = vadd.f32 %v675_v31, %v674_v23  ;;  %v1603_v23 = vld [vmem:[%s2165_s6 + $0x34] sm:$0xf]  ;;  %v1462_v31 = vld [vmem:[%s2165_s6 + $0x20] sm:$0xf] }
 0x180   : > { %v784_v37 = vadd.f32 %v783_v34, %v782_v30  ;;  %v1475_v30 = vor.u32 %v1603_v23, %v1472_v24  ;;  %v1463_v35 = vor.u32 %v1602_v32, %v1462_v31  ;;  %1647 = vrsqrt.f32 %v1905_v16 }
 0x181   : > { %v677_v11 = vrot.slane %v676_v0, 1  ;;  %v614_v38 = vpop.f32.mrf.mxu2  ;;  %vm862_vm11 = vcmp.eq.f32.partialorder %v1905_v16, inf  ;;  %vm864_vm12 = vcmp.eq.f32.partialorder %v1905_v16, 0.0 }
 0x182   : > { %v785_v43 = vrot.slane %v784_v37, 2  ;;  %v1887_v48 = vadd.f32 %v1772_v9, %v614_v38  ;;  %1050 = vmatpush.bf16.msra.mxu3 %v1475_v30  ;;  %1038 = vmatpush.bf16.msrb.mxu2 %v1463_v35 }
 0x183   : > { %v678_v17 = vadd.f32 %v677_v11, %v676_v0 }
 0x184   : > { %v786_v36 = vadd.f32 %v785_v43, %v784_v37  ;;  %v679_v5 = vsel %vm624_vm3, %v1887_v48, 0.0  ;;  %v1464_v37 = vld [vmem:[%s2165_s6 + $0x28] sm:$0xf0]  ;;  %v1599_v43 = vld [vmem:[%s2165_s6 + $0x14] sm:$0xf] }
 0x185   : > { %v1882_v44 = vmul.f32 %v1778_v28, %v678_v17  ;;  %v1467_v38 = vor.u32 %v1601_v33, %v1464_v37 }
 0x186   : > { %v787_v59 = vrot.slane %v786_v36, 1 }
 0x187   : > { %v722_v1 = vsub.f32 %v610_v51, %v1882_v44  ;;  %v723_v46 = vsub.f32 %v612_v57, %v1882_v44  ;;  %v778_v51 = vrot.slane %v777_v47, 1  ;;  %1051 = vmatpush.bf16.msra.mxu3 %v1467_v38 }
 0x188   : > { %v788_v8 = vadd.f32 %v787_v59, %v786_v36  ;;  %v1459_v36 = vor.u32 %v1599_v43, %v1456_v10  ;;  %v1596_v43 = vld [vmem:[%s2164_s5 + $0x34] sm:$0xf0]  ;;  %v1595_v10 = vld [vmem:[%s2164_s5 + $0x34] sm:$0xf] }
 0x189   : > { %v738_v49 = vmul.f32 %v722_v1, %v722_v1  ;;  %v739_v40 = vmul.f32 %v723_v46, %v723_v46  ;;  %v616_v52 = vpop.f32.mrf.mxu2  ;;  %v779_v6 = vadd.f32 %v778_v51, %v777_v47  ;;  %v1455_v46 = vor.u32 %v1600_v41, %v1454_v39 }
 0x18a   : > { %v1890_v53 = vadd.f32 %v1772_v9, %v616_v52  ;;  %v814_v9 = vrot.slane %v813_v54, 1  ;;  %v1926_v34 = vmul.f32 %v1791_v3, %v788_v8 }
 0x18b   : > { %v789_v55 = vsel %vm624_vm3, %v738_v49, 0.0  ;;  %v790_v50 = vsel %vm624_vm3, %v739_v40, 0.0  ;;  %v1914_v26 = vmul.f32 %v1791_v3, %v779_v6  ;;  %v1446_v49 = vld [vmem:[%s2165_s6] sm:$0xf]  ;;  %v1598_v40 = vld [vmem:[%s2165_s6 + $0x4] sm:$0xf0]  ;;  %1039 = vmatpush.bf16.msrb.mxu2 %v1455_v46  ;;  %1052 = vmatpush.bf16.msra.mxu3 %v1459_v36 }
 0x18c   : > { %v791_v56 = vadd.f32 %v790_v50, %v789_v55  ;;  %v680_v57 = vsel %vm624_vm3, %v1890_v53, 0.0  ;;  %v815_v18 = vadd.f32 %v814_v9, %v813_v54  ;;  %v1448_v54 = vld [vmem:[%s2165_s6 + $0x8] sm:$0xf0]  ;;  %v1648_v55 = vpop.eup %1647  ;;  %v1447_v51 = vor.u32 %v1598_v40, %v1446_v49  ;;  %v1506_v46 = vld [vmem:[%s2164_s5 + $0x38] sm:$0xf0] }
 0x18d   : > { %v681_v60 = vadd.f32 %v680_v57, %v679_v5  ;;  %1649 = vrsqrt.f32 %v1914_v26  ;;  %v1451_v5 = vor.u32 %v1597_v4, %v1448_v54  ;;  %v1496_v36 = vld [vmem:[%s2164_s5 + $0x20] sm:$0xf]  ;;  %v1594_v49 = vld [vmem:[%s2164_s5 + $0x24] sm:$0xf0]  ;;  %v1509_v54 = vor.u32 %v1595_v10, %v1506_v46 }
 0x18e   : > { %v792_v62 = vrot.slane %v791_v56, 4  ;;  %v1939_v17 = vmul.f32 %v1791_v3, %v815_v18  ;;  %1651 = vrsqrt.f32 %v1926_v34  ;;  %vm874_vm14 = vcmp.eq.f32.partialorder %v1914_v26, inf }
 0x18f   : > { %v682_v2 = vrot.slane %v681_v60, 4  ;;  %1040 = vmatpush.bf16.msrb.mxu2 %v1447_v51  ;;  %1053 = vmatpush.bf16.msra.mxu3 %v1451_v5  ;;  %v1497_v51 = vor.u32 %v1594_v49, %v1496_v36  ;;  %vm886_vm15 = vcmp.eq.f32.partialorder %v1926_v34, inf  ;;  %vm876_vm1 = vcmp.eq.f32.partialorder %v1914_v26, 0.0 }
 0x190   : > { %v793_v7 = vadd.f32 %v792_v62, %v791_v56  ;;  %1653 = vrsqrt.f32 %v1939_v17  ;;  %vm922_vm13 = vcmp.eq.f32.partialorder %v1939_v17, inf  ;;  %vm888_vm2 = vcmp.eq.f32.partialorder %v1926_v34, 0.0 }
 0x191   : > { %v683_v12 = vadd.f32 %v682_v2, %v681_v60  ;;  %v856_v2 = vmul.f32 %v1648_v55, %v1905_v16  ;;  %vm924_vm5 = vcmp.eq.f32.partialorder %v1939_v17, 0.0 }
 0x192   : > { %v794_v13 = vrot.slane %v793_v7, 2 }
 0x193   : > { %v684_v19 = vrot.slane %v683_v12, 2  ;;  %v1650_v56 = vpop.eup %1649  ;;  %1143 = vmatpush.bf16.msrb.mxu3 %v1509_v54 }
 0x194   : > { %v795_v29 = vadd.f32 %v794_v13, %v793_v7  ;;  %v1652_v57 = vpop.eup %1651  ;;  %v857_v13 = vmul.f32 %v1648_v55, %v856_v2 }
 0x195   : > { %v685_v0 = vadd.f32 %v684_v19, %v683_v12  ;;  %v880_v7 = vmul.f32 %v1652_v57, %v1926_v34 }
 0x196   : > { %v796_v11 = vrot.slane %v795_v29, 1  ;;  %v1654_v62 = vpop.eup %1653  ;;  %v858_v24 = vmul.f32 0.5, %v857_v13  ;;  %v865_v13 = vand.u32 2147483648, %v1905_v16 }
 0x197   : > { %v686_v42 = vrot.slane %v685_v0, 1  ;;  %v916_v14 = vmul.f32 %v1654_v62, %v1939_v17  ;;  %v881_v19 = vmul.f32 %v1652_v57, %v880_v7 }
 0x198   : > { %v797_v45 = vadd.f32 %v796_v11, %v795_v29  ;;  %v859_v35 = vsub.f32 1.5, %v858_v24 }
 0x199   : > { %v687_v1 = vadd.f32 %v686_v42, %v685_v0  ;;  %v917_v29 = vmul.f32 %v1654_v62, %v916_v14  ;;  %v882_v32 = vmul.f32 0.5, %v881_v19  ;;  %v1504_v42 = vld [vmem:[%s2164_s5 + $0x30] sm:$0xf] }
 0x19a   : > { %v1950_v47 = vmul.f32 %v1791_v3, %v797_v45  ;;  %v860_v40 = vmul.f32 %v1648_v55, %v859_v35  ;;  %v1488_v55 = vld [vmem:[%s2164_s5 + $0x10] sm:$0xf]  ;;  %v889_v35 = vand.u32 2147483648, %v1926_v34 }
 0x19b   : > { %v1959_v52 = vmul.f32 %v1778_v28, %v687_v1  ;;  %v918_v37 = vmul.f32 0.5, %v917_v29  ;;  %v883_v39 = vsub.f32 1.5, %v882_v32  ;;  %v1505_v1 = vor.u32 %v1596_v43, %v1504_v42 }
 0x19c   : > { %1655 = vrsqrt.f32 %v1950_v47  ;;  %v877_v29 = vand.u32 2147483648, %v1914_v26  ;;  %vm898_vm0 = vcmp.eq.f32.partialorder %v1950_v47, inf  ;;  %vm900_vm4 = vcmp.eq.f32.partialorder %v1950_v47, 0.0 }
 0x19d   : > { %v724_v50 = vsub.f32 %v1887_v48, %v1959_v52  ;;  %v725_v28 = vsub.f32 %v1890_v53, %v1959_v52  ;;  %v868_v53 = vmul.f32 %v1650_v56, %v1914_v26  ;;  %v919_v4 = vsub.f32 1.5, %v918_v37  ;;  %1130 = vmatpush.bf16.msra.mxu2 %v1505_v1 }
 0x19e   : > { %v884_v5 = vmul.f32 %v1652_v57, %v883_v39  ;;  %v861_v57 = vmul.f32 %v860_v40, %v1905_v16 }
 0x19f   : > { %v740_v59 = vmul.f32 %v724_v50, %v724_v50  ;;  %v741_v60 = vmul.f32 %v725_v28, %v725_v28  ;;  %v869_v18 = vmul.f32 %v1650_v56, %v868_v53  ;;  %v1498_v50 = vld [vmem:[%s2164_s5 + $0x28] sm:$0xf0]  ;;  %v920_v2 = vmul.f32 %v1654_v62, %v919_v4  ;;  %v1590_v62 = vld [vmem:[%s2164_s5 + $0x4] sm:$0xf0] }
 0x1a0   : > { %v863_v19 = vsel %vm862_vm11, %v1905_v16, %v861_v57  ;;  %v925_v16 = vand.u32 2147483648, %v1939_v17  ;;  %vm983_vm11 = vcmask 1045509  }
 0x1a1   : > { %v798_v63 = vsel %vm624_vm3, %v740_v59, 0.0  ;;  %v799_v9 = vsel %vm624_vm3, %v741_v60, 0.0  ;;  %v870_v31 = vmul.f32 0.5, %v869_v18  ;;  %v1592_v60 = vld [vmem:[%s2164_s5 + $0x14] sm:$0xf0]  ;;  %1131 = vmatpush.bf16.msra.mxu2 %v1497_v51 }
 0x1a2   : > { %v1656_v48 = vpop.eup %1655  ;;  %v800_v6 = vadd.f32 %v799_v9, %v798_v63  ;;  %v1591_v9 = vld [vmem:[%s2164_s5 + $0x14] sm:$0xf]  ;;  %v1489_v53 = vor.u32 %v1592_v60, %v1488_v55  ;;  %v1482_v18 = vld [vmem:[%s2164_s5 + $0x8] sm:$0xf0] }
 0x1a3   : > { %v892_v8 = vmul.f32 %v1656_v48, %v1950_v47  ;;  %v871_v38 = vsub.f32 1.5, %v870_v31 }
 0x1a4   : > { %v801_v12 = vrot.slane %v800_v6, 4 }
 0x1a5   : > { %v893_v20 = vmul.f32 %v1656_v48, %v892_v8  ;;  %v872_v28 = vmul.f32 %v1650_v56, %v871_v38  ;;  %v1490_v56 = vld [vmem:[%s2164_s5 + $0x18] sm:$0xf0]  ;;  %v1480_v8 = vld [vmem:[%s2164_s5] sm:$0xf]  ;;  %1132 = vmatpush.bf16.msra.mxu2 %v1489_v53  ;;  %v901_v38 = vand.u32 2147483648, %v1950_v47 }
 0x1a6   : > { %v802_v15 = vadd.f32 %v801_v12, %v800_v6  ;;  %v1493_v7 = vor.u32 %v1591_v9, %v1490_v56  ;;  %v929_v56 = vpack.c.bf16 %v1838_v21, %v1838_v21  ;;  %v1620_v53 = vld [vmem:[%s2167_s8 + $0x78] sm:$0xff] }
 0x1a7   : > { %v894_v33 = vmul.f32 0.5, %v893_v20  ;;  %v873_v6 = vmul.f32 %v872_v28, %v1914_v26 }
 0x1a8   : > { %v803_v23 = vrot.slane %v802_v15, 2 }
 0x1a9   : > { %v895_v41 = vsub.f32 1.5, %v894_v33  ;;  %v875_v24 = vsel %vm874_vm14, %v1914_v26, %v873_v6  ;;  %v1612_v6 = vld [vmem:[%s2167_s8 + $0x38] sm:$0xff] }
 0x1aa   : > { %v804_v30 = vadd.f32 %v803_v23, %v802_v15  ;;  %v1589_v15 = vld [vmem:[%s2164_s5 + $0x4] sm:$0xf]  ;;  %v921_v23 = vmul.f32 %v920_v2, %v1939_v17 }
 0x1ab   : > { %v896_v63 = vmul.f32 %v1656_v48, %v895_v41  ;;  %v885_v48 = vmul.f32 %v884_v5, %v1926_v34  ;;  %v1485_v33 = vor.u32 %v1589_v15, %v1482_v18  ;;  %v934_v15 = vpack.c.bf16 %v1846_v27, %v1846_v27  ;;  %v1618_v27 = vld [vmem:[%s2167_s8 + $0x68] sm:$0xff] }
 0x1ac   : > { %v805_v0 = vrot.slane %v804_v30, 1  ;;  %v923_v26 = vsel %vm922_vm13, %v1939_v17, %v921_v23  ;;  %vm987_vm13 = vcmask 1047559  }
 0x1ad   : > { %v897_v14 = vmul.f32 %v896_v63, %v1950_v47  ;;  %v887_v31 = vsel %vm886_vm15, %v1926_v34, %v885_v48  ;;  %v931_v48 = vpack.c.bf16 %v1869_v61, %v1869_v61  ;;  %v1619_v61 = vld [vmem:[%s2167_s8 + $0x70] sm:$0xff] }
 0x1ae   : > { %v806_v11 = vadd.f32 %v805_v0, %v804_v30  ;;  %v1481_v30 = vor.u32 %v1590_v62, %v1480_v8  ;;  %v866_v0 = vsel %vm864_vm12, %v865_v13, %v863_v19  ;;  %v890_v41 = vsel %vm888_vm2, %v889_v35, %v887_v31  ;;  %v1609_v31 = vld [vmem:[%s2167_s8 + $0x20] sm:$0xff]  ;;  %v1607_v35 = vld [vmem:[%s2167_s8 + $0x10] sm:$0xff] }
 0x1af   : > { %v899_v37 = vsel %vm898_vm0, %v1950_v47, %v897_v14  ;;  %v945_v10 = vpack.c.bf16 %v866_v0, %v866_v0  ;;  %v947_v46 = vpack.c.bf16 %v890_v41, %v890_v41  ;;  %v926_v47 = vsel %vm924_vm5, %v925_v16, %v923_v26  ;;  %v1616_v0 = vld [vmem:[%s2167_s8 + $0x58] sm:$0xff]  ;;  %v1613_v41 = vld [vmem:[%s2167_s8 + $0x40] sm:$0xff] }
 0x1b0   : > { %v1990_v45 = vmul.f32 %v1791_v3, %v806_v11  ;;  %v1593_v3 = vld [vmem:[%s2164_s5 + $0x24] sm:$0xf]  ;;  %v878_v11 = vsel %vm876_vm1, %v877_v29, %v875_v24  ;;  %1133 = vmatpush.bf16.msra.mxu2 %v1481_v30  ;;  %v902_v42 = vsel %vm900_vm4, %v901_v38, %v899_v37  ;;  %v950_v28 = vpack.c.bf16 %v926_v47, %v926_v47  ;;  %v1615_v37 = vld [vmem:[%s2167_s8 + $0x50] sm:$0xff]  ;;  %v1614_v38 = vld [vmem:[%s2167_s8 + $0x48] sm:$0xff] }
 0x1b1   : > { %v1501_v59 = vor.u32 %v1593_v3, %v1498_v50  ;;  %v946_v34 = vpack.c.bf16 %v878_v11, %v878_v11  ;;  %v948_v36 = vpack.c.bf16 %v902_v42, %v902_v42  ;;  %v969_v40 = vunpack.c.l.b16 %v945_v10  ;;  %v1606_v11 = vld [vmem:[%s2167_s8 + $0x8] sm:$0xff]  ;;  %v1152_v26 = vld [vmem:[%s2166_s7] sm:$0x3] }
 0x1b2   : > { %1657 = vrsqrt.f32 %v1990_v45  ;;  %vm910_vm6 = vcmp.eq.f32.partialorder %v1990_v45, inf  ;;  %v913_v4 = vand.u32 2147483648, %v1990_v45  ;;  %vm912_vm7 = vcmp.eq.f32.partialorder %v1990_v45, 0.0 }
 0x1b3   : > { %1144 = vmatpush.bf16.msrb.mxu3 %v1501_v59  ;;  %v970_v54 = vunpack.c.l.b16 %v946_v34  ;;  %v971_v50 = vunpack.c.l.b16 %v947_v46  ;;  %v972_v51 = vunpack.c.l.b16 %v948_v36  ;;  %v978_v59 = vsel %vm977_vm8, %v969_v40, %v1864_v58 }
 0x1b4   : > { %v974_v9 = vunpack.c.l.b16 %v950_v28  ;;  %vm985_vm12 = vcmask 1046534   ;;  %v930_v58 = vpack.c.bf16 %v1842_v25, %v1842_v25  ;;  %v1069_v8 = vunpack.c.l.b16 %v929_v56 }
 0x1b5   : > { %v980_v55 = vsel %vm979_vm9, %v970_v54, %v978_v59  ;;  %v933_v25 = vpack.c.bf16 %v1959_v52, %v1959_v52  ;;  %v1074_v24 = vunpack.c.l.b16 %v934_v15  ;;  %v1154_v34 = vperm.slane %v1152_v26, 0 }
 0x1b6   : > { %v982_v63 = vsel %vm981_vm10, %v971_v50, %v980_v55  ;;  %v1070_v62 = vunpack.c.l.b16 %v930_v58  ;;  %v1076_v52 = vsel %vm977_vm8, %v1069_v8, %v1814_v22  ;;  %v1610_v22 = vld [vmem:[%s2167_s8 + $0x28] sm:$0xff] }
 0x1b7   : > { %1145 = vmatpush.bf16.msrb.mxu3 %v1493_v7  ;;  %v932_v7 = vpack.c.bf16 %v1882_v44, %v1882_v44  ;;  %v1071_v44 = vunpack.c.l.b16 %v931_v48  ;;  %v1073_v14 = vunpack.c.l.b16 %v933_v25 }
 0x1b8   : > { %v1658_v12 = vpop.eup %1657  ;;  %v1077_v18 = vsel %vm979_vm9, %v1070_v62, %v1076_v52 }
 0x1b9   : > { %v904_v20 = vmul.f32 %v1658_v12, %v1990_v45  ;;  %v1072_v13 = vunpack.c.l.b16 %v932_v7  ;;  %v1078_v19 = vsel %vm981_vm10, %v1071_v44, %v1077_v18 }
 0x1bb   : > { %v905_v32 = vmul.f32 %v1658_v12, %v904_v20  ;;  %1146 = vmatpush.bf16.msrb.mxu3 %v1485_v33  ;;  %v1079_v20 = vsel %vm983_vm11, %v1072_v13, %v1078_v19  ;;  %v1608_v33 = vld [vmem:[%s2167_s8 + $0x18] sm:$0xff] }
 0x1bc   : > { %v1080_v23 = vsel %vm985_vm12, %v1073_v14, %v1079_v20 }
 0x1bd   : > { %v906_v39 = vmul.f32 0.5, %v905_v32  ;;  %v1081_v29 = vsel %vm987_vm13, %v1074_v24, %v1080_v23  ;;  %v1617_v32 = vld [vmem:[%s2167_s8 + $0x60] sm:$0xff] }
 0x1be   : > { %v1082_v30 = vpack.c.b16 %v1081_v29, %v1081_v29 }
 0x1bf   : > { %v907_v43 = vsub.f32 1.5, %v906_v39  ;;  %v1605_v39 = vld [vmem:[%s2167_s8] sm:$0xff] }
 0x1c1   : > { %v908_v1 = vmul.f32 %v1658_v12, %v907_v43  ;;  %v1611_v12 = vld [vmem:[%s2167_s8 + $0x30] sm:$0xff] }
 0x1c3   : > { %v909_v49 = vmul.f32 %v908_v1, %v1990_v45  ;;  %v1155_v1 = vperm.slane %v1152_v26, 1 }
 0x1c5   : > { %v911_v3 = vsel %vm910_vm6, %v1990_v45, %v909_v49  ;;  %v984_v45 = vsel %vm983_vm11, %v972_v51, %v982_v63 }
 0x1c6   : > { %v914_v17 = vsel %vm912_vm7, %v913_v4, %v911_v3 }
 0x1c7   : > { %v949_v5 = vpack.c.bf16 %v914_v17, %v914_v17 }
 0x1c9   : > { %v973_v60 = vunpack.c.l.b16 %v949_v5  ;;  %v1638_v5 = vld [vmem:[%s2168_s9] ss:$0 sm:$0xff] }
 0x1cb   : > { %v986_v57 = vsel %vm985_vm12, %v973_v60, %v984_v45 }
 0x1cc   : > { %v988_v2 = vsel %vm987_vm13, %v974_v9, %v986_v57 }
 0x1cd   : > { %v989_v21 = vpack.c.b16 %v988_v2, %v988_v2 }
 0x1cf   : > { %1476 = vmatmul.msk.bf16.vlgmr.msrb.gmra.mxu2 %vm624_vm3, %v989_v21  ;;  %1477 = vmatmul.msk.bf16.vlgmr.msra.gmra.mxu3 %vm624_vm3, %v989_v21 }
 0x1d0   : > { %1296 = vmatpush.bf16.msrb.mxu2 %v1612_v6  ;;  %1309 = vmatpush.bf16.msra.mxu3 %v1620_v53 }
 0x1d4   : > { %1297 = vmatpush.bf16.msrb.mxu2 %v1611_v12  ;;  %1310 = vmatpush.bf16.msra.mxu3 %v1619_v61 }
 0x1d8   : > { %1298 = vmatpush.bf16.msrb.mxu2 %v1610_v22  ;;  %1311 = vmatpush.bf16.msra.mxu3 %v1618_v27 }
 0x1dc   : > { %1299 = vmatpush.bf16.msrb.mxu2 %v1609_v31  ;;  %1312 = vmatpush.bf16.msra.mxu3 %v1617_v32 }
 0x1df   : > { %1510 = vmatmul.msk.bf16.vlgmr.msra.gmra.mxu2 %vm624_vm3, %v1082_v30  ;;  %1511 = vmatmul.msk.bf16.vlgmr.msrb.gmra.mxu3 %vm624_vm3, %v1082_v30 }
 0x1e0   : > { %1300 = vmatpush.bf16.msrb.mxu2 %v1608_v33  ;;  %1313 = vmatpush.bf16.msra.mxu3 %v1616_v0 }
 0x1e4   : > { %1301 = vmatpush.bf16.msrb.mxu2 %v1607_v35  ;;  %1314 = vmatpush.bf16.msra.mxu3 %v1615_v37 }
 0x1e8   : > { %1302 = vmatpush.bf16.msrb.mxu2 %v1606_v11  ;;  %1315 = vmatpush.bf16.msra.mxu3 %v1614_v38 }
 0x1ec   : > { %1303 = vmatpush.bf16.msrb.mxu2 %v1605_v39  ;;  %1316 = vmatpush.bf16.msra.mxu3 %v1613_v41 }
 0x252   : > { %v1042_v42 = vpop.f32.mrf.mxu2  ;;  %v1055_v43 = vpop.f32.mrf.mxu3 }
 0x25a   : > { %v1044_v16 = vpop.f32.mrf.mxu2  ;;  %v1057_v10 = vpop.f32.mrf.mxu3 }
 0x262   : > { %v1135_v46 = vpop.f32.mrf.mxu2  ;;  %v1148_v36 = vpop.f32.mrf.mxu3 }
 0x263   : > { %v1136_v49 = vadd.f32 %v1135_v46, %v1042_v42  ;;  %v1149_v47 = vadd.f32 %v1148_v36, %v1055_v43 }
 0x265   : > { %v1158_v40 = vadd.f32 %v1154_v34, %v1136_v49  ;;  %v1159_v4 = vadd.f32 %v1155_v1, %v1149_v47 }
 0x267   : > { %v1160_v54 = vmax.f32 %v1158_v40, 0.0  ;;  %v1161_v3 = vmax.f32 %v1159_v4, 0.0 }
 0x269   : > { %v1162_v50 = vpack.c.bf16 %v1160_v54, %v1160_v54  ;;  %v1163_v17 = vpack.c.bf16 %v1161_v3, %v1161_v3 }
 0x26a   : > { %v1137_v28 = vpop.f32.mrf.mxu2  ;;  %v1150_v51 = vpop.f32.mrf.mxu3 }
 0x26b   : > { %1304 = vmatmul.bf16.vlgmr.msrb.gmra.mxu2 %v1162_v50  ;;  %1317 = vmatmul.bf16.vlgmr.msra.gmra.mxu3 %v1163_v17 }
 0x2ee   : > { %v1305_v59 = vpop.f32.mrf.mxu2  ;;  %v1318_v55 = vpop.f32.mrf.mxu3 }
 0x2ef   : > { %v1306_v60 = vadd.f32 %v1638_v5, %v1305_v59 }
 0x2f1   : > { %v1319_v63 = vadd.f32 %v1318_v55, %v1306_v60 }
 0x2f3   : > { %1322 = vst [vmem:[%s359_s27] sm:$0xff] %v1319_v63 }
 0x2f6   : > { %v1307_v9 = vpop.f32.mrf.mxu2  ;;  %v1320_v45 = vpop.f32.mrf.mxu3 }
 0x2f7 PF: > { %s20_s13 = sadd.s32 1, %s1665_s13  }
 0x2f8   : > { %p17_p5 = scmp.ge.s32.totalorder %s20_s13, 4  }
 0x2fa   :  { %19 = sbr.rel (!%p17_p5) target bundleno = 1 (0x1), region = 90 }

// kernel: timematch_forward.3
= control target key start
LH: loop header
LB: loop body
LE: loop exit
PB: predicated region body
PF: predicated region fallthrough
CT: control target
= control target key end

     0   :  { %s6339_s0 = inlined_call_operand.vmem [shape: f32[2,8,128], index: 0, kind: input, shape index: {}]   ;;  %s6340_s1 = inlined_call_operand.vmem [shape: f32[2,8,128], index: 1, kind: input, shape index: {}]   ;;  %s6341_s2 = inlined_call_operand.vmem [shape: f32[1,128], index: 2, kind: input, shape index: {}]   ;;  %s6342_s3 = inlined_call_operand.vmem [shape: f32[1,128], index: 3, kind: input, shape index: {}]   ;;  %s6343_s4 = inlined_call_operand.vmem [shape: bf16[128,128], index: 4, kind: input, shape index: {}]   ;;  %s6344_s5 = inlined_call_operand.vmem [shape: f32[1,128], index: 5, kind: input, shape index: {}]   ;;  %s6345_s6 = inlined_call_operand.vmem [shape: bf16[128,128], index: 6, kind: input, shape index: {}]   ;;  %s6346_s7 = inlined_call_operand.vmem [shape: f32[1,128], index: 7, kind: input, shape index: {}]   ;;  %s6347_s8 = inlined_call_operand.vmem [shape: bf16[128,128], index: 8, kind: input, shape index: {}]   ;;  %s6348_s9 = inlined_call_operand.vmem [shape: f32[1,128], index: 9, kind: input, shape index: {}]   ;;  %s6349_s10 = inlined_call_operand.vmem [shape: bf16[128,8], index: 10, kind: input, shape index: {}]   ;;  %s6350_s11 = inlined_call_operand.hbm [shape: bf16[1024,512], index: 11, kind: input, shape index: {}]   ;;  %s6351_s12 = inlined_call_operand.vmem [shape: f32[1,512], index: 12, kind: input, shape index: {}]   ;;  %s6352_s13 = inlined_call_operand.hbm [shape: bf16[512,256], index: 13, kind: input, shape index: {}]   ;;  %s6353_s14 = inlined_call_operand.vmem [shape: f32[1,256], index: 14, kind: input, shape index: {}]   ;;  %s6354_s15 = inlined_call_operand.vmem [shape: bf16[256,128], index: 15, kind: input, shape index: {}]   ;;  %s6355_s16 = inlined_call_operand.vmem [shape: f32[1,128], index: 16, kind: input, shape index: {}]   ;;  %s6356_s17 = inlined_call_operand.vmem [shape: f32[1,128], index: 17, kind: input, shape index: {}]   ;;  %s6357_s18 = inlined_call_operand.vmem [shape: f32[1,128], index: 18, kind: input, shape index: {}]   ;;  %s6358_s19 = inlined_call_operand.vmem [shape: bf16[128,64], index: 19, kind: input, shape index: {}]   ;;  %s6359_s20 = inlined_call_operand.vmem [shape: f32[1,64], index: 20, kind: input, shape index: {}]   ;;  %s6360_s21 = inlined_call_operand.vmem [shape: bf16[64,32], index: 21, kind: input, shape index: {}]   ;;  %s6361_s22 = inlined_call_operand.vmem [shape: f32[1,32], index: 22, kind: input, shape index: {}]   ;;  %s6362_s23 = inlined_call_operand.vmem [shape: bf16[32,128], index: 23, kind: input, shape index: {}]   ;;  %s6363_s24 = inlined_call_operand.vmem [shape: f32[1,128], index: 24, kind: input, shape index: {}]   ;;  %s6364_s25 = inlined_call_operand.hbm [shape: f32[2,128], index: 25, kind: output, shape index: {0}]   ;;  %s6365_s26 = inlined_call_operand.vmem [shape: f32[2,8,8], index: 26, kind: output, shape index: {1}]  }
   0x1   :  { %6372 = sst [smem:[#allocation11_spill]] %s6339_s0 }
   0x2   :  { %6373 = sst [smem:[#allocation12_spill]] %s6340_s1 }
   0x3   :  { %6374 = sst [smem:[#allocation13_spill]] %s6341_s2 }
   0x4   :  { %6375 = sst [smem:[#allocation14_spill]] %s6342_s3 }
   0x5   :  { %6376 = sst [smem:[#allocation15_spill]] %s6343_s4 }
   0x6   :  { %6377 = sst [smem:[#allocation16_spill]] %s6344_s5 }
   0x7   :  { %6378 = sst [smem:[#allocation17_spill]] %s6345_s6 }
   0x8   :  { %6379 = sst [smem:[#allocation18_spill]] %s6346_s7 }
   0x9   :  { %6380 = sst [smem:[#allocation19_spill]] %s6347_s8 }
   0xa   :  { %6381 = sst [smem:[#allocation20_spill]] %s6348_s9 }
   0xb   :  { %6382 = sst [smem:[#allocation21_spill]] %s6349_s10 }
   0xc   :  { %32 = vsyncpa [#allocation3], 0 }
   0xd   :  { %33 = vsyncpa [#allocation6], 0 }
   0xe   :  { %34 = vsyncpa [#allocation4], 0  ;;  %s61_s7 = sshll.u32 %s6350_s11, 4  ;;  %s5765_s28 = smov [#allocation2]   ;;  %s62_s7 = int_to_ptr.hbm [resolvable:$true] %s61_s7 }
   0xf   :  { %s63_s8 = sshll.u32 %s5765_s28, 4  ;;  %s76_s0 = sshll.u32 %s6352_s13, 4  ;;  %s64_s8 = int_to_ptr.vmem [resolvable:$true] %s63_s8  ;;  %s77_s0 = int_to_ptr.hbm [resolvable:$true] %s76_s0 }
  0x10   :  { %s5766_s9 = smov 256   ;;  %s5767_s30 = smov 16  }
  0x11   :  { %69 = dma.hbm_to_vmem [thread:$0]  %s62_s7, 32768, %s64_s8, [#allocation3], %s5766_s9, %s5766_s9, %s5767_s30  }
  0x12   :  { %s5768_s2 = smov [#allocation5]   ;;  %s5769_s10 = smov 128  }
  0x13   :  { %s78_s5 = sshll.u32 %s5768_s2, 4  ;;  %s5770_s6 = smov 8   ;;  %s79_s5 = int_to_ptr.vmem [resolvable:$true] %s78_s5 }
  0x14   :  { %84 = dma.hbm_to_vmem [thread:$0]  %s77_s0, 8192, %s79_s5, [#allocation6], %s5769_s10, %s5769_s10, %s5770_s6  }
  0x15   :  { %5759 = dma.done.wait [#allocation3], 32768  }
  0x16   :  { %5760 = vsyncadd [#allocation3], 4294934528 }
  0x17   :  { %5761 = dma.done.wait [#allocation6], 8192  }
  0x18   :  { %5762 = vsyncadd [#allocation6], 4294959104  ;;  %s6383_s27 = sld [smem:[#allocation11_spill]]  ;;  %v5771_v2 = vmov 128.0   ;;  %vm689_vm7 = vcmask 1043456   ;;  %vm313_vm9 = vcmask 1041409  }
  0x19   :  { %5668 = vrcp.f32 %v5771_v2  ;;  %s6384_s8 = sld [smem:[#allocation15_spill]]  ;;  %vm553_vm10 = vcmask 64512  }
  0x1a   :  { %s6385_s4 = sld [smem:[#allocation17_spill]] }
  0x1b   :  { %s6386_s9 = sld [smem:[#allocation19_spill]] }
  0x1c   :  { %s6387_s0 = sld [smem:[#allocation13_spill]] }
  0x1d   :  { %s6388_s2 = sld [smem:[#allocation14_spill]] }
  0x1e   :  { %v116_v0 = vld [vmem:[%s6383_s27] sm:$0xff]  ;;  %v117_v1 = vld [vmem:[%s6383_s27 + $0x8] sm:$0xff]  ;;  %s6389_s6 = sld [smem:[#allocation12_spill]] }
  0x1f   :  { %118 = vadd.xlane.f32.xlu0 %v116_v0  ;;  %v5669_v3 = vpop.eup %5668  ;;  %v5263_v17 = vld [vmem:[%s6384_s8 + $0x38] sm:$0xff]  ;;  %v5262_v18 = vld [vmem:[%s6384_s8 + $0x30] sm:$0xff]  ;;  %v5261_v19 = vld [vmem:[%s6384_s8 + $0x28] sm:$0xff]  ;;  %s6390_s7 = sld [smem:[#allocation16_spill]] }
  0x20   :  { %v123_v4 = vmul.f32 128.0, %v5669_v3  ;;  %vm127_vm0 = vweird.f32 %v5669_v3  ;;  %250 = vmatpush.bf16.msra.mxu0 %v5263_v17  ;;  %v5260_v20 = vld [vmem:[%s6384_s8 + $0x20] sm:$0xff]  ;;  %v5259_v21 = vld [vmem:[%s6384_s8 + $0x18] sm:$0xff]  ;;  %v5258_v22 = vld [vmem:[%s6384_s8 + $0x10] sm:$0xff] }
  0x21   :  { %v5257_v23 = vld [vmem:[%s6384_s8 + $0x8] sm:$0xff]  ;;  %v5256_v26 = vld [vmem:[%s6384_s8] sm:$0xff]  ;;  %v5271_v30 = vld [vmem:[%s6385_s4 + $0x38] sm:$0xff]  ;;  %s6393_s8 = sld [smem:[#allocation20_spill]] }
  0x22   :  { %v124_v5 = vsub.f32 1.0, %v123_v4  ;;  %v5279_v31 = vld [vmem:[%s6386_s9 + $0x38] sm:$0xff]  ;;  %365 = vmatpush.bf16.msra.mxu1 %v5271_v30  ;;  %v5270_v34 = vld [vmem:[%s6385_s4 + $0x30] sm:$0xff]  ;;  %v5269_v38 = vld [vmem:[%s6385_s4 + $0x28] sm:$0xff] }
  0x23   :  { %452 = vmatpush.bf16.msra.mxu2 %v5279_v31  ;;  %v5278_v35 = vld [vmem:[%s6386_s9 + $0x30] sm:$0xff]  ;;  %v5277_v39 = vld [vmem:[%s6386_s9 + $0x28] sm:$0xff]  ;;  %v5268_v43 = vld [vmem:[%s6385_s4 + $0x20] sm:$0xff] }
  0x24   :  { %v125_v6 = vmul.f32 %v5669_v3, %v124_v5  ;;  %251 = vmatpush.bf16.msra.mxu0 %v5262_v18  ;;  %v5276_v44 = vld [vmem:[%s6386_s9 + $0x20] sm:$0xff]  ;;  %v178_v61 = vld [vmem:[%s6389_s6 + $0x8] sm:$0xff]  ;;  %v5267_v2 = vld [vmem:[%s6385_s4 + $0x18] sm:$0xff] }
  0x25   :  { %v5657_v51 = vld [vmem:[%s6387_s0] ss:$0 sm:$0xff]  ;;  %v5266_v4 = vld [vmem:[%s6385_s4 + $0x10] sm:$0xff]  ;;  %s6391_s0 = sld [smem:[#allocation21_spill]] }
  0x26   :  { %v126_v7 = vadd.f32 %v5669_v3, %v125_v6  ;;  %366 = vmatpush.bf16.msra.mxu1 %v5270_v34  ;;  %v5658_v55 = vld [vmem:[%s6388_s2] ss:$0 sm:$0xff]  ;;  %v5274_v5 = vld [vmem:[%s6386_s9 + $0x10] sm:$0xff]  ;;  %v5265_v6 = vld [vmem:[%s6385_s4 + $0x8] sm:$0xff] }
  0x27   :  { %120 = vadd.xlane.f32.xlu0 %v117_v1  ;;  %453 = vmatpush.bf16.msra.mxu2 %v5278_v35  ;;  %v177_v60 = vld [vmem:[%s6389_s6] sm:$0xff] }
  0x28   :  { %v5923_v8 = vsel %vm127_vm0, %v5669_v3, %v126_v7  ;;  %252 = vmatpush.bf16.msra.mxu0 %v5261_v19  ;;  %v5275_v3 = vld [vmem:[%s6386_s9 + $0x18] sm:$0xff]  ;;  %v5273_v7 = vld [vmem:[%s6386_s9 + $0x8] sm:$0xff] }
  0x2a   :  { %367 = vmatpush.bf16.msra.mxu1 %v5269_v38 }
  0x2b   :  { %454 = vmatpush.bf16.msra.mxu2 %v5277_v39  ;;  %v5286_v18 = vld [vmem:[%s6391_s0 + $0x30] sm:$0xff] }
  0x2c   :  { %253 = vmatpush.bf16.msra.mxu0 %v5260_v20 }
  0x2e   :  { %368 = vmatpush.bf16.msra.mxu1 %v5268_v43 }
  0x2f   :  { %455 = vmatpush.bf16.msra.mxu2 %v5276_v44 }
  0x30   :  { %254 = vmatpush.bf16.msra.mxu0 %v5259_v21 }
  0x32   :  { %369 = vmatpush.bf16.msra.mxu1 %v5267_v2 }
  0x33   :  { %456 = vmatpush.bf16.msra.mxu2 %v5275_v3 }
  0x34   :  { %255 = vmatpush.bf16.msra.mxu0 %v5258_v22 }
  0x36   :  { %370 = vmatpush.bf16.msra.mxu1 %v5266_v4 }
  0x37   :  { %457 = vmatpush.bf16.msra.mxu2 %v5274_v5 }
  0x38   :  { %256 = vmatpush.bf16.msra.mxu0 %v5257_v23 }
  0x3a   :  { %371 = vmatpush.bf16.msra.mxu1 %v5265_v6 }
  0x3b   :  { %458 = vmatpush.bf16.msra.mxu2 %v5273_v7 }
  0x3c   :  { %257 = vmatpush.bf16.msra.mxu0 %v5256_v26 }
  0x92   :  { %v119_v9 = vpop.xlane.xlu0 %118 }
  0x93   :  { %v129_v10 = vmul.f32 %v5923_v8, %v119_v9  ;;  %v5264_v9 = vld [vmem:[%s6385_s4] sm:$0xff]  ;;  %s6392_s4 = sld [smem:[#allocation18_spill]] }
  0x94   :  { %372 = vmatpush.bf16.msra.mxu1 %v5264_v9 }
  0x95   :  { %v131_v11 = vsub.f32 %v116_v0, %v129_v10  ;;  %v5272_v10 = vld [vmem:[%s6386_s9] sm:$0xff] }
  0x96   :  { %459 = vmatpush.bf16.msra.mxu2 %v5272_v10 }
  0x97   :  { %v133_v12 = vmul.f32 %v131_v11, %v131_v11 }
  0x99   :  { %135 = vadd.xlane.f32.xlu1 %v133_v12 }
  0x9a   :  { %v121_v13 = vpop.xlane.xlu0 %120 }
  0x9b   :  { %v130_v14 = vmul.f32 %v5923_v8, %v121_v13  ;;  %v5659_v13 = vld [vmem:[%s6390_s7] ss:$0 sm:$0xff] }
  0x9d   :  { %v5927_v15 = vsub.f32 %v117_v1, %v130_v14 }
  0x9f   :  { %v134_v16 = vmul.f32 %v5927_v15, %v5927_v15 }
  0xa1   :  { %137 = vadd.xlane.f32.xlu1 %v134_v16  ;;  %v5287_v16 = vld [vmem:[%s6391_s0 + $0x38] sm:$0xff] }
  0xa2   :  { %539 = vmatpush.bf16.msra.mxu3 %v5287_v16 }
  0xa6   :  { %540 = vmatpush.bf16.msra.mxu3 %v5286_v18 }
 0x10c   :  { %v136_v24 = vpop.xlane.xlu1 %135 }
 0x10d   :  { %v139_v25 = vmul.f32 %v136_v24, %v5923_v8  ;;  %v5285_v24 = vld [vmem:[%s6391_s0 + $0x28] sm:$0xff] }
 0x10e   :  { %541 = vmatpush.bf16.msra.mxu3 %v5285_v24 }
 0x10f   :  { %v141_v27 = vadd.f32 1e-05, %v139_v25 }
 0x111   :  { %5670 = vrsqrt.f32 %v141_v27  ;;  %vm149_vm2 = vweird.f32 %v141_v27 }
 0x114   :  { %v138_v28 = vpop.xlane.xlu1 %137 }
 0x115   :  { %v140_v29 = vmul.f32 %v138_v28, %v5923_v8 }
 0x117   :  { %v5671_v32 = vpop.eup %5670  ;;  %v142_v33 = vadd.f32 1e-05, %v140_v29 }
 0x118   :  { %v144_v36 = vmul.f32 %v5671_v32, %v141_v27  ;;  %vm150_vm1 = vweird.f32 %v5671_v32 }
 0x119   :  { %5672 = vrsqrt.f32 %v142_v33  ;;  %vm151_vm3 = vmor %vm149_vm2, %vm150_vm1  ;;  %vm159_vm5 = vweird.f32 %v142_v33 }
 0x11a   :  { %v145_v37 = vmul.f32 %v5671_v32, %v144_v36 }
 0x11c   :  { %v146_v40 = vmul.f32 0.5, %v145_v37 }
 0x11e   :  { %v147_v41 = vsub.f32 1.5, %v146_v40 }
 0x11f   :  { %v5673_v42 = vpop.eup %5672 }
 0x120   :  { %v148_v45 = vmul.f32 %v5671_v32, %v147_v41  ;;  %v154_v46 = vmul.f32 %v5673_v42, %v142_v33  ;;  %vm160_vm4 = vweird.f32 %v5673_v42 }
 0x121   :  { %vm161_vm6 = vmor %vm159_vm5, %vm160_vm4 }
 0x122   :  { %v152_v47 = vsel %vm151_vm3, %v5671_v32, %v148_v45  ;;  %v155_v48 = vmul.f32 %v5673_v42, %v154_v46  ;;  %vm726_vm3 = vcmask 1047556  }
 0x123   :  { %v163_v50 = vmul.f32 %v152_v47, %v131_v11  ;;  %v5772_v11 = vmov 8.0   ;;  %vm6071_vm4 = vmneg %vm726_vm3 }
 0x124   :  { %v156_v49 = vmul.f32 0.5, %v155_v48  ;;  %5674 = vrcp.f32 %v5772_v11  ;;  %vm6087_vm5 = vmpackc.low %vm6071_vm4, %vm6071_vm4 }
 0x125   :  { %v169_v54 = vmul.f32 %v5657_v51, %v163_v50 }
 0x126   :  { %v157_v52 = vsub.f32 1.5, %v156_v49 }
 0x127   :  { %v175_v59 = vadd.f32 %v5658_v55, %v169_v54  ;;  %v5283_v54 = vld [vmem:[%s6391_s0 + $0x18] sm:$0xff] }
 0x128   :  { %v158_v53 = vmul.f32 %v5673_v42, %v157_v52 }
 0x129   :  { %v179_v63 = vadd.f32 %v177_v60, %v175_v59  ;;  %v5661_v59 = vld [vmem:[%s6392_s4] ss:$0 sm:$0xff]  ;;  %s3629_s4 = sshll.u32 %s6364_s25, 4  ;;  %s3630_s4 = int_to_ptr.hbm [resolvable:$true] %s3629_s4 }
 0x12a   :  { %v162_v56 = vsel %vm161_vm6, %v5673_v42, %v158_v53  ;;  %v5675_v12 = vpop.eup %5674  ;;  %v5284_v53 = vld [vmem:[%s6391_s0 + $0x20] sm:$0xff]  ;;  %vm3412_vm6 = vcmask 1041408  }
 0x12b   :  { %v164_v57 = vmul.f32 %v162_v56, %v5927_v15  ;;  %v279_v15 = vmul.f32 8.0, %v5675_v12  ;;  %vm283_vm8 = vweird.f32 %v5675_v12  ;;  %542 = vmatpush.bf16.msra.mxu3 %v5284_v53  ;;  %v5281_v56 = vld [vmem:[%s6391_s0 + $0x8] sm:$0xff] }
 0x12d   :  { %v170_v58 = vmul.f32 %v5657_v51, %v164_v57  ;;  %v280_v21 = vsub.f32 1.0, %v279_v15  ;;  %v5280_v57 = vld [vmem:[%s6391_s0] sm:$0xff] }
 0x12f   :  { %v176_v62 = vadd.f32 %v5658_v55, %v170_v58  ;;  %v281_v27 = vmul.f32 %v5675_v12, %v280_v21  ;;  %543 = vmatpush.bf16.msra.mxu3 %v5283_v54  ;;  %v5282_v55 = vld [vmem:[%s6391_s0 + $0x10] sm:$0xff] }
 0x131   :  { %v180_v0 = vadd.f32 %v178_v61, %v176_v62  ;;  %v282_v33 = vadd.f32 %v5675_v12, %v281_v27  ;;  %v5660_v61 = vld [vmem:[%s6393_s8] ss:$0 sm:$0xff] }
 0x133   :  { %v181_v1 = vpack.c.bf16 %v180_v0, %v179_v63  ;;  %v284_v41 = vsel %vm283_vm8, %v5675_v12, %v282_v33  ;;  %544 = vmatpush.bf16.msra.mxu3 %v5282_v55 }
 0x135   :  { %258 = vmatmul.bf16.vlgmr.msra.gmra.mxu0 %v181_v1 }
 0x137   :  { %545 = vmatpush.bf16.msra.mxu3 %v5281_v56 }
 0x13b   :  { %546 = vmatpush.bf16.msra.mxu3 %v5280_v57 }
 0x1b2   :  { %v259_v14 = vpop.f32.mrf.mxu0 }
 0x1b3   :  { %v260_v17 = vadd.f32 %v5659_v13, %v259_v14 }
 0x1b5   :  { %v266_v19 = vrot.slane %v260_v17, 4  ;;  %v264_v20 = vpack.c.bf16 %v260_v17, %v260_v17 }
 0x1b7   :  { %v267_v22 = vadd.f32 %v266_v19, %v260_v17  ;;  %v691_v23 = vsel %vm689_vm7, %v264_v20, 0  ;;  %v400_v36 = vunpack.c.l.b16 %v264_v20 }
 0x1b8   :  { %700 = vmatpush.bf16.msrb.mxu0 %v691_v23 }
 0x1b9   :  { %v268_v25 = vrot.slane %v267_v22, 2 }
 0x1ba   :  { %v261_v26 = vpop.f32.mrf.mxu0 }
 0x1bb   :  { %v269_v28 = vadd.f32 %v268_v25, %v267_v22  ;;  %v262_v29 = vadd.f32 %v5659_v13, %v261_v26 }
 0x1bd   :  { %v270_v30 = vrot.slane %v269_v28, 1  ;;  %v272_v31 = vrot.slane %v262_v29, 4  ;;  %v265_v32 = vpack.c.bf16 %v262_v29, %v262_v29 }
 0x1bf   :  { %v273_v34 = vadd.f32 %v272_v31, %v262_v29  ;;  %v710_v35 = vsel %vm689_vm7, %v265_v32, 0  ;;  %v401_v37 = vunpack.c.l.b16 %v265_v32  ;;  %v271_v38 = vadd.f32 %v270_v30, %v269_v28 }
 0x1c0   :  { %719 = vmatpush.bf16.msrb.mxu1 %v710_v35 }
 0x1c1   :  { %v274_v39 = vrot.slane %v273_v34, 2  ;;  %v402_v40 = vpack.c.b16 %v401_v37, %v400_v36  ;;  %v285_v44 = vmul.f32 %v284_v41, %v271_v38 }
 0x1c3   :  { %v275_v42 = vadd.f32 %v274_v39, %v273_v34  ;;  %460 = vmatmul.bf16.vlgmr.msra.gmra.mxu2 %v402_v40  ;;  %v287_v47 = vpack.c.bf16 %v285_v44, %v285_v44 }
 0x1c5   :  { %v276_v43 = vrot.slane %v275_v42, 1  ;;  %v311_v49 = vunpack.c.l.b16 %v287_v47 }
 0x1c7   :  { %v277_v45 = vadd.f32 %v276_v43, %v275_v42 }
 0x1c9   :  { %v286_v46 = vmul.f32 %v284_v41, %v277_v45 }
 0x1cb   :  { %v288_v48 = vpack.c.bf16 %v286_v46, %v286_v46 }
 0x1cd   :  { %v312_v50 = vunpack.c.l.b16 %v288_v48 }
 0x1cf   :  { %v314_v51 = vsel %vm313_vm9, %v312_v50, %v311_v49 }
 0x1d0   :  { %v315_v52 = vpack.c.b16 %v314_v51, %v314_v51 }
 0x1d2   :  { %373 = vmatmul.bf16.vlgmr.msra.gmra.mxu1 %v315_v52 }
 0x246   :  { %v461_v58 = vpop.f32.mrf.mxu2 }
 0x247   :  { %v462_v2 = vadd.f32 %v5660_v61, %v461_v58 }
 0x24e   :  { %v463_v63 = vpop.f32.mrf.mxu2 }
 0x24f   :  { %v374_v60 = vpop.f32.mrf.mxu1  ;;  %v464_v3 = vadd.f32 %v5660_v61, %v463_v63 }
 0x250   :  { %v375_v62 = vadd.f32 %v5661_v59, %v374_v60 }
 0x252   :  { %v467_v0 = vrot.slane %v375_v62, 1  ;;  %v468_v1 = vperm.slane %v375_v62, 0 }
 0x254   :  { %v469_v4 = vperm.slane %v467_v0, 0  ;;  %v472_v5 = vmul.f32 %v468_v1, %v462_v2 }
 0x256   :  { %v473_v6 = vmul.f32 %v469_v4, %v464_v3 }
 0x257   :  { %v376_v7 = vpop.f32.mrf.mxu1 }
 0x258   :  { %v474_v9 = vpack.c.bf16 %v473_v6, %v472_v5  ;;  %v3888_v5 = vld [vmem:[#allocation2 + $0xe0] sm:$0xf]  ;;  %v5318_v6 = vld [vmem:[#allocation2 + $0xec] sm:$0xf0] }
 0x259   :  { %v4144_v7 = vld [vmem:[#allocation2 + $0x2e0] sm:$0xf] }
 0x25a   :  { %547 = vmatmul.bf16.vlgmr.msra.gmra.mxu3 %v474_v9  ;;  %v3889_v9 = vor.u32 %v5318_v6, %v3888_v5  ;;  %v5362_v5 = vld [vmem:[#allocation2 + $0x24c] sm:$0xf0]  ;;  %v3936_v6 = vld [vmem:[#allocation2 + $0x140] sm:$0xf] }
 0x25c   :  { %2332 = vmatpush.bf16.msrb.mxu2 %v3889_v9  ;;  %v4192_v9 = vld [vmem:[#allocation2 + $0x340] sm:$0xf] }
 0x2dd   :  { %v548_v10 = vpop.f32.mrf.mxu3 }
 0x2de   :  { %v554_v11 = vsel %vm553_vm10, %v548_v10, -inf }
 0x2df   :  { %v555_v12 = vrot.slane %v554_v11, 4 }
 0x2e1   :  { %v556_v13 = vmax.f32 %v554_v11, %v555_v12  ;;  %v4016_v11 = vld [vmem:[#allocation2 + $0x1e0] sm:$0xf]  ;;  %v5350_v12 = vld [vmem:[#allocation2 + $0x1ec] sm:$0xf0] }
 0x2e3   :  { %v557_v14 = vrot.slane %v556_v13, 2 }
 0x2e5   :  { %v558_v15 = vmax.f32 %v556_v13, %v557_v14  ;;  %v550_v16 = vpop.f32.mrf.mxu3  ;;  %v4017_v14 = vor.u32 %v5350_v12, %v4016_v11 }
 0x2e6   :  { %v561_v17 = vsel %vm553_vm10, %v550_v16, -inf }
 0x2e7   :  { %v559_v18 = vrot.slane %v558_v15, 1  ;;  %v562_v19 = vrot.slane %v561_v17, 4  ;;  %2345 = vmatpush.bf16.msrb.mxu3 %v4017_v14  ;;  %v3792_v14 = vld [vmem:[#allocation2 + $0x20] sm:$0xf] }
 0x2e9   :  { %v560_v20 = vmax.f32 %v558_v15, %v559_v18  ;;  %v563_v21 = vmax.f32 %v561_v17, %v562_v19  ;;  %v4272_v15 = vld [vmem:[#allocation2 + $0x3e0] sm:$0xf]  ;;  %v5314_v19 = vld [vmem:[#allocation2 + $0xcc] sm:$0xf0] }
 0x2ea   :  { %v3872_v17 = vld [vmem:[#allocation2 + $0xc0] sm:$0xf] }
 0x2eb   :  { %v568_v22 = vsub.f32 %v548_v10, %v560_v20  ;;  %v564_v23 = vrot.slane %v563_v21, 2  ;;  %v5382_v10 = vld [vmem:[#allocation2 + $0x2ec] sm:$0xf0]  ;;  %v4128_v20 = vld [vmem:[#allocation2 + $0x2c0] sm:$0xf] }
 0x2ec   :  { %v4145_v13 = vor.u32 %v5382_v10, %v4144_v7  ;;  %v5330_v7 = vld [vmem:[#allocation2 + $0x14c] sm:$0xf0] }
 0x2ed   :  { %v570_v24 = vmul.f32 1.442695, %v568_v22  ;;  %v565_v25 = vmax.f32 %v563_v21, %v564_v23  ;;  %v5378_v21 = vld [vmem:[#allocation2 + $0x2cc] sm:$0xf0]  ;;  %v3873_v22 = vor.u32 %v5314_v19, %v3872_v17  ;;  %v3920_v19 = vld [vmem:[#allocation2 + $0x120] sm:$0xf] }
 0x2ee   :  { %2358 = vmatpush.bf16.msra.mxu0 %v4145_v13  ;;  %v4129_v23 = vor.u32 %v5378_v21, %v4128_v20  ;;  %v5394_v10 = vld [vmem:[#allocation2 + $0x34c] sm:$0xf0]  ;;  %v3937_v13 = vor.u32 %v5330_v7, %v3936_v6  ;;  %v4176_v21 = vld [vmem:[#allocation2 + $0x320] sm:$0xf] }
 0x2ef   :  { %5676 = vpow2.f32 %v570_v24  ;;  %v566_v26 = vrot.slane %v565_v25, 1  ;;  %v4000_v24 = vld [vmem:[#allocation2 + $0x1c0] sm:$0xf]  ;;  %2333 = vmatpush.bf16.msrb.mxu2 %v3873_v22  ;;  %v4193_v17 = vor.u32 %v5394_v10, %v4192_v9  ;;  %v5326_v20 = vld [vmem:[#allocation2 + $0x12c] sm:$0xf0] }
 0x2f0   :  { %v5390_v22 = vld [vmem:[#allocation2 + $0x32c] sm:$0xf0]  ;;  %v4496_v9 = vld [vmem:[#allocation2 + $0x5a0] sm:$0xf] }
 0x2f1   :  { %v567_v27 = vmax.f32 %v565_v25, %v566_v26  ;;  %v5346_v25 = vld [vmem:[#allocation2 + $0x1cc] sm:$0xf0]  ;;  %v4256_v26 = vld [vmem:[#allocation2 + $0x3c0] sm:$0xf] }
 0x2f2   :  { %2359 = vmatpush.bf16.msra.mxu0 %v4129_v23  ;;  %v5502_v6 = vld [vmem:[#allocation2 + $0x6ac] sm:$0xf0] }
 0x2f3   :  { %v569_v28 = vsub.f32 %v550_v16, %v567_v27  ;;  %v5414_v16 = vld [vmem:[#allocation2 + $0x3ec] sm:$0xf0]  ;;  %v4001_v27 = vor.u32 %v5346_v25, %v4000_v24  ;;  %v3921_v25 = vor.u32 %v5326_v20, %v3920_v19 }
 0x2f4   :  { %v4273_v18 = vor.u32 %v5414_v16, %v4272_v15  ;;  %v5294_v15 = vld [vmem:[#allocation2 + $0x2c] sm:$0xf0]  ;;  %v4048_v16 = vld [vmem:[#allocation2 + $0x220] sm:$0xf] }
 0x2f5   :  { %v5677_v29 = vpop.eup %5676  ;;  %v572_v30 = vmul.f32 1.442695, %v569_v28  ;;  %v5410_v28 = vld [vmem:[#allocation2 + $0x3cc] sm:$0xf0]  ;;  %2346 = vmatpush.bf16.msrb.mxu3 %v4001_v27  ;;  %v3793_v23 = vor.u32 %v5294_v15, %v3792_v14  ;;  %v4352_v15 = vld [vmem:[#allocation2 + $0x480] sm:$0xf] }
 0x2f6   :  { %v574_v31 = vsel %vm553_vm10, %v5677_v29, 0.0  ;;  %2371 = vmatpush.bf16.msra.mxu1 %v4273_v18  ;;  %v5358_v18 = vld [vmem:[#allocation2 + $0x22c] sm:$0xf0] }
 0x2f7   :  { %v575_v32 = vrot.slane %v574_v31, 4  ;;  %5678 = vpow2.f32 %v572_v30  ;;  %v5310_v30 = vld [vmem:[#allocation2 + $0xac] sm:$0xf0]  ;;  %v4049_v24 = vor.u32 %v5358_v18, %v4048_v16  ;;  %v4608_v18 = vld [vmem:[#allocation2 + $0x680] sm:$0xf] }
 0x2f8   :  { %v5290_v27 = vld [vmem:[#allocation2 + $0xc] sm:$0xf0] }
 0x2f9   :  { %v576_v33 = vadd.f32 %v575_v32, %v574_v31  ;;  %v4257_v31 = vor.u32 %v5410_v28, %v4256_v26  ;;  %v4112_v32 = vld [vmem:[#allocation2 + $0x2a0] sm:$0xf]  ;;  %v4177_v28 = vor.u32 %v5390_v22, %v4176_v21  ;;  %v5470_v10 = vld [vmem:[#allocation2 + $0x5ac] sm:$0xf0] }
 0x2fa   :  { %v3776_v26 = vld [vmem:[#allocation2] sm:$0xf]  ;;  %v5434_v16 = vld [vmem:[#allocation2 + $0x48c] sm:$0xf0] }
 0x2fb   :  { %v577_v34 = vrot.slane %v576_v33, 2  ;;  %2372 = vmatpush.bf16.msra.mxu1 %v4257_v31  ;;  %v4400_v31 = vld [vmem:[#allocation2 + $0x4e0] sm:$0xf]  ;;  %v5498_v19 = vld [vmem:[#allocation2 + $0x68c] sm:$0xf0] }
 0x2fc   :  { %v4480_v21 = vld [vmem:[#allocation2 + $0x580] sm:$0xf]  ;;  %v5466_v22 = vld [vmem:[#allocation2 + $0x58c] sm:$0xf0] }
 0x2fd   :  { %v5679_v35 = vpop.eup %5678  ;;  %v578_v36 = vadd.f32 %v577_v34, %v576_v33  ;;  %v5374_v33 = vld [vmem:[#allocation2 + $0x2ac] sm:$0xf0]  ;;  %v3984_v34 = vld [vmem:[#allocation2 + $0x1a0] sm:$0xf] }
 0x2fe   :  { %v581_v37 = vsel %vm553_vm10, %v5679_v35, 0.0 }
 0x2ff   :  { %v579_v38 = vrot.slane %v578_v36, 1  ;;  %v582_v39 = vrot.slane %v581_v37, 4 }
 0x301   :  { %v580_v40 = vadd.f32 %v579_v38, %v578_v36  ;;  %v583_v41 = vadd.f32 %v582_v39, %v581_v37  ;;  %v5342_v36 = vld [vmem:[#allocation2 + $0x1ac] sm:$0xf0]  ;;  %v4240_v37 = vld [vmem:[#allocation2 + $0x3a0] sm:$0xf]  ;;  %v4113_v39 = vor.u32 %v5374_v33, %v4112_v32 }
 0x302   :  { %v5406_v38 = vld [vmem:[#allocation2 + $0x3ac] sm:$0xf0]  ;;  %v4656_v33 = vld [vmem:[#allocation2 + $0x6e0] sm:$0xf] }
 0x303   :  { %5680 = vrcp.f32 %v580_v40  ;;  %v584_v42 = vrot.slane %v583_v41, 2  ;;  %v599_v49 = vand.u32 2147483648, %v580_v40  ;;  %v597_v51 = vand.u32 2147483647, %v580_v40  ;;  %2360 = vmatpush.bf16.msra.mxu0 %v4113_v39  ;;  %v5446_v32 = vld [vmem:[#allocation2 + $0x4ec] sm:$0xf0] }
 0x304   :  { %vm593_vm12 = vweird.f32 %v580_v40  ;;  %v4160_v39 = vld [vmem:[#allocation2 + $0x300] sm:$0xf] }
 0x305   :  { %v585_v43 = vadd.f32 %v584_v42, %v583_v41  ;;  %v600_v54 = vor.u32 1.1754944e-38, %v599_v49  ;;  %vm598_vm14 = vcmp.eq.f32.partialorder %v597_v51, 8.507059e+37  ;;  %v3840_v41 = vld [vmem:[#allocation2 + $0x80] sm:$0xf]  ;;  %v5306_v42 = vld [vmem:[#allocation2 + $0x8c] sm:$0xf0] }
 0x306   :  { %v5402_v49 = vld [vmem:[#allocation2 + $0x38c] sm:$0xf0] }
 0x307   :  { %v586_v44 = vrot.slane %v585_v43, 1 }
 0x309   :  { %v5681_v45 = vpop.eup %5680  ;;  %v587_v46 = vadd.f32 %v586_v44, %v585_v43  ;;  %v4096_v43 = vld [vmem:[#allocation2 + $0x280] sm:$0xf]  ;;  %v4241_v44 = vor.u32 %v5406_v38, %v4240_v37  ;;  %v5322_v38 = vld [vmem:[#allocation2 + $0x10c] sm:$0xf0] }
 0x30a   :  { %v589_v47 = vmul.f32 %v5681_v45, %v580_v40  ;;  %vm594_vm11 = vweird.f32 %v5681_v45  ;;  %v3985_v40 = vor.u32 %v5342_v36, %v3984_v34  ;;  %v5510_v34 = vld [vmem:[#allocation2 + $0x6ec] sm:$0xf0]  ;;  %v3777_v36 = vor.u32 %v5290_v27, %v3776_v26  ;;  %v3904_v37 = vld [vmem:[#allocation2 + $0x100] sm:$0xf] }
 0x30b   :  { %5682 = vrcp.f32 %v587_v46  ;;  %vm595_vm13 = vmor %vm593_vm12, %vm594_vm11  ;;  %v614_v60 = vand.u32 2147483648, %v587_v46  ;;  %v612_v62 = vand.u32 2147483647, %v587_v46  ;;  %vm608_vm0 = vweird.f32 %v587_v46  ;;  %2373 = vmatpush.bf16.msra.mxu1 %v4241_v44  ;;  %v5478_v44 = vld [vmem:[#allocation2 + $0x5ec] sm:$0xf0] }
 0x30c   :  { %v590_v48 = vsub.f32 1.0, %v589_v47  ;;  %v5338_v47 = vld [vmem:[#allocation2 + $0x18c] sm:$0xf0]  ;;  %2347 = vmatpush.bf16.msrb.mxu3 %v3985_v40  ;;  %v4609_v26 = vor.u32 %v5498_v19, %v4608_v18  ;;  %v4336_v27 = vld [vmem:[#allocation2 + $0x460] sm:$0xf]  ;;  %vm3604_vm11 = vcmask 261120  }
 0x30d   :  { %v615_v0 = vor.u32 1.1754944e-38, %v614_v60  ;;  %vm613_vm2 = vcmp.eq.f32.partialorder %v612_v62, 8.507059e+37  ;;  %v4208_v60 = vld [vmem:[#allocation2 + $0x360] sm:$0xf] }
 0x30e   :  { %v591_v50 = vmul.f32 %v5681_v45, %v590_v48  ;;  %v4224_v48 = vld [vmem:[#allocation2 + $0x380] sm:$0xf] }
 0x310   :  { %v592_v52 = vadd.f32 %v5681_v45, %v591_v50  ;;  %v3841_v50 = vor.u32 %v5306_v42, %v3840_v41  ;;  %v5386_v42 = vld [vmem:[#allocation2 + $0x30c] sm:$0xf0] }
 0x311   :  { %v5683_v53 = vpop.eup %5682 }
 0x312   :  { %v596_v55 = vsel %vm595_vm13, %v5681_v45, %v592_v52  ;;  %v604_v56 = vmul.f32 %v5683_v53, %v587_v46  ;;  %vm609_vm15 = vweird.f32 %v5683_v53  ;;  %v5370_v45 = vld [vmem:[#allocation2 + $0x28c] sm:$0xf0]  ;;  %v3968_v46 = vld [vmem:[#allocation2 + $0x180] sm:$0xf] }
 0x313   :  { %v601_v57 = vsel %vm598_vm14, %v600_v54, %v596_v55  ;;  %vm610_vm1 = vmor %vm608_vm0, %vm609_vm15  ;;  %v4097_v51 = vor.u32 %v5370_v45, %v4096_v43  ;;  %v3969_v52 = vor.u32 %v5338_v47, %v3968_v46  ;;  %v5302_v54 = vld [vmem:[#allocation2 + $0x6c] sm:$0xf0]  ;;  %v4080_v55 = vld [vmem:[#allocation2 + $0x260] sm:$0xf]  ;;  %v4401_v46 = vor.u32 %v5446_v32, %v4400_v31 }
 0x314   :  { %v602_v58 = vmul.f32 %v5677_v29, %v601_v57  ;;  %v605_v59 = vsub.f32 1.0, %v604_v56  ;;  %v3856_v29 = vld [vmem:[#allocation2 + $0xa0] sm:$0xf]  ;;  %v4225_v56 = vor.u32 %v5402_v49, %v4224_v48  ;;  %v5366_v57 = vld [vmem:[#allocation2 + $0x26c] sm:$0xf0] }
 0x315   :  { %2361 = vmatpush.bf16.msra.mxu0 %v4097_v51  ;;  %2348 = vmatpush.bf16.msrb.mxu3 %v3969_v52  ;;  %v4528_v43 = vld [vmem:[#allocation2 + $0x5e0] sm:$0xf]  ;;  %v5542_v48 = vld [vmem:[#allocation2 + $0x7ec] sm:$0xf0]  ;;  %v4657_v51 = vor.u32 %v5510_v34, %v4656_v33  ;;  %v3905_v52 = vor.u32 %v5322_v38, %v3904_v37 }
 0x316   :  { %v606_v61 = vmul.f32 %v5683_v53, %v605_v59  ;;  %618 = vst.msk [vmem:[%s6365_s26] sm:$0xff] %vm553_vm10, %v602_v58  ;;  %v5334_v59 = vld [vmem:[#allocation2 + $0x16c] sm:$0xf0]  ;;  %2374 = vmatpush.bf16.msra.mxu1 %v4225_v56  ;;  %v4784_v47 = vld [vmem:[#allocation2 + $0x7e0] sm:$0xf]  ;;  %v4529_v56 = vor.u32 %v5478_v44, %v4528_v43 }
 0x317   :  { %v5494_v31 = vld [vmem:[#allocation2 + $0x66c] sm:$0xf0]  ;;  %v4464_v33 = vld [vmem:[#allocation2 + $0x560] sm:$0xf] }
 0x318   :  { %v607_v63 = vadd.f32 %v5683_v53, %v606_v61  ;;  %v5398_v61 = vld [vmem:[#allocation2 + $0x36c] sm:$0xf0]  ;;  %v4576_v43 = vld [vmem:[#allocation2 + $0x640] sm:$0xf] }
 0x319   :  { %v5462_v34 = vld [vmem:[#allocation2 + $0x56c] sm:$0xf0] }
 0x31a   :  { %v611_v1 = vsel %vm610_vm1, %v5683_v53, %v607_v63  ;;  %v3824_v53 = vld [vmem:[#allocation2 + $0x60] sm:$0xf]  ;;  %v4081_v63 = vor.u32 %v5366_v57, %v4080_v55  ;;  %v4161_v55 = vor.u32 %v5386_v42, %v4160_v39  ;;  %v5526_v37 = vld [vmem:[#allocation2 + $0x76c] sm:$0xf0]  ;;  %v4465_v39 = vor.u32 %v5462_v34, %v4464_v33  ;;  %v5336_v33 = vld [vmem:[#allocation2 + $0x184] sm:$0xf] }
 0x31b   :  { %v616_v2 = vsel %vm613_vm2, %v615_v0, %v611_v1  ;;  %v3825_v62 = vor.u32 %v5302_v54, %v3824_v53  ;;  %v3808_v1 = vld [vmem:[#allocation2 + $0x40] sm:$0xf]  ;;  %v5442_v54 = vld [vmem:[#allocation2 + $0x4cc] sm:$0xf0] }
 0x31c   :  { %v617_v3 = vmul.f32 %v5679_v35, %v616_v2  ;;  %v3857_v35 = vor.u32 %v5310_v30, %v3856_v29  ;;  %v5298_v2 = vld [vmem:[#allocation2 + $0x4c] sm:$0xf0]  ;;  %2362 = vmatpush.bf16.msra.mxu0 %v4081_v63  ;;  %v4032_v29 = vld [vmem:[#allocation2 + $0x200] sm:$0xf] }
 0x31d   :  { %v3809_v11 = vor.u32 %v5298_v2, %v3808_v1  ;;  %v5354_v30 = vld [vmem:[#allocation2 + $0x20c] sm:$0xf0]  ;;  %v4384_v53 = vld [vmem:[#allocation2 + $0x4c0] sm:$0xf] }
 0x31e   :  { %v5650_v4 = vpack.i.bf16 %v602_v58, %v617_v3  ;;  %619 = vst.msk [vmem:[%s6365_s26 + $0x8] sm:$0xff] %vm553_vm10, %v617_v3  ;;  %2334 = vmatpush.bf16.msrb.mxu2 %v3857_v35  ;;  %v3952_v58 = vld [vmem:[#allocation2 + $0x160] sm:$0xf]  ;;  %v4033_v45 = vor.u32 %v5354_v30, %v4032_v29  ;;  %v4481_v29 = vor.u32 %v5466_v22, %v4480_v21  ;;  %v5426_v42 = vld [vmem:[#allocation2 + $0x44c] sm:$0xf0] }
 0x31f   :  { %v3953_v0 = vor.u32 %v5334_v59, %v3952_v58  ;;  %v4064_v3 = vld [vmem:[#allocation2 + $0x240] sm:$0xf]  ;;  %v5506_v58 = vld [vmem:[#allocation2 + $0x6cc] sm:$0xf0]  ;;  %v4785_v59 = vor.u32 %v5542_v48, %v4784_v47 }
 0x320   :  { %5651 = vxpose.xlu2.b32.start.end [1/1] (short) (narrow) %v5650_v4, 8  ;;  %v4209_v4 = vor.u32 %v5398_v61, %v4208_v60  ;;  %v4065_v12 = vor.u32 %v5362_v5, %v4064_v3  ;;  %v4640_v57 = vld [vmem:[#allocation2 + $0x6c0] sm:$0xf]  ;;  %v5474_v61 = vld [vmem:[#allocation2 + $0x5cc] sm:$0xf0] }
 0x321   :  { %2349 = vmatpush.bf16.msrb.mxu3 %v3953_v0  ;;  %v4512_v60 = vld [vmem:[#allocation2 + $0x5c0] sm:$0xf]  ;;  %v5538_v0 = vld [vmem:[#allocation2 + $0x7cc] sm:$0xf0]  ;;  %v4641_v1 = vor.u32 %v5506_v58, %v4640_v57 }
 0x322   :  { %2335 = vmatpush.bf16.msrb.mxu2 %v3841_v50  ;;  %2375 = vmatpush.bf16.msra.mxu1 %v4209_v4  ;;  %v4768_v63 = vld [vmem:[#allocation2 + $0x7c0] sm:$0xf]  ;;  %v5438_v3 = vld [vmem:[#allocation2 + $0x4ac] sm:$0xf0]  ;;  %v4513_v4 = vor.u32 %v5474_v61, %v4512_v60 }
 0x323   :  { %2363 = vmatpush.bf16.msra.mxu0 %v4065_v12  ;;  %v4368_v2 = vld [vmem:[#allocation2 + $0x4a0] sm:$0xf]  ;;  %v4769_v7 = vor.u32 %v5538_v0, %v4768_v63  ;;  %v5458_v48 = vld [vmem:[#allocation2 + $0x54c] sm:$0xf0] }
 0x324   :  { %v4624_v5 = vld [vmem:[#allocation2 + $0x6a0] sm:$0xf]  ;;  %v5486_v57 = vld [vmem:[#allocation2 + $0x62c] sm:$0xf0] }
 0x325   :  { %2350 = vmatpush.bf16.msrb.mxu3 %v3937_v13  ;;  %v4752_v12 = vld [vmem:[#allocation2 + $0x7a0] sm:$0xf]  ;;  %v5534_v13 = vld [vmem:[#allocation2 + $0x7ac] sm:$0xf0]  ;;  %v4625_v14 = vor.u32 %v5502_v6, %v4624_v5 }
 0x326   :  { %2336 = vmatpush.bf16.msrb.mxu2 %v3825_v62  ;;  %2376 = vmatpush.bf16.msra.mxu1 %v4193_v17  ;;  %v4385_v62 = vor.u32 %v5442_v54, %v4384_v53  ;;  %v4497_v17 = vor.u32 %v5470_v10, %v4496_v9  ;;  %v4753_v20 = vor.u32 %v5534_v13, %v4752_v12  ;;  %v4592_v30 = vld [vmem:[#allocation2 + $0x660] sm:$0xf]  ;;  %v5422_v54 = vld [vmem:[#allocation2 + $0x42c] sm:$0xf0] }
 0x327   :  { %2364 = vmatpush.bf16.msra.mxu0 %v4049_v24  ;;  %v4736_v24 = vld [vmem:[#allocation2 + $0x780] sm:$0xf]  ;;  %v4593_v38 = vor.u32 %v5494_v31, %v4592_v30  ;;  %v5454_v60 = vld [vmem:[#allocation2 + $0x52c] sm:$0xf0]  ;;  %v5380_v31 = vld [vmem:[#allocation2 + $0x2e4] sm:$0xf] }
 0x328   :  { %v4448_v47 = vld [vmem:[#allocation2 + $0x540] sm:$0xf]  ;;  %v5518_v63 = vld [vmem:[#allocation2 + $0x72c] sm:$0xf0] }
 0x329   :  { %2351 = vmatpush.bf16.msrb.mxu3 %v3921_v25  ;;  %v5530_v25 = vld [vmem:[#allocation2 + $0x78c] sm:$0xf0]  ;;  %v4304_v53 = vld [vmem:[#allocation2 + $0x420] sm:$0xf] }
 0x32a   :  { %2337 = vmatpush.bf16.msrb.mxu2 %v3809_v11  ;;  %2377 = vmatpush.bf16.msra.mxu1 %v4177_v28  ;;  %v4369_v11 = vor.u32 %v5438_v3, %v4368_v2  ;;  %v5430_v28 = vld [vmem:[#allocation2 + $0x46c] sm:$0xf0]  ;;  %v4737_v32 = vor.u32 %v5530_v25, %v4736_v24  ;;  %v4688_v61 = vld [vmem:[#allocation2 + $0x720] sm:$0xf] }
 0x32b   :  { %2365 = vmatpush.bf16.msra.mxu0 %v4033_v45  ;;  %v5490_v45 = vld [vmem:[#allocation2 + $0x64c] sm:$0xf0]  ;;  %v4689_v0 = vor.u32 %v5518_v63, %v4688_v61  ;;  %v4672_v10 = vld [vmem:[#allocation2 + $0x700] sm:$0xf]  ;;  %v5408_v63 = vld [vmem:[#allocation2 + $0x3c4] sm:$0xf] }
 0x32c   :  { %v5418_v2 = vld [vmem:[#allocation2 + $0x40c] sm:$0xf0] }
 0x32d   :  { %2352 = vmatpush.bf16.msrb.mxu3 %v3905_v52  ;;  %v5482_v5 = vld [vmem:[#allocation2 + $0x60c] sm:$0xf0] }
 0x32e   :  { %2338 = vmatpush.bf16.msrb.mxu2 %v3793_v23  ;;  %2378 = vmatpush.bf16.msra.mxu1 %v4161_v55  ;;  %v4353_v23 = vor.u32 %v5434_v16, %v4352_v15  ;;  %v4560_v55 = vld [vmem:[#allocation2 + $0x620] sm:$0xf]  ;;  %v5450_v9 = vld [vmem:[#allocation2 + $0x50c] sm:$0xf0] }
 0x32f   :  { %v4561_v58 = vor.u32 %v5486_v57, %v4560_v55  ;;  %v5514_v12 = vld [vmem:[#allocation2 + $0x70c] sm:$0xf0]  ;;  %v4130_v55 = vld [vmem:[#allocation2 + $0x2d0] sm:$0xf0] }
 0x330   :  { %v4673_v13 = vor.u32 %v5514_v12, %v4672_v10  ;;  %v4114_v10 = vld [vmem:[#allocation2 + $0x2b0] sm:$0xf0] }
 0x331   :  { %2397 = vmatpush.bf16.msra.mxu3 %v4529_v56  ;;  %v4305_v56 = vor.u32 %v5422_v54, %v4304_v53  ;;  %v5376_v54 = vld [vmem:[#allocation2 + $0x2c4] sm:$0xf] }
 0x332   :  { %2339 = vmatpush.bf16.msrb.mxu2 %v3777_v36  ;;  %v4720_v36 = vld [vmem:[#allocation2 + $0x760] sm:$0xf] }
 0x335   :  { %2398 = vmatpush.bf16.msra.mxu3 %v4513_v4  ;;  %v4544_v4 = vld [vmem:[#allocation2 + $0x600] sm:$0xf] }
 0x336   :  { %2384 = vmatpush.bf16.msra.mxu2 %v4401_v46  ;;  %v4577_v46 = vor.u32 %v5490_v45, %v4576_v43  ;;  %v4545_v6 = vor.u32 %v5482_v5, %v4544_v4  ;;  %v4018_v45 = vld [vmem:[#allocation2 + $0x1f0] sm:$0xf0]  ;;  %v4133_v4 = vor.u32 %v5376_v54, %v4130_v55  ;;  %v5308_v5 = vld [vmem:[#allocation2 + $0xa4] sm:$0xf] }
 0x339   :  { %2399 = vmatpush.bf16.msra.mxu3 %v4497_v17  ;;  %v5774_v17 = vmov 1934713408  }
 0x33a   :  { %2385 = vmatpush.bf16.msra.mxu2 %v4385_v62  ;;  %v751_v18 = vunpack.c.l.s4 %v5774_v17 }
 0x33c   :  { %v6067_v25 = vunpack.c.0.s8 %v751_v18  ;;  %v5340_v18 = vld [vmem:[#allocation2 + $0x1a4] sm:$0xf] }
 0x33d   :  { %2400 = vmatpush.bf16.msra.mxu3 %v4481_v29  ;;  %v3890_v29 = vld [vmem:[#allocation2 + $0xf0] sm:$0xf0] }
 0x33e   :  { %2386 = vmatpush.bf16.msra.mxu2 %v4369_v11 }
 0x341   :  { %2401 = vmatpush.bf16.msra.mxu3 %v4465_v39  ;;  %v5348_v39 = vld [vmem:[#allocation2 + $0x1e4] sm:$0xf] }
 0x342   :  { %2387 = vmatpush.bf16.msra.mxu2 %v4353_v23  ;;  %v4021_v61 = vor.u32 %v5348_v39, %v4018_v45  ;;  %v5364_v39 = vld [vmem:[#allocation2 + $0x264] sm:$0xf] }
 0x3b9   :  { %v5652_v35 = vpop.trf.xlu2 }
 0x3ba   :  { %v5656_v40 = vunpack.i.h.bf16 %v5652_v35  ;;  %v5653_v41 = vunpack.i.l.bf16 %v5652_v35  ;;  %v4337_v35 = vor.u32 %v5430_v28, %v4336_v27  ;;  %v5316_v28 = vld [vmem:[#allocation2 + $0xe4] sm:$0xf] }
 0x3bb   :  { %v3893_v43 = vor.u32 %v5316_v28, %v3890_v29  ;;  %v5400_v28 = vld [vmem:[#allocation2 + $0x384] sm:$0xf]  ;;  %v4226_v29 = vld [vmem:[#allocation2 + $0x390] sm:$0xf0] }
 0x3bc   :  { %v684_v49 = vpack.c.bf16 %v5656_v40, %v5656_v40  ;;  %v685_v50 = vpack.c.bf16 %v5653_v41, %v5653_v41  ;;  %v4721_v40 = vor.u32 %v5526_v37, %v4720_v36  ;;  %2388 = vmatpush.bf16.msra.mxu2 %v4337_v35  ;;  %v4320_v41 = vld [vmem:[#allocation2 + $0x440] sm:$0xf] }
 0x3bd   :  { %v4321_v44 = vor.u32 %v5426_v42, %v4320_v41  ;;  %v4274_v41 = vld [vmem:[#allocation2 + $0x3f0] sm:$0xf0] }
 0x3be   :  { %3772 = vmatmul.msk.bf16.vlgmr.msrb.gmra.mxu0 %vm553_vm10, %v684_v49  ;;  %3773 = vmatmul.msk.bf16.vlgmr.msrb.gmra.mxu1 %vm553_vm10, %v685_v50  ;;  %v4449_v49 = vor.u32 %v5458_v48, %v4448_v47  ;;  %v4704_v50 = vld [vmem:[#allocation2 + $0x740] sm:$0xf]  ;;  %v3874_v47 = vld [vmem:[#allocation2 + $0xd0] sm:$0xf0]  ;;  %vm3565_vm10 = vcmask 523264  }
 0x3bf   :  { %2410 = vmatpush.bf16.msrb.mxu0 %v4657_v51  ;;  %2423 = vmatpush.bf16.msrb.mxu1 %v4785_v59  ;;  %v5522_v51 = vld [vmem:[#allocation2 + $0x74c] sm:$0xf0]  ;;  %v4432_v59 = vld [vmem:[#allocation2 + $0x520] sm:$0xf] }
 0x3c0   :  { %2389 = vmatpush.bf16.msra.mxu2 %v4321_v44  ;;  %v4705_v52 = vor.u32 %v5522_v51, %v4704_v50  ;;  %2402 = vmatpush.bf16.msra.mxu3 %v4449_v49  ;;  %v4433_v62 = vor.u32 %v5454_v60, %v4432_v59  ;;  %v5344_v59 = vld [vmem:[#allocation2 + $0x1c4] sm:$0xf] }
 0x3c3   :  { %2411 = vmatpush.bf16.msrb.mxu0 %v4641_v1  ;;  %2424 = vmatpush.bf16.msrb.mxu1 %v4769_v7  ;;  %v4288_v1 = vld [vmem:[#allocation2 + $0x400] sm:$0xf] }
 0x3c4   :  { %2390 = vmatpush.bf16.msra.mxu2 %v4305_v56  ;;  %2403 = vmatpush.bf16.msra.mxu3 %v4433_v62  ;;  %v4289_v3 = vor.u32 %v5418_v2, %v4288_v1  ;;  %v4416_v7 = vld [vmem:[#allocation2 + $0x500] sm:$0xf]  ;;  %v4002_v62 = vld [vmem:[#allocation2 + $0x1d0] sm:$0xf0] }
 0x3c5   :  { %v4417_v11 = vor.u32 %v5450_v9, %v4416_v7  ;;  %v5372_v9 = vld [vmem:[#allocation2 + $0x2a4] sm:$0xf]  ;;  %v4005_v12 = vor.u32 %v5344_v59, %v4002_v62 }
 0x3c6   :  { %v4117_v17 = vor.u32 %v5372_v9, %v4114_v10  ;;  %v5392_v62 = vld [vmem:[#allocation2 + $0x344] sm:$0xf] }
 0x3c7   :  { %2412 = vmatpush.bf16.msrb.mxu0 %v4625_v14  ;;  %2425 = vmatpush.bf16.msrb.mxu1 %v4753_v20  ;;  %v5773_v14 = vmov 1983009808   ;;  %v5356_v10 = vld [vmem:[#allocation2 + $0x224] sm:$0xf] }
 0x3c8   :  { %2391 = vmatpush.bf16.msra.mxu2 %v4289_v3  ;;  %2404 = vmatpush.bf16.msra.mxu3 %v4417_v11  ;;  %v729_v15 = vunpack.c.l.s4 %v5773_v14  ;;  %v4242_v14 = vld [vmem:[#allocation2 + $0x3b0] sm:$0xf0] }
 0x3ca   :  { %v730_v16 = vunpack.c.0.s8 %v729_v15 }
 0x3cb   :  { %2413 = vmatpush.bf16.msrb.mxu0 %v4609_v26  ;;  %2426 = vmatpush.bf16.msrb.mxu1 %v4737_v32  ;;  %v4146_v32 = vld [vmem:[#allocation2 + $0x2f0] sm:$0xf0] }
 0x3cc   :  { %v4149_v44 = vor.u32 %v5380_v31, %v4146_v32 }
 0x3cf   :  { %2414 = vmatpush.bf16.msrb.mxu0 %v4593_v38  ;;  %2427 = vmatpush.bf16.msrb.mxu1 %v4721_v40  ;;  %v5412_v40 = vld [vmem:[#allocation2 + $0x3e4] sm:$0xf] }
 0x3d3   :  { %2415 = vmatpush.bf16.msrb.mxu0 %v4577_v46  ;;  %2428 = vmatpush.bf16.msrb.mxu1 %v4705_v52  ;;  %v5312_v46 = vld [vmem:[#allocation2 + $0xc4] sm:$0xf] }
 0x3d4   :  { %v3877_v3 = vor.u32 %v5312_v46, %v3874_v47  ;;  %v5332_v47 = vld [vmem:[#allocation2 + $0x164] sm:$0xf] }
 0x3d7   :  { %2416 = vmatpush.bf16.msrb.mxu0 %v4561_v58  ;;  %2429 = vmatpush.bf16.msrb.mxu1 %v4689_v0  ;;  %v4277_v58 = vor.u32 %v5412_v40, %v4274_v41  ;;  %v4258_v0 = vld [vmem:[#allocation2 + $0x3d0] sm:$0xf0] }
 0x3d8   :  { %v4261_v11 = vor.u32 %v5408_v63, %v4258_v0  ;;  %v4082_v40 = vld [vmem:[#allocation2 + $0x270] sm:$0xf0] }
 0x3d9   :  { %v4194_v63 = vld [vmem:[#allocation2 + $0x350] sm:$0xf0] }
 0x3da   :  { %v4197_v9 = vor.u32 %v5392_v62, %v4194_v63  ;;  %v5436_v62 = vld [vmem:[#allocation2 + $0x4a4] sm:$0xf]  ;;  %v4370_v63 = vld [vmem:[#allocation2 + $0x4b0] sm:$0xf0] }
 0x3db   :  { %2417 = vmatpush.bf16.msrb.mxu0 %v4545_v6  ;;  %2430 = vmatpush.bf16.msrb.mxu1 %v4673_v13  ;;  %v3858_v6 = vld [vmem:[#allocation2 + $0xb0] sm:$0xf0]  ;;  %v5404_v13 = vld [vmem:[#allocation2 + $0x3a4] sm:$0xf] }
 0x43b   :  { %v702_v19 = vpop.f32.mrf.mxu0  ;;  %v721_v20 = vpop.f32.mrf.mxu1 }
 0x43c   :  { %v725_v21 = vrot.slane %v702_v19, 4  ;;  %v731_v22 = vperm.slane %v702_v19, %v730_v16  ;;  %v736_v23 = vrot.slane %v721_v20, 4  ;;  %v741_v24 = vperm.slane %v721_v20, %v730_v16  ;;  %v3986_v19 = vld [vmem:[#allocation2 + $0x1b0] sm:$0xf0]  ;;  %v5304_v20 = vld [vmem:[#allocation2 + $0x84] sm:$0xf] }
 0x43e   :  { %v748_v26 = vrot.slane %v731_v22, 4  ;;  %v746_v27 = vrot.slane %v741_v24, 4  ;;  %v727_v30 = vsel %vm726_vm3, 0.0, %v725_v21  ;;  %v737_v34 = vsel %vm726_vm3, 0.0, %v736_v23  ;;  %v3842_v21 = vld [vmem:[#allocation2 + $0x90] sm:$0xf0] }
 0x43f   :  { %v735_v42 = vperm.slane %v727_v30, %v730_v16  ;;  %v745_v48 = vperm.slane %v737_v34, %v730_v16  ;;  %v3861_v16 = vor.u32 %v5308_v5, %v3858_v6  ;;  %v4098_v23 = vld [vmem:[#allocation2 + $0x290] sm:$0xf0]  ;;  %v3845_v31 = vor.u32 %v5304_v20, %v3842_v21  ;;  %v5292_v6 = vld [vmem:[#allocation2 + $0x24] sm:$0xf] }
 0x440   :  { %v747_v35 = vsel %vm726_vm3, %v746_v27, %v731_v22  ;;  %v749_v36 = vsel %vm726_vm3, %v741_v24, %v748_v26  ;;  %v5368_v22 = vld [vmem:[#allocation2 + $0x284] sm:$0xf]  ;;  %v4245_v26 = vor.u32 %v5404_v13, %v4242_v14  ;;  %v3989_v27 = vor.u32 %v5340_v18, %v3986_v19  ;;  %v3970_v34 = vld [vmem:[#allocation2 + $0x190] sm:$0xf0] }
 0x441   :  { %v753_v37 = vperm.slane %v747_v35, %v6067_v25  ;;  %v757_v38 = vperm.slane %v749_v36, %v6067_v25  ;;  %v760_v1 = vrot.slane %v735_v42, 4  ;;  %v758_v7 = vrot.slane %v745_v48, 4  ;;  %v5300_v36 = vld [vmem:[#allocation2 + $0x64] sm:$0xf]  ;;  %v3778_v19 = vld [vmem:[#allocation2 + $0x10] sm:$0xf0] }
 0x442   :  { %v4101_v32 = vor.u32 %v5368_v22, %v4098_v23  ;;  %v3973_v41 = vor.u32 %v5336_v33, %v3970_v34  ;;  %v5324_v13 = vld [vmem:[#allocation2 + $0x124] sm:$0xf]  ;;  %v4034_v22 = vld [vmem:[#allocation2 + $0x210] sm:$0xf0] }
 0x443   :  { %v772_v49 = vrot.slane %v757_v38, 4  ;;  %v704_v50 = vpop.f32.mrf.mxu0  ;;  %v723_v51 = vpop.f32.mrf.mxu1  ;;  %v6080_v52 = vpack.c.bf16 %v753_v37, %v753_v37  ;;  %v6082_v53 = vpack.c.bf16 %v757_v38, %v757_v38  ;;  %v770_v57 = vrot.slane %v753_v37, 4  ;;  %v3826_v37 = vld [vmem:[#allocation2 + $0x70] sm:$0xf0]  ;;  %v5388_v14 = vld [vmem:[#allocation2 + $0x324] sm:$0xf] }
 0x444   :  { %v761_v15 = vsel %vm726_vm3, %v745_v48, %v760_v1  ;;  %v759_v24 = vsel %vm726_vm3, %v758_v7, %v735_v42  ;;  %v4229_v38 = vor.u32 %v5400_v28, %v4226_v29  ;;  %v3829_v46 = vor.u32 %v5300_v36, %v3826_v37  ;;  %v3954_v48 = vld [vmem:[#allocation2 + $0x170] sm:$0xf0]  ;;  %v5296_v50 = vld [vmem:[#allocation2 + $0x44] sm:$0xf] }
 0x445   :  { %v6091_v60 = vpack.c.bf16 %v772_v49, %v772_v49  ;;  %2340 = vmatmul.bf16.vlgmr.msrb.gmra.mxu2 %v6080_v52  ;;  %2366 = vmatmul.bf16.vlgmr.msra.gmra.mxu0 %v6082_v53  ;;  %v6095_v2 = vpack.c.bf16 %v770_v57, %v770_v57  ;;  %v769_v30 = vperm.slane %v761_v15, %v6067_v25  ;;  %v3810_v51 = vld [vmem:[#allocation2 + $0x50] sm:$0xf0]  ;;  %v5360_v57 = vld [vmem:[#allocation2 + $0x244] sm:$0xf] }
 0x446   :  { %2436 = vmatpush.bf16.msrb.mxu2 %v3893_v43  ;;  %2462 = vmatpush.bf16.msra.mxu0 %v4149_v44  ;;  %v765_v35 = vperm.slane %v759_v24, %v6067_v25  ;;  %v5396_v43 = vld [vmem:[#allocation2 + $0x364] sm:$0xf]  ;;  %v4210_v44 = vld [vmem:[#allocation2 + $0x370] sm:$0xf0]  ;;  %v4085_v25 = vor.u32 %v5364_v39, %v4082_v40  ;;  %v3813_v1 = vor.u32 %v5296_v50, %v3810_v51 }
 0x447   :  { %4807 = vmatmul.msk.bf16.vlgmr.msra.gmra.mxu1 %vm6087_vm5, %v6091_v60  ;;  %4802 = vmatmul.msk.bf16.vlgmr.msrb.gmra.mxu3 %vm6087_vm5, %v6095_v2  ;;  %v776_v42 = vrot.slane %v769_v30, 4  ;;  %v6109_v54 = vpack.c.bf16 %v769_v30, %v769_v30  ;;  %v4213_v55 = vor.u32 %v5396_v43, %v4210_v44  ;;  %v3794_v7 = vld [vmem:[#allocation2 + $0x30] sm:$0xf0]  ;;  %v5288_v18 = vld [vmem:[#allocation2 + $0x4] sm:$0xf] }
 0x448   :  { %2475 = vmatpush.bf16.msra.mxu1 %v4277_v58  ;;  %2449 = vmatpush.bf16.msrb.mxu3 %v4021_v61  ;;  %v774_v45 = vrot.slane %v765_v35, 4  ;;  %v6107_v49 = vpack.c.bf16 %v765_v35, %v765_v35  ;;  %v4066_v58 = vld [vmem:[#allocation2 + $0x250] sm:$0xf0]  ;;  %v3957_v61 = vor.u32 %v5332_v47, %v3954_v48  ;;  %v5352_v21 = vld [vmem:[#allocation2 + $0x204] sm:$0xf]  ;;  %v3781_v33 = vor.u32 %v5288_v18, %v3778_v19 }
 0x449   :  { %v6112_v59 = vpack.c.bf16 %v776_v42, %v776_v42  ;;  %v4069_v5 = vor.u32 %v5360_v57, %v4066_v58  ;;  %v4178_v15 = vld [vmem:[#allocation2 + $0x330] sm:$0xf0]  ;;  %v5444_v23 = vld [vmem:[#allocation2 + $0x4e4] sm:$0xf]  ;;  %v4037_v37 = vor.u32 %v5352_v21, %v4034_v22 }
 0x44a   :  { %2437 = vmatpush.bf16.msrb.mxu2 %v3877_v3  ;;  %2463 = vmatpush.bf16.msra.mxu0 %v4133_v4  ;;  %v6115_v0 = vpack.c.bf16 %v774_v45, %v774_v45  ;;  %v5328_v3 = vld [vmem:[#allocation2 + $0x144] sm:$0xf]  ;;  %v3938_v4 = vld [vmem:[#allocation2 + $0x150] sm:$0xf0]  ;;  %v4181_v24 = vor.u32 %v5388_v14, %v4178_v15 }
 0x44b   :  { %v4658_v28 = vld [vmem:[#allocation2 + $0x6f0] sm:$0xf0]  ;;  %v5320_v30 = vld [vmem:[#allocation2 + $0x104] sm:$0xf] }
 0x44c   :  { %2476 = vmatpush.bf16.msra.mxu1 %v4261_v11  ;;  %2450 = vmatpush.bf16.msrb.mxu3 %v4005_v12  ;;  %v4050_v11 = vld [vmem:[#allocation2 + $0x230] sm:$0xf0]  ;;  %v3941_v12 = vor.u32 %v5328_v3, %v3938_v4  ;;  %v5540_v35 = vld [vmem:[#allocation2 + $0x7e4] sm:$0xf] }
 0x44d   :  { %v4053_v20 = vor.u32 %v5356_v10, %v4050_v11  ;;  %v3906_v34 = vld [vmem:[#allocation2 + $0x110] sm:$0xf0]  ;;  %v5476_v39 = vld [vmem:[#allocation2 + $0x5e4] sm:$0xf] }
 0x44e   :  { %2438 = vmatpush.bf16.msrb.mxu2 %v3861_v16  ;;  %2464 = vmatpush.bf16.msra.mxu0 %v4117_v17  ;;  %v3797_v16 = vor.u32 %v5292_v6, %v3794_v7  ;;  %v3922_v17 = vld [vmem:[#allocation2 + $0x130] sm:$0xf0]  ;;  %v5440_v43 = vld [vmem:[#allocation2 + $0x4c4] sm:$0xf]  ;;  %v3909_v45 = vor.u32 %v5320_v30, %v3906_v34  ;;  %v4373_v7 = vor.u32 %v5436_v62, %v4370_v63 }
 0x44f   :  { %v3925_v29 = vor.u32 %v5324_v13, %v3922_v17  ;;  %v4786_v36 = vld [vmem:[#allocation2 + $0x7f0] sm:$0xf0]  ;;  %v5504_v47 = vld [vmem:[#allocation2 + $0x6c4] sm:$0xf] }
 0x450   :  { %2477 = vmatpush.bf16.msra.mxu1 %v4245_v26  ;;  %2451 = vmatpush.bf16.msrb.mxu3 %v3989_v27  ;;  %v4402_v26 = vld [vmem:[#allocation2 + $0x4f0] sm:$0xf0]  ;;  %v5508_v27 = vld [vmem:[#allocation2 + $0x6e4] sm:$0xf] }
 0x451   :  { %v4530_v40 = vld [vmem:[#allocation2 + $0x5f0] sm:$0xf0]  ;;  %v5472_v50 = vld [vmem:[#allocation2 + $0x5c4] sm:$0xf] }
 0x452   :  { %2439 = vmatpush.bf16.msrb.mxu2 %v3845_v31  ;;  %2465 = vmatpush.bf16.msra.mxu0 %v4101_v32  ;;  %v5384_v31 = vld [vmem:[#allocation2 + $0x304] sm:$0xf]  ;;  %v4162_v32 = vld [vmem:[#allocation2 + $0x310] sm:$0xf0] }
 0x453   :  { %v4165_v42 = vor.u32 %v5384_v31, %v4162_v32  ;;  %v4386_v44 = vld [vmem:[#allocation2 + $0x4d0] sm:$0xf0]  ;;  %v5536_v57 = vld [vmem:[#allocation2 + $0x7c4] sm:$0xf] }
 0x454   :  { %2478 = vmatpush.bf16.msra.mxu1 %v4229_v38  ;;  %2452 = vmatpush.bf16.msrb.mxu3 %v3973_v41  ;;  %v4405_v38 = vor.u32 %v5444_v23, %v4402_v26  ;;  %v4661_v41 = vor.u32 %v5508_v27, %v4658_v28  ;;  %v4642_v48 = vld [vmem:[#allocation2 + $0x6d0] sm:$0xf0]  ;;  %v4389_v51 = vor.u32 %v5440_v43, %v4386_v44  ;;  %v5468_v6 = vld [vmem:[#allocation2 + $0x5a4] sm:$0xf] }
 0x455   :  { %2392 = vmatmul.bf16.vlgmr.msra.gmra.mxu2 %v6107_v49  ;;  %2418 = vmatmul.bf16.vlgmr.msrb.gmra.mxu0 %v6109_v54  ;;  %v4770_v58 = vld [vmem:[#allocation2 + $0x7d0] sm:$0xf0]  ;;  %v5532_v10 = vld [vmem:[#allocation2 + $0x7a4] sm:$0xf] }
 0x456   :  { %2440 = vmatpush.bf16.msrb.mxu2 %v3829_v46  ;;  %2466 = vmatpush.bf16.msra.mxu0 %v4085_v25  ;;  %v4789_v46 = vor.u32 %v5540_v35, %v4786_v36  ;;  %v4533_v25 = vor.u32 %v5476_v39, %v4530_v40  ;;  %v4626_v3 = vld [vmem:[#allocation2 + $0x6b0] sm:$0xf0]  ;;  %v5432_v13 = vld [vmem:[#allocation2 + $0x484] sm:$0xf] }
 0x457   :  { %4817 = vmatmul.msk.bf16.vlgmr.msrb.gmra.mxu1 %vm6087_vm5, %v6112_v59  ;;  %4812 = vmatmul.msk.bf16.vlgmr.msra.gmra.mxu3 %vm6087_vm5, %v6115_v0  ;;  %v4754_v11 = vld [vmem:[#allocation2 + $0x7b0] sm:$0xf0]  ;;  %v5496_v15 = vld [vmem:[#allocation2 + $0x684] sm:$0xf] }
 0x458   :  { %2479 = vmatpush.bf16.msra.mxu1 %v4213_v55  ;;  %2453 = vmatpush.bf16.msrb.mxu3 %v3957_v61  ;;  %v4514_v55 = vld [vmem:[#allocation2 + $0x5d0] sm:$0xf0]  ;;  %v4645_v61 = vor.u32 %v5504_v47, %v4642_v48  ;;  %v4757_v18 = vor.u32 %v5532_v10, %v4754_v11  ;;  %v5464_v19 = vld [vmem:[#allocation2 + $0x584] sm:$0xf]  ;;  %v3896_v11 = vld [vmem:[#allocation2 + $0xe8] sm:$0xf] }
 0x459   :  { %v4517_v4 = vor.u32 %v5472_v50, %v4514_v55  ;;  %v4354_v14 = vld [vmem:[#allocation2 + $0x490] sm:$0xf0]  ;;  %v5528_v22 = vld [vmem:[#allocation2 + $0x784] sm:$0xf] }
 0x45a   :  { %2441 = vmatpush.bf16.msrb.mxu2 %v3813_v1  ;;  %2467 = vmatpush.bf16.msra.mxu0 %v4069_v5  ;;  %v5500_v1 = vld [vmem:[#allocation2 + $0x6a4] sm:$0xf]  ;;  %v4773_v5 = vor.u32 %v5536_v57, %v4770_v58  ;;  %v4482_v21 = vld [vmem:[#allocation2 + $0x590] sm:$0xf0] }
 0x45b   :  { %v4738_v23 = vld [vmem:[#allocation2 + $0x790] sm:$0xf0]  ;;  %v5428_v26 = vld [vmem:[#allocation2 + $0x464] sm:$0xf]  ;;  %v4485_v30 = vor.u32 %v5464_v19, %v4482_v21 }
 0x45c   :  { %2480 = vmatpush.bf16.msra.mxu1 %v4197_v9  ;;  %2454 = vmatpush.bf16.msrb.mxu3 %v3941_v12  ;;  %v4498_v9 = vld [vmem:[#allocation2 + $0x5b0] sm:$0xf0]  ;;  %v4629_v12 = vor.u32 %v5500_v1, %v4626_v3  ;;  %v5492_v28 = vld [vmem:[#allocation2 + $0x664] sm:$0xf]  ;;  %v4741_v31 = vor.u32 %v5528_v22, %v4738_v23 }
 0x45d   :  { %v4501_v17 = vor.u32 %v5468_v6, %v4498_v9  ;;  %v4338_v27 = vld [vmem:[#allocation2 + $0x470] sm:$0xf0]  ;;  %v5460_v32 = vld [vmem:[#allocation2 + $0x564] sm:$0xf] }
 0x45e   :  { %2442 = vmatpush.bf16.msrb.mxu2 %v3797_v16  ;;  %2468 = vmatpush.bf16.msra.mxu0 %v4053_v20  ;;  %v4610_v16 = vld [vmem:[#allocation2 + $0x690] sm:$0xf0]  ;;  %v4357_v20 = vor.u32 %v5432_v13, %v4354_v14  ;;  %v5524_v35 = vld [vmem:[#allocation2 + $0x764] sm:$0xf] }
 0x45f   :  { %v4466_v34 = vld [vmem:[#allocation2 + $0x570] sm:$0xf0]  ;;  %v5488_v40 = vld [vmem:[#allocation2 + $0x644] sm:$0xf] }
 0x460   :  { %2481 = vmatpush.bf16.msra.mxu1 %v4181_v24  ;;  %2455 = vmatpush.bf16.msrb.mxu3 %v3925_v29  ;;  %v4613_v24 = vor.u32 %v5496_v15, %v4610_v16  ;;  %v4594_v29 = vld [vmem:[#allocation2 + $0x670] sm:$0xf0]  ;;  %v5456_v44 = vld [vmem:[#allocation2 + $0x544] sm:$0xf]  ;;  %v4152_v15 = vld [vmem:[#allocation2 + $0x2e8] sm:$0xf] }
 0x461   :  { %v4722_v36 = vld [vmem:[#allocation2 + $0x770] sm:$0xf0]  ;;  %v5520_v47 = vld [vmem:[#allocation2 + $0x744] sm:$0xf]  ;;  %v5383_v16 = vld [vmem:[#allocation2 + $0x2f4] sm:$0xf0] }
 0x462   :  { %2443 = vmatpush.bf16.msrb.mxu2 %v3781_v33  ;;  %2469 = vmatpush.bf16.msra.mxu0 %v4037_v37  ;;  %v4341_v33 = vor.u32 %v5428_v26, %v4338_v27  ;;  %v4597_v37 = vor.u32 %v5492_v28, %v4594_v29  ;;  %v4322_v39 = vld [vmem:[#allocation2 + $0x450] sm:$0xf0]  ;;  %v4725_v43 = vor.u32 %v5524_v35, %v4722_v36  ;;  %v5420_v50 = vld [vmem:[#allocation2 + $0x424] sm:$0xf]  ;;  %v5351_v27 = vld [vmem:[#allocation2 + $0x1f4] sm:$0xf0] }
 0x463   :  { %v4706_v48 = vld [vmem:[#allocation2 + $0x750] sm:$0xf0]  ;;  %v5484_v55 = vld [vmem:[#allocation2 + $0x624] sm:$0xf]  ;;  %v4153_v26 = vor.u32 %v5383_v16, %v4152_v15  ;;  %v4280_v28 = vld [vmem:[#allocation2 + $0x3e8] sm:$0xf] }
 0x464   :  { %2482 = vmatpush.bf16.msra.mxu1 %v4165_v42  ;;  %2456 = vmatpush.bf16.msrb.mxu3 %v3909_v45  ;;  %v4469_v42 = vor.u32 %v5460_v32, %v4466_v34  ;;  %v4562_v57 = vld [vmem:[#allocation2 + $0x630] sm:$0xf0]  ;;  %v5452_v62 = vld [vmem:[#allocation2 + $0x524] sm:$0xf]  ;;  %v5415_v29 = vld [vmem:[#allocation2 + $0x3f4] sm:$0xf0] }
 0x465   :  { %2444 = vmatmul.bf16.vlgmr.msrb.gmra.mxu2 %v6080_v52  ;;  %2470 = vmatmul.bf16.vlgmr.msra.gmra.mxu0 %v6082_v53  ;;  %v4434_v1 = vld [vmem:[#allocation2 + $0x530] sm:$0xf0]  ;;  %v5516_v3 = vld [vmem:[#allocation2 + $0x724] sm:$0xf]  ;;  %v3880_v32 = vld [vmem:[#allocation2 + $0xc8] sm:$0xf] }
 0x466   :  { %2488 = vmatpush.bf16.msra.mxu2 %v4405_v38  ;;  %2514 = vmatpush.bf16.msrb.mxu0 %v4661_v41  ;;  %v5424_v38 = vld [vmem:[#allocation2 + $0x444] sm:$0xf]  ;;  %v4578_v41 = vld [vmem:[#allocation2 + $0x650] sm:$0xf0]  ;;  %v4437_v13 = vor.u32 %v5452_v62, %v4434_v1  ;;  %v4136_v34 = vld [vmem:[#allocation2 + $0x2c8] sm:$0xf] }
 0x467   :  { %4822 = vmatmul.msk.bf16.vlgmr.msrb.gmra.mxu3 %vm6087_vm5, %v6095_v2  ;;  %4827 = vmatmul.msk.bf16.vlgmr.msra.gmra.mxu1 %vm6087_vm5, %v6091_v60  ;;  %v4325_v45 = vor.u32 %v5424_v38, %v4322_v39  ;;  %v5416_v6 = vld [vmem:[#allocation2 + $0x404] sm:$0xf]  ;;  %v4546_v10 = vld [vmem:[#allocation2 + $0x610] sm:$0xf0]  ;;  %v5379_v35 = vld [vmem:[#allocation2 + $0x2d4] sm:$0xf0] }
 0x468   :  { %2527 = vmatpush.bf16.msrb.mxu1 %v4789_v46  ;;  %2501 = vmatpush.bf16.msra.mxu3 %v4533_v25  ;;  %v4450_v46 = vld [vmem:[#allocation2 + $0x550] sm:$0xf0]  ;;  %v4581_v25 = vor.u32 %v5488_v40, %v4578_v41  ;;  %v5480_v9 = vld [vmem:[#allocation2 + $0x604] sm:$0xf]  ;;  %v4008_v38 = vld [vmem:[#allocation2 + $0x1c8] sm:$0xf] }
 0x469   :  { %v4453_v58 = vor.u32 %v5456_v44, %v4450_v46  ;;  %v4418_v19 = vld [vmem:[#allocation2 + $0x510] sm:$0xf0]  ;;  %v4549_v22 = vor.u32 %v5480_v9, %v4546_v10  ;;  %v5347_v39 = vld [vmem:[#allocation2 + $0x1d4] sm:$0xf0]  ;;  %v4264_v40 = vld [vmem:[#allocation2 + $0x3c8] sm:$0xf] }
 0x46a   :  { %2489 = vmatpush.bf16.msra.mxu2 %v4389_v51  ;;  %2515 = vmatpush.bf16.msrb.mxu0 %v4645_v61  ;;  %v4306_v51 = vld [vmem:[#allocation2 + $0x430] sm:$0xf0]  ;;  %v4709_v61 = vor.u32 %v5520_v47, %v4706_v48  ;;  %v5411_v41 = vld [vmem:[#allocation2 + $0x3d4] sm:$0xf0]  ;;  %v3864_v44 = vld [vmem:[#allocation2 + $0xa8] sm:$0xf]  ;;  %v4009_v48 = vor.u32 %v5347_v39, %v4008_v38 }
 0x46b   :  { %v4309_v63 = vor.u32 %v5420_v50, %v4306_v51  ;;  %v4674_v21 = vld [vmem:[#allocation2 + $0x710] sm:$0xf0]  ;;  %v4120_v46 = vld [vmem:[#allocation2 + $0x2a8] sm:$0xf]  ;;  %v5375_v47 = vld [vmem:[#allocation2 + $0x2b4] sm:$0xf0] }
 0x46c   :  { %2502 = vmatpush.bf16.msra.mxu3 %v4517_v4  ;;  %2528 = vmatpush.bf16.msrb.mxu1 %v4773_v5  ;;  %v4690_v4 = vld [vmem:[#allocation2 + $0x730] sm:$0xf0]  ;;  %v4565_v5 = vor.u32 %v5484_v55, %v4562_v57  ;;  %v3992_v50 = vld [vmem:[#allocation2 + $0x1a8] sm:$0xf]  ;;  %v5343_v51 = vld [vmem:[#allocation2 + $0x1b4] sm:$0xf0] }
 0x46d   :  { %v4693_v14 = vor.u32 %v5516_v3, %v4690_v4  ;;  %v4248_v55 = vld [vmem:[#allocation2 + $0x3a8] sm:$0xf]  ;;  %v5407_v57 = vld [vmem:[#allocation2 + $0x3b4] sm:$0xf0]  ;;  %v3993_v4 = vor.u32 %v5343_v51, %v3992_v50 }
 0x46e   :  { %2490 = vmatpush.bf16.msra.mxu2 %v4373_v7  ;;  %2516 = vmatpush.bf16.msrb.mxu0 %v4629_v12  ;;  %v4290_v7 = vld [vmem:[#allocation2 + $0x410] sm:$0xf0]  ;;  %v5319_v12 = vld [vmem:[#allocation2 + $0xf4] sm:$0xf0]  ;;  %v3848_v62 = vld [vmem:[#allocation2 + $0x88] sm:$0xf] }
 0x46f   :  { %v3897_v23 = vor.u32 %v5319_v12, %v3896_v11  ;;  %v4104_v1 = vld [vmem:[#allocation2 + $0x288] sm:$0xf]  ;;  %v5371_v3 = vld [vmem:[#allocation2 + $0x294] sm:$0xf0] }
 0x470   :  { %2503 = vmatpush.bf16.msra.mxu3 %v4501_v17  ;;  %2529 = vmatpush.bf16.msrb.mxu1 %v4757_v18  ;;  %v5448_v17 = vld [vmem:[#allocation2 + $0x504] sm:$0xf]  ;;  %v4293_v18 = vor.u32 %v5416_v6, %v4290_v7  ;;  %v3976_v6 = vld [vmem:[#allocation2 + $0x188] sm:$0xf]  ;;  %v5339_v7 = vld [vmem:[#allocation2 + $0x194] sm:$0xf0]  ;;  %v4105_v12 = vor.u32 %v5371_v3, %v4104_v1 }
 0x471   :  { %v4232_v9 = vld [vmem:[#allocation2 + $0x388] sm:$0xf]  ;;  %v5403_v10 = vld [vmem:[#allocation2 + $0x394] sm:$0xf0] }
 0x472   :  { %2491 = vmatpush.bf16.msra.mxu2 %v4357_v20  ;;  %2517 = vmatpush.bf16.msrb.mxu0 %v4613_v24  ;;  %v5512_v20 = vld [vmem:[#allocation2 + $0x704] sm:$0xf]  ;;  %v4024_v24 = vld [vmem:[#allocation2 + $0x1e8] sm:$0xf]  ;;  %v5367_v16 = vld [vmem:[#allocation2 + $0x274] sm:$0xf0] }
 0x473   :  { %v4025_v36 = vor.u32 %v5351_v27, %v4024_v24  ;;  %v4088_v15 = vld [vmem:[#allocation2 + $0x268] sm:$0xf]  ;;  %v5299_v27 = vld [vmem:[#allocation2 + $0x54] sm:$0xf0] }
 0x474   :  { %2504 = vmatpush.bf16.msra.mxu3 %v4485_v30  ;;  %2530 = vmatpush.bf16.msrb.mxu1 %v4741_v31  ;;  %v4421_v30 = vor.u32 %v5448_v17, %v4418_v19  ;;  %v4677_v31 = vor.u32 %v5512_v20, %v4674_v21  ;;  %v3977_v17 = vor.u32 %v5339_v7, %v3976_v6  ;;  %v3960_v19 = vld [vmem:[#allocation2 + $0x168] sm:$0xf]  ;;  %v5335_v20 = vld [vmem:[#allocation2 + $0x174] sm:$0xf0] }
 0x475   :  { %v4216_v21 = vld [vmem:[#allocation2 + $0x368] sm:$0xf]  ;;  %v4089_v24 = vor.u32 %v5367_v16, %v4088_v15  ;;  %v5295_v39 = vld [vmem:[#allocation2 + $0x34] sm:$0xf0] }
 0x476   :  { %2492 = vmatpush.bf16.msra.mxu2 %v4341_v33  ;;  %2518 = vmatpush.bf16.msrb.mxu0 %v4597_v37  ;;  %v5315_v33 = vld [vmem:[#allocation2 + $0xd4] sm:$0xf0]  ;;  %v4281_v37 = vor.u32 %v5415_v29, %v4280_v28  ;;  %v4072_v28 = vld [vmem:[#allocation2 + $0x248] sm:$0xf] }
 0x477   :  { %v5363_v29 = vld [vmem:[#allocation2 + $0x254] sm:$0xf0]  ;;  %v3800_v38 = vld [vmem:[#allocation2 + $0x28] sm:$0xf] }
 0x478   :  { %2505 = vmatpush.bf16.msra.mxu3 %v4469_v42  ;;  %2531 = vmatpush.bf16.msrb.mxu1 %v4725_v43  ;;  %v3881_v42 = vor.u32 %v5315_v33, %v3880_v32  ;;  %v4137_v43 = vor.u32 %v5379_v35, %v4136_v34  ;;  %v3944_v32 = vld [vmem:[#allocation2 + $0x148] sm:$0xf]  ;;  %v5331_v33 = vld [vmem:[#allocation2 + $0x154] sm:$0xf0] }
 0x479   :  { %v4200_v34 = vld [vmem:[#allocation2 + $0x348] sm:$0xf]  ;;  %v5395_v35 = vld [vmem:[#allocation2 + $0x354] sm:$0xf0] }
 0x47a   :  { %2493 = vmatpush.bf16.msra.mxu2 %v4325_v45  ;;  %2519 = vmatpush.bf16.msrb.mxu0 %v4581_v25  ;;  %v5311_v45 = vld [vmem:[#allocation2 + $0xb4] sm:$0xf0]  ;;  %v4265_v25 = vor.u32 %v5411_v41, %v4264_v40  ;;  %v4056_v40 = vld [vmem:[#allocation2 + $0x228] sm:$0xf] }
 0x47b   :  { %v5359_v41 = vld [vmem:[#allocation2 + $0x234] sm:$0xf0]  ;;  %v3784_v50 = vld [vmem:[#allocation2 + $0x8] sm:$0xf] }
 0x47c   :  { %2506 = vmatpush.bf16.msra.mxu3 %v4453_v58  ;;  %2532 = vmatpush.bf16.msrb.mxu1 %v4709_v61  ;;  %v3865_v58 = vor.u32 %v5311_v45, %v3864_v44  ;;  %v4121_v61 = vor.u32 %v5375_v47, %v4120_v46  ;;  %v3928_v44 = vld [vmem:[#allocation2 + $0x128] sm:$0xf]  ;;  %v5327_v45 = vld [vmem:[#allocation2 + $0x134] sm:$0xf0] }
 0x47d   :  { %v4184_v46 = vld [vmem:[#allocation2 + $0x328] sm:$0xf]  ;;  %v5391_v47 = vld [vmem:[#allocation2 + $0x334] sm:$0xf0] }
 0x47e   :  { %2494 = vmatpush.bf16.msra.mxu2 %v4309_v63  ;;  %2520 = vmatpush.bf16.msrb.mxu0 %v4565_v5  ;;  %v5307_v63 = vld [vmem:[#allocation2 + $0x94] sm:$0xf0]  ;;  %v4249_v5 = vor.u32 %v5407_v57, %v4248_v55  ;;  %v4040_v55 = vld [vmem:[#allocation2 + $0x208] sm:$0xf] }
 0x47f   :  { %v3849_v11 = vor.u32 %v5307_v63, %v3848_v62  ;;  %v5291_v51 = vld [vmem:[#allocation2 + $0x14] sm:$0xf0]  ;;  %v3929_v62 = vor.u32 %v5327_v45, %v3928_v44  ;;  %v4185_v63 = vor.u32 %v5391_v47, %v4184_v46  ;;  %v4664_v1 = vld [vmem:[#allocation2 + $0x6e8] sm:$0xf] }
 0x480   :  { %2507 = vmatpush.bf16.msra.mxu3 %v4437_v13  ;;  %2533 = vmatpush.bf16.msrb.mxu1 %v4693_v14  ;;  %v3832_v13 = vld [vmem:[#allocation2 + $0x68] sm:$0xf]  ;;  %v5303_v14 = vld [vmem:[#allocation2 + $0x74] sm:$0xf0] }
 0x481   :  { %v5355_v57 = vld [vmem:[#allocation2 + $0x214] sm:$0xf0]  ;;  %v4168_v6 = vld [vmem:[#allocation2 + $0x308] sm:$0xf] }
 0x482   :  { %2495 = vmatpush.bf16.msra.mxu2 %v4293_v18  ;;  %2521 = vmatpush.bf16.msrb.mxu0 %v4549_v22  ;;  %v4233_v18 = vor.u32 %v5403_v10, %v4232_v9  ;;  %v5399_v22 = vld [vmem:[#allocation2 + $0x374] sm:$0xf0]  ;;  %v3785_v9 = vor.u32 %v5291_v51, %v3784_v50  ;;  %v4041_v10 = vor.u32 %v5355_v57, %v4040_v55  ;;  %v4792_v15 = vld [vmem:[#allocation2 + $0x7e8] sm:$0xf] }
 0x483   :  { %v5511_v3 = vld [vmem:[#allocation2 + $0x6f4] sm:$0xf0]  ;;  %v4360_v44 = vld [vmem:[#allocation2 + $0x488] sm:$0xf] }
 0x484   :  { %2508 = vmatpush.bf16.msra.mxu3 %v4421_v30  ;;  %2534 = vmatpush.bf16.msrb.mxu1 %v4677_v31  ;;  %v3961_v30 = vor.u32 %v5335_v20, %v3960_v19  ;;  %v4217_v31 = vor.u32 %v5399_v22, %v4216_v21  ;;  %v5387_v7 = vld [vmem:[#allocation2 + $0x314] sm:$0xf0]  ;;  %v4392_v19 = vld [vmem:[#allocation2 + $0x4c8] sm:$0xf] }
 0x485   :  { %2496 = vmatmul.bf16.vlgmr.msra.gmra.mxu2 %v6107_v49  ;;  %2522 = vmatmul.bf16.vlgmr.msrb.gmra.mxu0 %v6109_v54  ;;  %v5543_v16 = vld [vmem:[#allocation2 + $0x7f4] sm:$0xf0]  ;;  %v4648_v21 = vld [vmem:[#allocation2 + $0x6c8] sm:$0xf] }
 0x486   :  { %2540 = vmatpush.bf16.msrb.mxu2 %v3897_v23  ;;  %2566 = vmatpush.bf16.msra.mxu0 %v4153_v26  ;;  %v3833_v23 = vor.u32 %v5303_v14, %v3832_v13  ;;  %v3816_v26 = vld [vmem:[#allocation2 + $0x48] sm:$0xf]  ;;  %v4665_v13 = vor.u32 %v5511_v3, %v4664_v1  ;;  %v5479_v14 = vld [vmem:[#allocation2 + $0x5f4] sm:$0xf0] }
 0x487   :  { %4832 = vmatmul.msk.bf16.vlgmr.msra.gmra.mxu3 %vm6087_vm5, %v6115_v0  ;;  %4837 = vmatmul.msk.bf16.vlgmr.msrb.gmra.mxu1 %vm6087_vm5, %v6112_v59  ;;  %v5443_v20 = vld [vmem:[#allocation2 + $0x4d4] sm:$0xf0]  ;;  %v4616_v46 = vld [vmem:[#allocation2 + $0x688] sm:$0xf] }
 0x488   :  { %2553 = vmatpush.bf16.msrb.mxu3 %v4025_v36  ;;  %2579 = vmatpush.bf16.msra.mxu1 %v4281_v37  ;;  %v3817_v36 = vor.u32 %v5299_v27, %v3816_v26  ;;  %v4073_v37 = vor.u32 %v5363_v29, %v4072_v28  ;;  %v5507_v22 = vld [vmem:[#allocation2 + $0x6d4] sm:$0xf0]  ;;  %v4520_v26 = vld [vmem:[#allocation2 + $0x5c8] sm:$0xf] }
 0x489   :  { %v5475_v27 = vld [vmem:[#allocation2 + $0x5d4] sm:$0xf0]  ;;  %v4776_v28 = vld [vmem:[#allocation2 + $0x7c8] sm:$0xf] }
 0x48a   :  { %2541 = vmatpush.bf16.msrb.mxu2 %v3881_v42  ;;  %2567 = vmatpush.bf16.msra.mxu0 %v4137_v43  ;;  %v3945_v42 = vor.u32 %v5331_v33, %v3944_v32  ;;  %v4201_v43 = vor.u32 %v5395_v35, %v4200_v34  ;;  %v5539_v29 = vld [vmem:[#allocation2 + $0x7d4] sm:$0xf0]  ;;  %v4376_v32 = vld [vmem:[#allocation2 + $0x4a8] sm:$0xf] }
 0x48b   :  { %v5439_v33 = vld [vmem:[#allocation2 + $0x4b4] sm:$0xf0]  ;;  %v4632_v34 = vld [vmem:[#allocation2 + $0x6a8] sm:$0xf] }
 0x48c   :  { %2554 = vmatpush.bf16.msrb.mxu3 %v4009_v48  ;;  %2580 = vmatpush.bf16.msra.mxu1 %v4265_v25  ;;  %v3801_v48 = vor.u32 %v5295_v39, %v3800_v38  ;;  %v4057_v25 = vor.u32 %v5359_v41, %v4056_v40  ;;  %v5503_v35 = vld [vmem:[#allocation2 + $0x6b4] sm:$0xf0]  ;;  %v4504_v38 = vld [vmem:[#allocation2 + $0x5a8] sm:$0xf] }
 0x48d   :  { %v5471_v39 = vld [vmem:[#allocation2 + $0x5b4] sm:$0xf0]  ;;  %v4760_v40 = vld [vmem:[#allocation2 + $0x7a8] sm:$0xf] }
 0x48e   :  { %2542 = vmatpush.bf16.msrb.mxu2 %v3865_v58  ;;  %2568 = vmatpush.bf16.msra.mxu0 %v4121_v61  ;;  %v4408_v58 = vld [vmem:[#allocation2 + $0x4e8] sm:$0xf]  ;;  %v5447_v61 = vld [vmem:[#allocation2 + $0x4f4] sm:$0xf0] }
 0x48f   :  { %v5535_v41 = vld [vmem:[#allocation2 + $0x7b4] sm:$0xf0]  ;;  %v4488_v50 = vld [vmem:[#allocation2 + $0x588] sm:$0xf] }
 0x490   :  { %2555 = vmatpush.bf16.msrb.mxu3 %v3993_v4  ;;  %2581 = vmatpush.bf16.msra.mxu1 %v4249_v5  ;;  %v3912_v4 = vld [vmem:[#allocation2 + $0x108] sm:$0xf]  ;;  %v5323_v5 = vld [vmem:[#allocation2 + $0x114] sm:$0xf0] }
 0x491   :  { %v5435_v45 = vld [vmem:[#allocation2 + $0x494] sm:$0xf0]  ;;  %v4744_v55 = vld [vmem:[#allocation2 + $0x788] sm:$0xf] }
 0x492   :  { %2543 = vmatpush.bf16.msrb.mxu2 %v3849_v11  ;;  %2569 = vmatpush.bf16.msra.mxu0 %v4105_v12  ;;  %v4536_v11 = vld [vmem:[#allocation2 + $0x5e8] sm:$0xf]  ;;  %v4409_v12 = vor.u32 %v5447_v61, %v4408_v58  ;;  %v5499_v47 = vld [vmem:[#allocation2 + $0x694] sm:$0xf0]  ;;  %v4361_v58 = vor.u32 %v5435_v45, %v4360_v44 }
 0x493   :  { %v5467_v51 = vld [vmem:[#allocation2 + $0x594] sm:$0xf0]  ;;  %v4617_v61 = vor.u32 %v5499_v47, %v4616_v46  ;;  %v4600_v1 = vld [vmem:[#allocation2 + $0x668] sm:$0xf]  ;;  %v5381_v46 = vld [vmem:[#allocation2 + $0x2ec] sm:$0xf] }
 0x494   :  { %2556 = vmatpush.bf16.msrb.mxu3 %v3977_v17  ;;  %2582 = vmatpush.bf16.msra.mxu1 %v4233_v18  ;;  %v3913_v17 = vor.u32 %v5323_v5, %v3912_v4  ;;  %v4169_v18 = vor.u32 %v5387_v7, %v4168_v6  ;;  %v5531_v57 = vld [vmem:[#allocation2 + $0x794] sm:$0xf0]  ;;  %v4489_v4 = vor.u32 %v5467_v51, %v4488_v50  ;;  %v4472_v6 = vld [vmem:[#allocation2 + $0x568] sm:$0xf]  ;;  %v4154_v47 = vld [vmem:[#allocation2 + $0x2f8] sm:$0xf0] }
 0x495   :  { %v5495_v3 = vld [vmem:[#allocation2 + $0x674] sm:$0xf0]  ;;  %v4745_v5 = vor.u32 %v5531_v57, %v4744_v55  ;;  %v4680_v50 = vld [vmem:[#allocation2 + $0x708] sm:$0xf] }
 0x496   :  { %2544 = vmatpush.bf16.msrb.mxu2 %v3833_v23  ;;  %2570 = vmatpush.bf16.msra.mxu0 %v4089_v24  ;;  %v4537_v23 = vor.u32 %v5479_v14, %v4536_v11  ;;  %v4793_v24 = vor.u32 %v5543_v16, %v4792_v15  ;;  %v5463_v7 = vld [vmem:[#allocation2 + $0x574] sm:$0xf0]  ;;  %v4584_v15 = vld [vmem:[#allocation2 + $0x648] sm:$0xf] }
 0x497   :  { %v5427_v14 = vld [vmem:[#allocation2 + $0x454] sm:$0xf0] }
 0x498   :  { %2557 = vmatpush.bf16.msrb.mxu3 %v3961_v30  ;;  %2583 = vmatpush.bf16.msra.mxu1 %v4217_v31  ;;  %v4393_v30 = vor.u32 %v5443_v20, %v4392_v19  ;;  %v4649_v31 = vor.u32 %v5507_v22, %v4648_v21  ;;  %v5491_v16 = vld [vmem:[#allocation2 + $0x654] sm:$0xf0]  ;;  %v4456_v19 = vld [vmem:[#allocation2 + $0x548] sm:$0xf] }
 0x499   :  { %v5459_v20 = vld [vmem:[#allocation2 + $0x554] sm:$0xf0]  ;;  %v4712_v21 = vld [vmem:[#allocation2 + $0x748] sm:$0xf] }
 0x49a   :  { %2545 = vmatpush.bf16.msrb.mxu2 %v3817_v36  ;;  %2571 = vmatpush.bf16.msra.mxu0 %v4073_v37  ;;  %v4521_v36 = vor.u32 %v5475_v27, %v4520_v26  ;;  %v4777_v37 = vor.u32 %v5539_v29, %v4776_v28  ;;  %v5523_v22 = vld [vmem:[#allocation2 + $0x754] sm:$0xf0]  ;;  %v4312_v26 = vld [vmem:[#allocation2 + $0x428] sm:$0xf] }
 0x49b   :  { %v5423_v27 = vld [vmem:[#allocation2 + $0x434] sm:$0xf0]  ;;  %v4568_v28 = vld [vmem:[#allocation2 + $0x628] sm:$0xf] }
 0x49c   :  { %2558 = vmatpush.bf16.msrb.mxu3 %v3945_v42  ;;  %2584 = vmatpush.bf16.msra.mxu1 %v4201_v43  ;;  %v4377_v42 = vor.u32 %v5439_v33, %v4376_v32  ;;  %v4633_v43 = vor.u32 %v5503_v35, %v4632_v34  ;;  %v5487_v29 = vld [vmem:[#allocation2 + $0x634] sm:$0xf0]  ;;  %v4440_v32 = vld [vmem:[#allocation2 + $0x528] sm:$0xf] }
 0x49d   :  { %v5455_v33 = vld [vmem:[#allocation2 + $0x534] sm:$0xf0]  ;;  %v4696_v34 = vld [vmem:[#allocation2 + $0x728] sm:$0xf] }
 0x49e   :  { %2546 = vmatpush.bf16.msrb.mxu2 %v3801_v48  ;;  %2572 = vmatpush.bf16.msra.mxu0 %v4057_v25  ;;  %v4505_v48 = vor.u32 %v5471_v39, %v4504_v38  ;;  %v4761_v25 = vor.u32 %v5535_v41, %v4760_v40  ;;  %v5519_v35 = vld [vmem:[#allocation2 + $0x734] sm:$0xf0]  ;;  %v4296_v38 = vld [vmem:[#allocation2 + $0x408] sm:$0xf]  ;;  %v4441_v44 = vor.u32 %v5455_v33, %v4440_v32  ;;  %v5305_v33 = vld [vmem:[#allocation2 + $0x8c] sm:$0xf] }
 0x49f   :  { %v5419_v39 = vld [vmem:[#allocation2 + $0x414] sm:$0xf0]  ;;  %v4552_v40 = vld [vmem:[#allocation2 + $0x608] sm:$0xf]  ;;  %v4697_v45 = vor.u32 %v5519_v35, %v4696_v34  ;;  %v6158_v34 = vld [vmem:[%s6351_s12] sm:$0xf] }
 0x4a0   :  { %2559 = vmatpush.bf16.msrb.mxu3 %v3929_v62  ;;  %2585 = vmatpush.bf16.msra.mxu1 %v4185_v63  ;;  %v4344_v62 = vld [vmem:[#allocation2 + $0x468] sm:$0xf]  ;;  %v5431_v63 = vld [vmem:[#allocation2 + $0x474] sm:$0xf0]  ;;  %v4297_v55 = vor.u32 %v5419_v39, %v4296_v38  ;;  %v3850_v35 = vld [vmem:[#allocation2 + $0x98] sm:$0xf0] }
 0x4a1   :  { %v4345_v11 = vor.u32 %v5431_v63, %v4344_v62  ;;  %v5483_v41 = vld [vmem:[#allocation2 + $0x614] sm:$0xf0]  ;;  %v4157_v62 = vor.u32 %v5381_v46, %v4154_v47  ;;  %v4026_v63 = vld [vmem:[#allocation2 + $0x1f8] sm:$0xf0]  ;;  %v3853_v46 = vor.u32 %v5305_v33, %v3850_v35  ;;  %v5325_v33 = vld [vmem:[#allocation2 + $0x12c] sm:$0xf] }
 0x4a2   :  { %2547 = vmatpush.bf16.msrb.mxu2 %v3785_v9  ;;  %2573 = vmatpush.bf16.msra.mxu0 %v4041_v10  ;;  %v4728_v9 = vld [vmem:[#allocation2 + $0x768] sm:$0xf]  ;;  %v5527_v10 = vld [vmem:[#allocation2 + $0x774] sm:$0xf0]  ;;  %v4553_v57 = vor.u32 %v5483_v41, %v4552_v40  ;;  %v5337_v41 = vld [vmem:[#allocation2 + $0x18c] sm:$0xf] }
 0x4a3   :  { %v5515_v51 = vld [vmem:[#allocation2 + $0x714] sm:$0xf0] }
 0x4a4   :  { %2560 = vmatpush.bf16.msrb.mxu3 %v3913_v17  ;;  %2586 = vmatpush.bf16.msra.mxu1 %v4169_v18  ;;  %v4473_v17 = vor.u32 %v5463_v7, %v4472_v6  ;;  %v4729_v18 = vor.u32 %v5527_v10, %v4728_v9  ;;  %v5313_v6 = vld [vmem:[#allocation2 + $0xcc] sm:$0xf]  ;;  %v3882_v7 = vld [vmem:[#allocation2 + $0xd8] sm:$0xf0] }
 0x4a5   :  { %2548 = vmatmul.bf16.vlgmr.msrb.gmra.mxu2 %v6080_v52  ;;  %2574 = vmatmul.bf16.vlgmr.msra.gmra.mxu0 %v6082_v53  ;;  %v5377_v9 = vld [vmem:[#allocation2 + $0x2cc] sm:$0xf]  ;;  %v4138_v10 = vld [vmem:[#allocation2 + $0x2d8] sm:$0xf0] }
 0x4a6   :  { %2592 = vmatpush.bf16.msra.mxu2 %v4409_v12  ;;  %2618 = vmatpush.bf16.msrb.mxu0 %v4665_v13  ;;  %v4601_v12 = vor.u32 %v5495_v3, %v4600_v1  ;;  %v4328_v13 = vld [vmem:[#allocation2 + $0x448] sm:$0xf]  ;;  %v5413_v1 = vld [vmem:[#allocation2 + $0x3ec] sm:$0xf]  ;;  %v4282_v3 = vld [vmem:[#allocation2 + $0x3f8] sm:$0xf0] }
 0x4a7   :  { %4842 = vmatmul.msk.bf16.vlgmr.msrb.gmra.mxu3 %vm6087_vm5, %v6095_v2  ;;  %4847 = vmatmul.msk.bf16.vlgmr.msra.gmra.mxu1 %vm6087_vm5, %v6091_v60 }
 0x4a8   :  { %2605 = vmatpush.bf16.msra.mxu3 %v4537_v23  ;;  %2631 = vmatpush.bf16.msrb.mxu1 %v4793_v24  ;;  %v4329_v23 = vor.u32 %v5427_v14, %v4328_v13  ;;  %v4585_v24 = vor.u32 %v5491_v16, %v4584_v15  ;;  %v5345_v13 = vld [vmem:[#allocation2 + $0x1cc] sm:$0xf]  ;;  %v4010_v14 = vld [vmem:[#allocation2 + $0x1d8] sm:$0xf0] }
 0x4a9   :  { %v5409_v15 = vld [vmem:[#allocation2 + $0x3cc] sm:$0xf]  ;;  %v4266_v16 = vld [vmem:[#allocation2 + $0x3d8] sm:$0xf0] }
 0x4aa   :  { %2593 = vmatpush.bf16.msra.mxu2 %v4393_v30  ;;  %2619 = vmatpush.bf16.msrb.mxu0 %v4649_v31  ;;  %v4457_v30 = vor.u32 %v5459_v20, %v4456_v19  ;;  %v4713_v31 = vor.u32 %v5523_v22, %v4712_v21  ;;  %v5309_v19 = vld [vmem:[#allocation2 + $0xac] sm:$0xf]  ;;  %v3866_v20 = vld [vmem:[#allocation2 + $0xb8] sm:$0xf0] }
 0x4ab   :  { %v5373_v21 = vld [vmem:[#allocation2 + $0x2ac] sm:$0xf]  ;;  %v4122_v22 = vld [vmem:[#allocation2 + $0x2b8] sm:$0xf0] }
 0x4ac   :  { %2606 = vmatpush.bf16.msra.mxu3 %v4521_v36  ;;  %2632 = vmatpush.bf16.msrb.mxu1 %v4777_v37  ;;  %v4313_v36 = vor.u32 %v5423_v27, %v4312_v26  ;;  %v4569_v37 = vor.u32 %v5487_v29, %v4568_v28  ;;  %v5341_v26 = vld [vmem:[#allocation2 + $0x1ac] sm:$0xf]  ;;  %v3994_v27 = vld [vmem:[#allocation2 + $0x1b8] sm:$0xf0] }
 0x4ad   :  { %v5405_v28 = vld [vmem:[#allocation2 + $0x3ac] sm:$0xf]  ;;  %v4250_v29 = vld [vmem:[#allocation2 + $0x3b8] sm:$0xf0]  ;;  %v3997_v38 = vor.u32 %v5341_v26, %v3994_v27 }
 0x4ae   :  { %2594 = vmatpush.bf16.msra.mxu2 %v4377_v42  ;;  %2620 = vmatpush.bf16.msrb.mxu0 %v4633_v43  ;;  %v5317_v42 = vld [vmem:[#allocation2 + $0xec] sm:$0xf]  ;;  %v3898_v43 = vld [vmem:[#allocation2 + $0xf8] sm:$0xf0]  ;;  %v4253_v39 = vor.u32 %v5405_v28, %v4250_v29 }
 0x4af   :  { %v3802_v26 = vld [vmem:[#allocation2 + $0x38] sm:$0xf0]  ;;  %v5357_v27 = vld [vmem:[#allocation2 + $0x22c] sm:$0xf] }
 0x4b0   :  { %2607 = vmatpush.bf16.msra.mxu3 %v4505_v48  ;;  %2633 = vmatpush.bf16.msrb.mxu1 %v4761_v25  ;;  %v4424_v48 = vld [vmem:[#allocation2 + $0x508] sm:$0xf]  ;;  %v5451_v25 = vld [vmem:[#allocation2 + $0x514] sm:$0xf0]  ;;  %v4058_v28 = vld [vmem:[#allocation2 + $0x238] sm:$0xf0] }
 0x4b2   :  { %2595 = vmatpush.bf16.msra.mxu2 %v4361_v58  ;;  %2621 = vmatpush.bf16.msrb.mxu0 %v4617_v61  ;;  %v5349_v58 = vld [vmem:[#allocation2 + $0x1ec] sm:$0xf]  ;;  %v3901_v61 = vor.u32 %v5317_v42, %v3898_v43  ;;  %v3978_v42 = vld [vmem:[#allocation2 + $0x198] sm:$0xf0] }
 0x4b3   :  { %v5401_v43 = vld [vmem:[#allocation2 + $0x38c] sm:$0xf] }
 0x4b4   :  { %2608 = vmatpush.bf16.msra.mxu3 %v4489_v4  ;;  %2634 = vmatpush.bf16.msrb.mxu1 %v4745_v5  ;;  %v4425_v4 = vor.u32 %v5451_v25, %v4424_v48  ;;  %v4681_v5 = vor.u32 %v5515_v51, %v4680_v50  ;;  %v5301_v48 = vld [vmem:[#allocation2 + $0x6c] sm:$0xf]  ;;  %v3834_v25 = vld [vmem:[#allocation2 + $0x78] sm:$0xf0] }
 0x4b5   :  { %v5365_v50 = vld [vmem:[#allocation2 + $0x26c] sm:$0xf]  ;;  %v4090_v51 = vld [vmem:[#allocation2 + $0x278] sm:$0xf0] }
 0x4b6   :  { %2596 = vmatpush.bf16.msra.mxu2 %v4345_v11  ;;  %2622 = vmatpush.bf16.msrb.mxu0 %v4601_v12  ;;  %v4029_v11 = vor.u32 %v5349_v58, %v4026_v63  ;;  %v4285_v12 = vor.u32 %v5413_v1, %v4282_v3  ;;  %v3962_v63 = vld [vmem:[#allocation2 + $0x178] sm:$0xf0]  ;;  %v5397_v1 = vld [vmem:[#allocation2 + $0x36c] sm:$0xf] }
 0x4b7   :  { %v4218_v3 = vld [vmem:[#allocation2 + $0x378] sm:$0xf0] }
 0x4b8   :  { %2609 = vmatpush.bf16.msra.mxu3 %v4473_v17  ;;  %2635 = vmatpush.bf16.msrb.mxu1 %v4729_v18  ;;  %v3885_v17 = vor.u32 %v5313_v6, %v3882_v7  ;;  %v4141_v18 = vor.u32 %v5377_v9, %v4138_v10  ;;  %v5297_v7 = vld [vmem:[#allocation2 + $0x4c] sm:$0xf]  ;;  %v3818_v10 = vld [vmem:[#allocation2 + $0x58] sm:$0xf0] }
 0x4ba   :  { %2597 = vmatpush.bf16.msra.mxu2 %v4329_v23  ;;  %2623 = vmatpush.bf16.msrb.mxu0 %v4585_v24  ;;  %v4013_v23 = vor.u32 %v5345_v13, %v4010_v14  ;;  %v4269_v24 = vor.u32 %v5409_v15, %v4266_v16  ;;  %v4221_v15 = vor.u32 %v5397_v1, %v4218_v3  ;;  %v5477_v3 = vld [vmem:[#allocation2 + $0x5ec] sm:$0xf] }
 0x4bc   :  { %2610 = vmatpush.bf16.msra.mxu3 %v4457_v30  ;;  %2636 = vmatpush.bf16.msrb.mxu1 %v4713_v31  ;;  %v3869_v30 = vor.u32 %v5309_v19, %v3866_v20  ;;  %v4125_v31 = vor.u32 %v5373_v21, %v4122_v22  ;;  %v5393_v19 = vld [vmem:[#allocation2 + $0x34c] sm:$0xf]  ;;  %v4202_v20 = vld [vmem:[#allocation2 + $0x358] sm:$0xf0]  ;;  %v3821_v22 = vor.u32 %v5297_v7, %v3818_v10 }
 0x4bd   :  { %v5541_v7 = vld [vmem:[#allocation2 + $0x7ec] sm:$0xf] }
 0x4be   :  { %2598 = vmatpush.bf16.msra.mxu2 %v4313_v36  ;;  %2624 = vmatpush.bf16.msrb.mxu0 %v4569_v37  ;;  %v5369_v36 = vld [vmem:[#allocation2 + $0x28c] sm:$0xf]  ;;  %v4106_v37 = vld [vmem:[#allocation2 + $0x298] sm:$0xf0] }
 0x4bf   :  { %v4109_v47 = vor.u32 %v5369_v36, %v4106_v37  ;;  %v3930_v36 = vld [vmem:[#allocation2 + $0x138] sm:$0xf0]  ;;  %v5389_v37 = vld [vmem:[#allocation2 + $0x32c] sm:$0xf] }
 0x4c0   :  { %2611 = vmatpush.bf16.msra.mxu3 %v4441_v44  ;;  %2637 = vmatpush.bf16.msrb.mxu1 %v4697_v45  ;;  %v4234_v44 = vld [vmem:[#allocation2 + $0x398] sm:$0xf0]  ;;  %v1044_v45 = vperm.slane %v6158_v34, 0 }
 0x4c2   :  { %2599 = vmatpush.bf16.msra.mxu2 %v4297_v55  ;;  %2625 = vmatpush.bf16.msrb.mxu0 %v4553_v57  ;;  %v2367_v32 = vpop.f32.mrf.mxu0  ;;  %v3981_v55 = vor.u32 %v5337_v41, %v3978_v42  ;;  %v4237_v57 = vor.u32 %v5401_v43, %v4234_v44  ;;  %v5289_v41 = vld [vmem:[#allocation2 + $0xc] sm:$0xf]  ;;  %v3786_v42 = vld [vmem:[#allocation2 + $0x18] sm:$0xf0] }
 0x4c3   :  { %v5353_v43 = vld [vmem:[#allocation2 + $0x20c] sm:$0xf] }
 0x4c4   :  { %2612 = vmatpush.bf16.msra.mxu3 %v4425_v4  ;;  %2638 = vmatpush.bf16.msrb.mxu1 %v4681_v5  ;;  %v2380_v40 = vpop.f32.mrf.mxu1  ;;  %v3837_v4 = vor.u32 %v5301_v48, %v3834_v25  ;;  %v4093_v5 = vor.u32 %v5365_v50, %v4090_v51  ;;  %v4410_v48 = vld [vmem:[#allocation2 + $0x4f8] sm:$0xf0]  ;;  %v5509_v51 = vld [vmem:[#allocation2 + $0x6ec] sm:$0xf] }
 0x4c5   :  { %2600 = vmatmul.bf16.vlgmr.msra.gmra.mxu2 %v6107_v49  ;;  %2626 = vmatmul.bf16.vlgmr.msrb.gmra.mxu0 %v6109_v54 }
 0x4c6   :  { %2644 = vmatpush.bf16.msrb.mxu2 %v3901_v61  ;;  %2670 = vmatpush.bf16.msra.mxu0 %v4157_v62  ;;  %v5333_v61 = vld [vmem:[#allocation2 + $0x16c] sm:$0xf] }
 0x4c7   :  { %4852 = vmatmul.msk.bf16.vlgmr.msra.gmra.mxu3 %vm6087_vm5, %v6115_v0  ;;  %4857 = vmatmul.msk.bf16.vlgmr.msrb.gmra.mxu1 %vm6087_vm5, %v6112_v59  ;;  %v3965_v14 = vor.u32 %v5333_v61, %v3962_v63  ;;  %v5385_v61 = vld [vmem:[#allocation2 + $0x30c] sm:$0xf]  ;;  %v3789_v63 = vor.u32 %v5289_v41, %v3786_v42 }
 0x4c8   :  { %2657 = vmatpush.bf16.msrb.mxu3 %v4029_v11  ;;  %2683 = vmatpush.bf16.msra.mxu1 %v4285_v12  ;;  %v2341_v58 = vpop.f32.mrf.mxu2  ;;  %v5361_v11 = vld [vmem:[#allocation2 + $0x24c] sm:$0xf]  ;;  %v4074_v12 = vld [vmem:[#allocation2 + $0x258] sm:$0xf0] }
 0x4c9   :  { %v2342_v62 = vadd.f32 %v2341_v58, %v1044_v45  ;;  %v3914_v58 = vld [vmem:[#allocation2 + $0x118] sm:$0xf0] }
 0x4ca   :  { %2645 = vmatpush.bf16.msrb.mxu2 %v3885_v17  ;;  %2671 = vmatpush.bf16.msra.mxu0 %v4141_v18  ;;  %v2369_v6 = vpop.f32.mrf.mxu0  ;;  %v2354_v9 = vpop.f32.mrf.mxu3  ;;  %v5329_v17 = vld [vmem:[#allocation2 + $0x14c] sm:$0xf]  ;;  %v3946_v18 = vld [vmem:[#allocation2 + $0x158] sm:$0xf0] }
 0x4cb   :  { %v2355_v13 = vadd.f32 %v2354_v9, %v2342_v62  ;;  %v3949_v29 = vor.u32 %v5329_v17, %v3946_v18  ;;  %v4170_v62 = vld [vmem:[#allocation2 + $0x318] sm:$0xf0] }
 0x4cc   :  { %2658 = vmatpush.bf16.msrb.mxu3 %v4013_v23  ;;  %2684 = vmatpush.bf16.msra.mxu1 %v4269_v24  ;;  %v2382_v16 = vpop.f32.mrf.mxu1  ;;  %v4077_v23 = vor.u32 %v5361_v11, %v4074_v12  ;;  %v5293_v24 = vld [vmem:[#allocation2 + $0x2c] sm:$0xf]  ;;  %v4538_v6 = vld [vmem:[#allocation2 + $0x5f8] sm:$0xf0]  ;;  %v4173_v11 = vor.u32 %v5385_v61, %v4170_v62 }
 0x4cd   :  { %v2368_v21 = vadd.f32 %v2367_v32, %v2355_v13  ;;  %v3805_v32 = vor.u32 %v5293_v24, %v3802_v26  ;;  %v4794_v9 = vld [vmem:[#allocation2 + $0x7f8] sm:$0xf0]  ;;  %v5441_v13 = vld [vmem:[#allocation2 + $0x4cc] sm:$0xf]  ;;  %v4541_v17 = vor.u32 %v5477_v3, %v4538_v6 }
 0x4ce   :  { %2646 = vmatpush.bf16.msrb.mxu2 %v3869_v30  ;;  %2672 = vmatpush.bf16.msra.mxu0 %v4125_v31  ;;  %v4205_v30 = vor.u32 %v5393_v19, %v4202_v20  ;;  %v4650_v16 = vld [vmem:[#allocation2 + $0x6d8] sm:$0xf0]  ;;  %v4797_v18 = vor.u32 %v5541_v7, %v4794_v9  ;;  %v5473_v19 = vld [vmem:[#allocation2 + $0x5cc] sm:$0xf] }
 0x4cf   :  { %v6161_v35 = vadd.f32 %v2380_v40, %v2368_v21  ;;  %v3933_v40 = vor.u32 %v5325_v33, %v3930_v36  ;;  %v4778_v24 = vld [vmem:[#allocation2 + $0x7d8] sm:$0xf0]  ;;  %v5429_v62 = vld [vmem:[#allocation2 + $0x46c] sm:$0xf] }
 0x4d0   :  { %2659 = vmatpush.bf16.msrb.mxu3 %v3997_v38  ;;  %2685 = vmatpush.bf16.msra.mxu1 %v4253_v39  ;;  %v2343_v31 = vpop.f32.mrf.mxu2  ;;  %v4186_v38 = vld [vmem:[#allocation2 + $0x338] sm:$0xf0]  ;;  %v4061_v39 = vor.u32 %v5357_v27, %v4058_v28  ;;  %v5461_v7 = vld [vmem:[#allocation2 + $0x56c] sm:$0xf] }
 0x4d1   :  { %v4189_v25 = vor.u32 %v5389_v37, %v4186_v38  ;;  %v5501_v31 = vld [vmem:[#allocation2 + $0x6ac] sm:$0xf]  ;;  %v4634_v33 = vld [vmem:[#allocation2 + $0x6b8] sm:$0xf0] }
 0x4d2   :  { %2647 = vmatpush.bf16.msrb.mxu2 %v3853_v46  ;;  %2673 = vmatpush.bf16.msra.mxu0 %v4109_v47  ;;  %v2356_v44 = vpop.f32.mrf.mxu3  ;;  %v6163_v45 = vpop.f32.mrf.mxu0  ;;  %v4042_v46 = vld [vmem:[#allocation2 + $0x218] sm:$0xf0]  ;;  %v5445_v47 = vld [vmem:[#allocation2 + $0x4ec] sm:$0xf]  ;;  %v4637_v41 = vor.u32 %v5501_v31, %v4634_v33 }
 0x4d3   :  { %v4045_v1 = vor.u32 %v5353_v43, %v4042_v46  ;;  %v5469_v38 = vld [vmem:[#allocation2 + $0x5ac] sm:$0xf]  ;;  %v4362_v44 = vld [vmem:[#allocation2 + $0x498] sm:$0xf0] }
 0x4d4   :  { %2660 = vmatpush.bf16.msrb.mxu3 %v3981_v55  ;;  %2686 = vmatpush.bf16.msra.mxu1 %v4237_v57  ;;  %v6165_v50 = vpop.f32.mrf.mxu1  ;;  %v4666_v55 = vld [vmem:[#allocation2 + $0x6f8] sm:$0xf0]  ;;  %v5321_v57 = vld [vmem:[#allocation2 + $0x10c] sm:$0xf] }
 0x4d5   :  { %v3917_v10 = vor.u32 %v5321_v57, %v3914_v58  ;;  %v5433_v43 = vld [vmem:[#allocation2 + $0x48c] sm:$0xf]  ;;  %v4602_v3 = vld [vmem:[#allocation2 + $0x678] sm:$0xf0] }
 0x4d6   :  { %2648 = vmatpush.bf16.msrb.mxu2 %v3837_v4  ;;  %2674 = vmatpush.bf16.msra.mxu0 %v4093_v5  ;;  %v4413_v4 = vor.u32 %v5445_v47, %v4410_v48  ;;  %v4669_v5 = vor.u32 %v5509_v51, %v4666_v55  ;;  %v5497_v46 = vld [vmem:[#allocation2 + $0x68c] sm:$0xf]  ;;  %v4618_v47 = vld [vmem:[#allocation2 + $0x698] sm:$0xf0]  ;;  %v4365_v58 = vor.u32 %v5433_v43, %v4362_v44 }
 0x4d7   :  { %v4490_v51 = vld [vmem:[#allocation2 + $0x598] sm:$0xf0]  ;;  %v4621_v61 = vor.u32 %v5497_v46, %v4618_v47  ;;  %v5421_v33 = vld [vmem:[#allocation2 + $0x42c] sm:$0xf] }
 0x4d8   :  { %2661 = vmatpush.bf16.msrb.mxu3 %v3965_v14  ;;  %2687 = vmatpush.bf16.msra.mxu1 %v4221_v15  ;;  %v6167_v12 = vpop.f32.mrf.mxu2  ;;  %v4394_v14 = vld [vmem:[#allocation2 + $0x4d8] sm:$0xf0]  ;;  %v5505_v15 = vld [vmem:[#allocation2 + $0x6cc] sm:$0xf] }
 0x4d9   :  { %v4397_v26 = vor.u32 %v5441_v13, %v4394_v14  ;;  %v4653_v27 = vor.u32 %v5505_v15, %v4650_v16  ;;  %v4746_v55 = vld [vmem:[#allocation2 + $0x798] sm:$0xf0]  ;;  %v5425_v15 = vld [vmem:[#allocation2 + $0x44c] sm:$0xf]  ;;  %v2394_v56 = vadd.f32 %v6167_v12, %v6161_v35  ;;  %v5056_v35 = vld [vmem:[#allocation5 + $0x160] sm:$0xf] }
 0x4da   :  { %2649 = vmatpush.bf16.msrb.mxu2 %v3821_v22  ;;  %2675 = vmatpush.bf16.msra.mxu0 %v4077_v23  ;;  %v6169_v20 = vpop.f32.mrf.mxu3  ;;  %v2421_v21 = vpop.f32.mrf.mxu0  ;;  %v4522_v22 = vld [vmem:[#allocation2 + $0x5d8] sm:$0xf0]  ;;  %v5537_v23 = vld [vmem:[#allocation2 + $0x7cc] sm:$0xf]  ;;  %v5589_v12 = vld [vmem:[#allocation5 + $0x164] sm:$0xf0] }
 0x4db   :  { %v4525_v36 = vor.u32 %v5473_v19, %v4522_v22  ;;  %v4781_v37 = vor.u32 %v5537_v23, %v4778_v24  ;;  %v4474_v9 = vld [vmem:[#allocation2 + $0x578] sm:$0xf0]  ;;  %v5457_v23 = vld [vmem:[#allocation2 + $0x54c] sm:$0xf] }
 0x4dc   :  { %2662 = vmatpush.bf16.msrb.mxu3 %v3949_v29  ;;  %2688 = vmatpush.bf16.msra.mxu1 %v4205_v30  ;;  %v2434_v28 = vpop.f32.mrf.mxu1  ;;  %v5437_v29 = vld [vmem:[#allocation2 + $0x4ac] sm:$0xf]  ;;  %v4378_v30 = vld [vmem:[#allocation2 + $0x4b8] sm:$0xf0]  ;;  %v4477_v21 = vor.u32 %v5461_v7, %v4474_v9  ;;  %v1045_v7 = vperm.slane %v6158_v34, 1 }
 0x4dd   :  { %v4586_v19 = vld [vmem:[#allocation2 + $0x658] sm:$0xf0]  ;;  %v5417_v47 = vld [vmem:[#allocation2 + $0x40c] sm:$0xf] }
 0x4de   :  { %2650 = vmatpush.bf16.msrb.mxu2 %v3805_v32  ;;  %2676 = vmatpush.bf16.msra.mxu0 %v4061_v39  ;;  %v4506_v32 = vld [vmem:[#allocation2 + $0x5b8] sm:$0xf0] }
 0x4df   :  { %v4762_v39 = vld [vmem:[#allocation2 + $0x7b8] sm:$0xf0]  ;;  %v4509_v48 = vor.u32 %v5469_v38, %v4506_v32 }
 0x4e0   :  { %2663 = vmatpush.bf16.msrb.mxu3 %v3933_v40  ;;  %2689 = vmatpush.bf16.msra.mxu1 %v4189_v25  ;;  %v2395_v42 = vpop.f32.mrf.mxu2  ;;  %v5465_v40 = vld [vmem:[#allocation2 + $0x58c] sm:$0xf]  ;;  %v4714_v28 = vld [vmem:[#allocation2 + $0x758] sm:$0xf0] }
 0x4e1   :  { %v4570_v38 = vld [vmem:[#allocation2 + $0x638] sm:$0xf0]  ;;  %v5517_v42 = vld [vmem:[#allocation2 + $0x72c] sm:$0xf] }
 0x4e2   :  { %2651 = vmatpush.bf16.msrb.mxu2 %v3789_v63  ;;  %2677 = vmatpush.bf16.msra.mxu0 %v4045_v1  ;;  %v2408_v25 = vpop.f32.mrf.mxu3  ;;  %v6179_v57 = vpop.f32.mrf.mxu0  ;;  %v4346_v63 = vld [vmem:[#allocation2 + $0x478] sm:$0xf0]  ;;  %v5493_v1 = vld [vmem:[#allocation2 + $0x66c] sm:$0xf] }
 0x4e3   :  { %v4349_v13 = vor.u32 %v5429_v62, %v4346_v63  ;;  %v4605_v14 = vor.u32 %v5493_v1, %v4602_v3  ;;  %v4698_v43 = vld [vmem:[#allocation2 + $0x738] sm:$0xf0]  ;;  %v5513_v1 = vld [vmem:[#allocation2 + $0x70c] sm:$0xf] }
 0x4e4   :  { %2664 = vmatpush.bf16.msrb.mxu3 %v3917_v10  ;;  %2690 = vmatpush.bf16.msra.mxu1 %v4173_v11  ;;  %v5525_v10 = vld [vmem:[#allocation2 + $0x76c] sm:$0xf]  ;;  %v4730_v11 = vld [vmem:[#allocation2 + $0x778] sm:$0xf0] }
 0x4e5   :  { %2652 = vmatmul.bf16.vlgmr.msrb.gmra.mxu2 %v6080_v52  ;;  %2678 = vmatmul.bf16.vlgmr.msra.gmra.mxu0 %v6082_v53  ;;  %v5533_v52 = vld [vmem:[#allocation2 + $0x7ac] sm:$0xf]  ;;  %v4381_v53 = vor.u32 %v5437_v29, %v4378_v30  ;;  %v4733_v22 = vor.u32 %v5525_v10, %v4730_v11  ;;  %v4554_v25 = vld [vmem:[#allocation2 + $0x618] sm:$0xf0]  ;;  %v5000_v10 = vld [vmem:[#allocation5 + $0xf0] sm:$0xf] }
 0x4e6   :  { %2696 = vmatpush.bf16.msra.mxu2 %v4413_v4  ;;  %2722 = vmatpush.bf16.msrb.mxu0 %v4669_v5  ;;  %v6181_v4 = vpop.f32.mrf.mxu1  ;;  %v4493_v5 = vor.u32 %v5465_v40, %v4490_v51  ;;  %v5481_v40 = vld [vmem:[#allocation2 + $0x60c] sm:$0xf]  ;;  %v4426_v63 = vld [vmem:[#allocation2 + $0x518] sm:$0xf0]  ;;  %v5575_v11 = vld [vmem:[#allocation5 + $0xf4] sm:$0xf0] }
 0x4e7   :  { %4862 = vmatmul.msk.bf16.vlgmr.msrb.gmra.mxu3 %vm6087_vm5, %v6095_v2  ;;  %4867 = vmatmul.msk.bf16.vlgmr.msra.gmra.mxu1 %vm6087_vm5, %v6091_v60  ;;  %v4765_v2 = vor.u32 %v5533_v52, %v4762_v39  ;;  %v5529_v60 = vld [vmem:[#allocation2 + $0x78c] sm:$0xf]  ;;  %v4682_v3 = vld [vmem:[#allocation2 + $0x718] sm:$0xf0] }
 0x4e8   :  { %2709 = vmatpush.bf16.msra.mxu3 %v4541_v17  ;;  %2735 = vmatpush.bf16.msrb.mxu1 %v4797_v18  ;;  %v4749_v6 = vor.u32 %v5529_v60, %v4746_v55  ;;  %v6183_v16 = vpop.f32.mrf.mxu2  ;;  %v4330_v17 = vld [vmem:[#allocation2 + $0x458] sm:$0xf0]  ;;  %v5489_v18 = vld [vmem:[#allocation2 + $0x64c] sm:$0xf]  ;;  %v4701_v60 = vor.u32 %v5517_v42, %v4698_v43  ;;  %v4936_v55 = vld [vmem:[#allocation5 + $0x70] sm:$0xf] }
 0x4e9   :  { %v4333_v30 = vor.u32 %v5425_v15, %v4330_v17  ;;  %v4589_v31 = vor.u32 %v5489_v18, %v4586_v19  ;;  %v4928_v15 = vld [vmem:[#allocation5 + $0x60] sm:$0xf]  ;;  %v5557_v17 = vld [vmem:[#allocation5 + $0x64] sm:$0xf0]  ;;  %v5001_v18 = vor.u32 %v5575_v11, %v5000_v10  ;;  %v2446_v19 = vadd.f32 %v6183_v16, %v1045_v7  ;;  %v4984_v16 = vld [vmem:[#allocation5 + $0xd0] sm:$0xf] }
 0x4ea   :  { %2697 = vmatpush.bf16.msra.mxu2 %v4397_v26  ;;  %2723 = vmatpush.bf16.msrb.mxu0 %v4653_v27  ;;  %v6185_v24 = vpop.f32.mrf.mxu3  ;;  %v4458_v26 = vld [vmem:[#allocation2 + $0x558] sm:$0xf0]  ;;  %v5521_v27 = vld [vmem:[#allocation2 + $0x74c] sm:$0xf]  ;;  %v2473_v29 = vpop.f32.mrf.mxu0  ;;  %v5587_v7 = vld [vmem:[#allocation5 + $0x154] sm:$0xf0] }
 0x4eb   :  { %v4461_v52 = vor.u32 %v5457_v23, %v4458_v26  ;;  %v4717_v39 = vor.u32 %v5521_v27, %v4714_v28  ;;  %v4929_v23 = vor.u32 %v5557_v17, %v4928_v15  ;;  %v4920_v26 = vld [vmem:[#allocation5 + $0x50] sm:$0xf]  ;;  %v5555_v27 = vld [vmem:[#allocation5 + $0x54] sm:$0xf0]  ;;  %v2459_v29 = vadd.f32 %v6185_v24, %v2446_v19  ;;  %v4976_v24 = vld [vmem:[#allocation5 + $0xc0] sm:$0xf] }
 0x4ec   :  { %2710 = vmatpush.bf16.msra.mxu3 %v4525_v36  ;;  %2736 = vmatpush.bf16.msrb.mxu1 %v4781_v37  ;;  %v4314_v36 = vld [vmem:[#allocation2 + $0x438] sm:$0xf0]  ;;  %v5485_v37 = vld [vmem:[#allocation2 + $0x62c] sm:$0xf] }
 0x4ed   :  { %v4317_v44 = vor.u32 %v5421_v33, %v4314_v36  ;;  %v4573_v46 = vor.u32 %v5485_v37, %v4570_v38  ;;  %v2472_v37 = vadd.f32 %v6179_v57, %v2459_v29  ;;  %v5569_v38 = vld [vmem:[#allocation5 + $0xc4] sm:$0xf0] }
 0x4ee   :  { %2698 = vmatpush.bf16.msra.mxu2 %v4381_v53  ;;  %2724 = vmatpush.bf16.msrb.mxu0 %v4637_v41  ;;  %v2486_v32 = vpop.f32.mrf.mxu1  ;;  %v5453_v53 = vld [vmem:[#allocation2 + $0x52c] sm:$0xf]  ;;  %v4442_v41 = vld [vmem:[#allocation2 + $0x538] sm:$0xf0] }
 0x4ef   :  { %v4445_v51 = vor.u32 %v5453_v53, %v4442_v41  ;;  %v5591_v53 = vld [vmem:[#allocation5 + $0x174] sm:$0xf0]  ;;  %v4977_v41 = vor.u32 %v5569_v38, %v4976_v24  ;;  %v2485_v43 = vadd.f32 %v6181_v4, %v2472_v37  ;;  %v4960_v4 = vld [vmem:[#allocation5 + $0xa0] sm:$0xf] }
 0x4f0   :  { %2711 = vmatpush.bf16.msra.mxu3 %v4509_v48  ;;  %2737 = vmatpush.bf16.msrb.mxu1 %v4765_v2  ;;  %v2447_v48 = vpop.f32.mrf.mxu2  ;;  %v4298_v2 = vld [vmem:[#allocation2 + $0x418] sm:$0xf0]  ;;  %v5583_v24 = vld [vmem:[#allocation5 + $0x134] sm:$0xf0] }
 0x4f1   :  { %v4896_v48 = vld [vmem:[#allocation5 + $0x20] sm:$0xf] }
 0x4f2   :  { %2699 = vmatpush.bf16.msra.mxu2 %v4365_v58  ;;  %2725 = vmatpush.bf16.msrb.mxu0 %v4621_v61  ;;  %v5559_v58 = vld [vmem:[#allocation5 + $0x74] sm:$0xf0]  ;;  %v5449_v61 = vld [vmem:[#allocation2 + $0x50c] sm:$0xf]  ;;  %v2460_v62 = vpop.f32.mrf.mxu3 }
 0x4f3   :  { %v4937_v9 = vor.u32 %v5559_v58, %v4936_v55  ;;  %v5057_v58 = vor.u32 %v5589_v12, %v5056_v35  ;;  %v5565_v62 = vld [vmem:[#allocation5 + $0xa4] sm:$0xf0]  ;;  %v5570_v35 = vld [vmem:[#allocation5 + $0xd4] sm:$0xf]  ;;  %v4986_v12 = vld [vmem:[#allocation5 + $0xd8] sm:$0xf0] }
 0x4f4   :  { %2712 = vmatpush.bf16.msra.mxu3 %v4493_v5  ;;  %2738 = vmatpush.bf16.msrb.mxu1 %v4749_v6  ;;  %v4301_v5 = vor.u32 %v5417_v47, %v4298_v2  ;;  %v4557_v6 = vor.u32 %v5481_v40, %v4554_v25  ;;  %v2407_v2 = vadd.f32 %v6169_v20, %v2394_v56  ;;  %v5549_v25 = vld [vmem:[#allocation5 + $0x24] sm:$0xf0]  ;;  %v5547_v20 = vld [vmem:[#allocation5 + $0x14] sm:$0xf0] }
 0x4f6   :  { %2700 = vmatpush.bf16.msra.mxu2 %v4349_v13  ;;  %2726 = vmatpush.bf16.msrb.mxu0 %v4605_v14  ;;  %v4429_v13 = vor.u32 %v5449_v61, %v4426_v63  ;;  %v4685_v14 = vor.u32 %v5513_v1, %v4682_v3  ;;  %v4897_v63 = vor.u32 %v5549_v25, %v4896_v48  ;;  %v4888_v3 = vld [vmem:[#allocation5 + $0x10] sm:$0xf] }
 0x4f7   :  { %v4889_v15 = vor.u32 %v5547_v20, %v4888_v3  ;;  %v5016_v48 = vld [vmem:[#allocation5 + $0x110] sm:$0xf]  ;;  %v5577_v3 = vld [vmem:[#allocation5 + $0x104] sm:$0xf0] }
 0x4f8   :  { %2713 = vmatpush.bf16.msra.mxu3 %v4477_v21  ;;  %2739 = vmatpush.bf16.msrb.mxu1 %v4733_v22  ;;  %v4992_v21 = vld [vmem:[#allocation5 + $0xe0] sm:$0xf]  ;;  %v5573_v22 = vld [vmem:[#allocation5 + $0xe4] sm:$0xf0] }
 0x4f9   :  { %v4993_v28 = vor.u32 %v5573_v22, %v4992_v21  ;;  %v5545_v21 = vld [vmem:[#allocation5 + $0x4] sm:$0xf0]  ;;  %v5040_v22 = vld [vmem:[#allocation5 + $0x140] sm:$0xf] }
 0x4fa   :  { %2701 = vmatpush.bf16.msra.mxu2 %v4333_v30  ;;  %2727 = vmatpush.bf16.msrb.mxu0 %v4589_v31  ;;  %v5571_v30 = vld [vmem:[#allocation5 + $0xd4] sm:$0xf0]  ;;  %v4912_v31 = vld [vmem:[#allocation5 + $0x40] sm:$0xf] }
 0x4fb   :  { %v4985_v33 = vor.u32 %v5571_v30, %v4984_v16  ;;  %v4944_v30 = vld [vmem:[#allocation5 + $0x80] sm:$0xf] }
 0x4fc   :  { %2714 = vmatpush.bf16.msra.mxu3 %v4461_v52  ;;  %2740 = vmatpush.bf16.msrb.mxu1 %v4717_v39  ;;  %v4904_v52 = vld [vmem:[#allocation5 + $0x30] sm:$0xf] }
 0x4fd   :  { %v5064_v39 = vld [vmem:[#allocation5 + $0x170] sm:$0xf] }
 0x4fe   :  { %2702 = vmatpush.bf16.msra.mxu2 %v4317_v44  ;;  %2728 = vmatpush.bf16.msrb.mxu0 %v4573_v46  ;;  %v5065_v42 = vor.u32 %v5591_v53, %v5064_v39  ;;  %v4968_v44 = vld [vmem:[#allocation5 + $0xb0] sm:$0xf]  ;;  %v5567_v46 = vld [vmem:[#allocation5 + $0xb4] sm:$0xf0]  ;;  %v4994_v53 = vld [vmem:[#allocation5 + $0xe8] sm:$0xf0] }
 0x500   :  { %2715 = vmatpush.bf16.msra.mxu3 %v4445_v51  ;;  %2741 = vmatpush.bf16.msrb.mxu1 %v4701_v60  ;;  %v4969_v51 = vor.u32 %v5567_v46, %v4968_v44  ;;  %v5024_v44 = vld [vmem:[#allocation5 + $0x120] sm:$0xf]  ;;  %v5581_v46 = vld [vmem:[#allocation5 + $0x124] sm:$0xf0] }
 0x502   :  { %2703 = vmatpush.bf16.msra.mxu2 %v4301_v5  ;;  %2729 = vmatpush.bf16.msrb.mxu0 %v4557_v6  ;;  %v2523_v36 = vpop.f32.mrf.mxu0  ;;  %v2420_v5 = vadd.f32 %v6163_v45, %v2407_v2  ;;  %v5048_v6 = vld [vmem:[#allocation5 + $0x150] sm:$0xf]  ;;  %v5579_v2 = vld [vmem:[#allocation5 + $0x114] sm:$0xf0] }
 0x503   :  { %v5049_v10 = vor.u32 %v5587_v7, %v5048_v6  ;;  %v5066_v7 = vld [vmem:[#allocation5 + $0x178] sm:$0xf0] }
 0x504   :  { %2716 = vmatpush.bf16.msra.mxu3 %v4429_v13  ;;  %2742 = vmatpush.bf16.msrb.mxu1 %v4685_v14  ;;  %v4952_v13 = vld [vmem:[#allocation5 + $0x90] sm:$0xf]  ;;  %v5563_v14 = vld [vmem:[#allocation5 + $0x94] sm:$0xf0]  ;;  %v2433_v19 = vadd.f32 %v6165_v50, %v2420_v5  ;;  %v5590_v5 = vld [vmem:[#allocation5 + $0x174] sm:$0xf] }
 0x505   :  { %2704 = vmatmul.bf16.vlgmr.msra.gmra.mxu2 %v6107_v49  ;;  %2730 = vmatmul.bf16.vlgmr.msrb.gmra.mxu0 %v6109_v54  ;;  %v4921_v49 = vor.u32 %v5555_v27, %v4920_v26  ;;  %v5553_v54 = vld [vmem:[#allocation5 + $0x44] sm:$0xf0]  ;;  %v4953_v45 = vor.u32 %v5563_v14, %v4952_v13  ;;  %v5558_v27 = vld [vmem:[#allocation5 + $0x74] sm:$0xf]  ;;  %v5032_v50 = vld [vmem:[#allocation5 + $0x130] sm:$0xf]  ;;  %v5069_v13 = vor.u32 %v5590_v5, %v5066_v7 }
 0x506   :  { %3146 = vmatpush.bf16.msrb.mxu2 %v4937_v9  ;;  %v4913_v32 = vor.u32 %v5553_v54, %v4912_v31  ;;  %3172 = vmatpush.bf16.msra.mxu0 %v5065_v42  ;;  %v4961_v9 = vor.u32 %v5565_v62, %v4960_v4  ;;  %v5574_v54 = vld [vmem:[#allocation5 + $0xf4] sm:$0xf]  ;;  %v5033_v56 = vor.u32 %v5583_v24, %v5032_v50  ;;  %v5568_v4 = vld [vmem:[#allocation5 + $0xc4] sm:$0xf]  ;;  %v4978_v62 = vld [vmem:[#allocation5 + $0xc8] sm:$0xf0] }
 0x507   :  { %4872 = vmatmul.msk.bf16.vlgmr.msra.gmra.mxu3 %vm6087_vm5, %v6115_v0  ;;  %4877 = vmatmul.msk.bf16.vlgmr.msrb.gmra.mxu1 %vm6087_vm5, %v6112_v59  ;;  %v2536_v0 = vpop.f32.mrf.mxu1  ;;  %v5551_v59 = vld [vmem:[#allocation5 + $0x34] sm:$0xf0]  ;;  %v4981_v14 = vor.u32 %v5568_v4, %v4978_v62  ;;  %v5576_v5 = vld [vmem:[#allocation5 + $0x104] sm:$0xf] }
 0x508   :  { %3159 = vmatpush.bf16.msrb.mxu3 %v5001_v18  ;;  %v4905_v57 = vor.u32 %v5551_v59, %v4904_v52  ;;  %v2497_v47 = vpop.f32.mrf.mxu2  ;;  %v4880_v18 = vld [vmem:[#allocation5] sm:$0xf]  ;;  %v4930_v52 = vld [vmem:[#allocation5 + $0x68] sm:$0xf0] }
 0x509   :  { %v2498_v40 = vadd.f32 %v2497_v47, %v2485_v43  ;;  %v4881_v31 = vor.u32 %v5545_v21, %v4880_v18  ;;  %v5554_v43 = vld [vmem:[#allocation5 + $0x54] sm:$0xf]  ;;  %v5025_v47 = vor.u32 %v5581_v46, %v5024_v44  ;;  %v5560_v46 = vld [vmem:[#allocation5 + $0x84] sm:$0xf] }
 0x50a   :  { %3147 = vmatpush.bf16.msrb.mxu2 %v4929_v23  ;;  %v2510_v60 = vpop.f32.mrf.mxu3  ;;  %v2525_v55 = vpop.f32.mrf.mxu0  ;;  %3173 = vmatpush.bf16.msra.mxu0 %v5057_v58  ;;  %v5585_v23 = vld [vmem:[#allocation5 + $0x144] sm:$0xf0]  ;;  %v4914_v58 = vld [vmem:[#allocation5 + $0x48] sm:$0xf0] }
 0x50b   :  { %v2511_v61 = vadd.f32 %v2510_v60, %v2498_v40  ;;  %v5041_v29 = vor.u32 %v5585_v23, %v5040_v22  ;;  %v5552_v55 = vld [vmem:[#allocation5 + $0x44] sm:$0xf]  ;;  %v4898_v22 = vld [vmem:[#allocation5 + $0x28] sm:$0xf0] }
 0x50c   :  { %3160 = vmatpush.bf16.msrb.mxu3 %v4993_v28  ;;  %v4938_v28 = vld [vmem:[#allocation5 + $0x78] sm:$0xf0]  ;;  %v4917_v20 = vor.u32 %v5552_v55, %v4914_v58  ;;  %v5588_v23 = vld [vmem:[#allocation5 + $0x164] sm:$0xf]  ;;  %v5578_v58 = vld [vmem:[#allocation5 + $0x114] sm:$0xf] }
 0x50d   :  { %v2524_v11 = vadd.f32 %v2523_v36, %v2511_v61  ;;  %v2748_v36 = vmax.f32 %v2433_v19, 0.0  ;;  %v4941_v37 = vor.u32 %v5558_v27, %v4938_v28  ;;  %v4989_v61 = vor.u32 %v5570_v35, %v4986_v12  ;;  %v5548_v19 = vld [vmem:[#allocation5 + $0x24] sm:$0xf]  ;;  %v5026_v12 = vld [vmem:[#allocation5 + $0x128] sm:$0xf0] }
 0x50e   :  { %3148 = vmatpush.bf16.msrb.mxu2 %v4921_v49  ;;  %3174 = vmatpush.bf16.msra.mxu0 %v5049_v10  ;;  %v5561_v49 = vld [vmem:[#allocation5 + $0x84] sm:$0xf0]  ;;  %v5550_v10 = vld [vmem:[#allocation5 + $0x34] sm:$0xf]  ;;  %v5580_v35 = vld [vmem:[#allocation5 + $0x124] sm:$0xf] }
 0x50f   :  { %v2538_v1 = vpop.f32.mrf.mxu1  ;;  %v2537_v16 = vadd.f32 %v2536_v0, %v2524_v11  ;;  %v4945_v38 = vor.u32 %v5561_v49, %v4944_v30  ;;  %v5572_v0 = vld [vmem:[#allocation5 + $0xe4] sm:$0xf]  ;;  %v4906_v11 = vld [vmem:[#allocation5 + $0x38] sm:$0xf0]  ;;  %v4962_v30 = vld [vmem:[#allocation5 + $0xa8] sm:$0xf0]  ;;  %v4901_v49 = vor.u32 %v5548_v19, %v4898_v22  ;;  %v5029_v55 = vor.u32 %v5580_v35, %v5026_v12 }
 0x510   :  { %3161 = vmatpush.bf16.msrb.mxu3 %v4985_v33  ;;  %v2499_v17 = vpop.f32.mrf.mxu2  ;;  %v5002_v33 = vld [vmem:[#allocation5 + $0xf8] sm:$0xf0]  ;;  %v4997_v25 = vor.u32 %v5572_v0, %v4994_v53  ;;  %v5008_v1 = vld [vmem:[#allocation5 + $0x100] sm:$0xf]  ;;  %v4909_v18 = vor.u32 %v5550_v10, %v4906_v11  ;;  %v5584_v0 = vld [vmem:[#allocation5 + $0x144] sm:$0xf] }
 0x511   :  { %v2749_v59 = vmax.f32 %v2537_v16, 0.0  ;;  %v5005_v39 = vor.u32 %v5574_v54, %v5002_v33  ;;  %v5009_v6 = vor.u32 %v5577_v3, %v5008_v1  ;;  %v4970_v17 = vld [vmem:[#allocation5 + $0xb8] sm:$0xf0]  ;;  %v5564_v16 = vld [vmem:[#allocation5 + $0xa4] sm:$0xf] }
 0x512   :  { %3149 = vmatpush.bf16.msrb.mxu2 %v4913_v32  ;;  %v2512_v26 = vpop.f32.mrf.mxu3  ;;  %3175 = vmatpush.bf16.msra.mxu0 %v5041_v29  ;;  %v5556_v32 = vld [vmem:[#allocation5 + $0x64] sm:$0xf]  ;;  %v4890_v33 = vld [vmem:[#allocation5 + $0x18] sm:$0xf0]  ;;  %v4965_v50 = vor.u32 %v5564_v16, %v4962_v30  ;;  %v5042_v53 = vld [vmem:[#allocation5 + $0x148] sm:$0xf0] }
 0x513   :  { %v4933_v42 = vor.u32 %v5556_v32, %v4930_v52  ;;  %v6207_v40 = vpack.c.bf16 %v2749_v59, %v2749_v59  ;;  %v4954_v32 = vld [vmem:[#allocation5 + $0x98] sm:$0xf0]  ;;  %v5607_v10 = vld [vmem:[#allocation5 + $0x1f4] sm:$0xf0]  ;;  %v5601_v16 = vld [vmem:[#allocation5 + $0x1c4] sm:$0xf0] }
 0x514   :  { %3162 = vmatpush.bf16.msrb.mxu3 %v4977_v41  ;;  %v6205_v41 = vpack.c.bf16 %v2748_v36, %v2748_v36  ;;  %v5586_v36 = vld [vmem:[#allocation5 + $0x154] sm:$0xf] }
 0x515   :  { %v5602_v12 = vld [vmem:[#allocation5 + $0x1d4] sm:$0xf] }
 0x516   :  { %3150 = vmatpush.bf16.msrb.mxu2 %v4905_v57  ;;  %3176 = vmatpush.bf16.msra.mxu0 %v5033_v56  ;;  %v4922_v57 = vld [vmem:[#allocation5 + $0x58] sm:$0xf0]  ;;  %v5544_v56 = vld [vmem:[#allocation5 + $0x4] sm:$0xf] }
 0x517   :  { %v4925_v60 = vor.u32 %v5554_v43, %v4922_v57  ;;  %v5045_v43 = vor.u32 %v5584_v0, %v5042_v53  ;;  %v4946_v57 = vld [vmem:[#allocation5 + $0x88] sm:$0xf0] }
 0x518   :  { %3163 = vmatpush.bf16.msrb.mxu3 %v4969_v51  ;;  %v5017_v51 = vor.u32 %v5579_v2, %v5016_v48  ;;  %v5582_v48 = vld [vmem:[#allocation5 + $0x134] sm:$0xf]  ;;  %v5034_v2 = vld [vmem:[#allocation5 + $0x138] sm:$0xf0] }
 0x51a   :  { %3151 = vmatpush.bf16.msrb.mxu2 %v4897_v63  ;;  %3177 = vmatpush.bf16.msra.mxu0 %v5025_v47 }
 0x51c   :  { %3164 = vmatpush.bf16.msrb.mxu3 %v4961_v9 }
 0x51e   :  { %3152 = vmatpush.bf16.msrb.mxu2 %v4889_v15  ;;  %3178 = vmatpush.bf16.msra.mxu0 %v5017_v51  ;;  %v5566_v15 = vld [vmem:[#allocation5 + $0xb4] sm:$0xf]  ;;  %v1046_v51 = vperm.slane %v6158_v34, 2  ;;  %v5010_v34 = vld [vmem:[#allocation5 + $0x108] sm:$0xf0] }
 0x51f   :  { %v4973_v26 = vor.u32 %v5566_v15, %v4970_v17  ;;  %v5013_v7 = vor.u32 %v5576_v5, %v5010_v34  ;;  %v5605_v15 = vld [vmem:[#allocation5 + $0x1e4] sm:$0xf0]  ;;  %v5098_v5 = vld [vmem:[#allocation5 + $0x1b8] sm:$0xf0] }
 0x520   :  { %3165 = vmatpush.bf16.msrb.mxu3 %v4953_v45  ;;  %v5058_v45 = vld [vmem:[#allocation5 + $0x168] sm:$0xf0] }
 0x521   :  { %v5061_v27 = vor.u32 %v5588_v23, %v5058_v45  ;;  %v5112_v23 = vld [vmem:[#allocation5 + $0x1d0] sm:$0xf]  ;;  %v5603_v45 = vld [vmem:[#allocation5 + $0x1d4] sm:$0xf0] }
 0x522   :  { %3153 = vmatpush.bf16.msrb.mxu2 %v4881_v31  ;;  %v6211_v63 = vpop.f32.mrf.mxu0  ;;  %3179 = vmatpush.bf16.msra.mxu0 %v5009_v6  ;;  %v5546_v31 = vld [vmem:[#allocation5 + $0x14] sm:$0xf] }
 0x523   :  { %v4893_v52 = vor.u32 %v5546_v31, %v4890_v33  ;;  %v5599_v31 = vld [vmem:[#allocation5 + $0x1b4] sm:$0xf0] }
 0x524   :  { %3166 = vmatpush.bf16.msrb.mxu3 %v4945_v38  ;;  %v6213_v9 = vpop.f32.mrf.mxu1  ;;  %v5562_v38 = vld [vmem:[#allocation5 + $0x94] sm:$0xf] }
 0x525   :  { %3154 = vmatmul.bf16.vlgmr.msrb.gmra.mxu2 %v6205_v41 }
 0x526   :  { %3198 = vmatpush.bf16.msra.mxu2 %v4941_v37  ;;  %3224 = vmatpush.bf16.msrb.mxu0 %v5069_v13  ;;  %v5050_v37 = vld [vmem:[#allocation5 + $0x158] sm:$0xf0] }
 0x527   :  { %3167 = vmatmul.bf16.vlgmr.msrb.gmra.mxu3 %v6207_v40  ;;  %v5053_v24 = vor.u32 %v5586_v36, %v5050_v37 }
 0x528   :  { %3211 = vmatpush.bf16.msra.mxu3 %v5005_v39  ;;  %v2549_v21 = vpop.f32.mrf.mxu2  ;;  %v4882_v39 = vld [vmem:[#allocation5 + $0x8] sm:$0xf0] }
 0x529   :  { %v4885_v47 = vor.u32 %v5544_v56, %v4882_v39  ;;  %v2550_v4 = vadd.f32 %v2549_v21, %v1046_v51  ;;  %v5593_v39 = vld [vmem:[#allocation5 + $0x184] sm:$0xf0]  ;;  %v5114_v51 = vld [vmem:[#allocation5 + $0x1d8] sm:$0xf0] }
 0x52a   :  { %3199 = vmatpush.bf16.msra.mxu2 %v4933_v42  ;;  %v2562_v28 = vpop.f32.mrf.mxu3  ;;  %v2577_v29 = vpop.f32.mrf.mxu0  ;;  %3225 = vmatpush.bf16.msrb.mxu0 %v5061_v27  ;;  %v4957_v42 = vor.u32 %v5562_v38, %v4954_v32  ;;  %v5080_v32 = vld [vmem:[#allocation5 + $0x190] sm:$0xf] }
 0x52b   :  { %v2563_v1 = vadd.f32 %v2562_v28, %v2550_v4  ;;  %v5104_v29 = vld [vmem:[#allocation5 + $0x1c0] sm:$0xf] }
 0x52c   :  { %3212 = vmatpush.bf16.msra.mxu3 %v4997_v25  ;;  %v2590_v54 = vpop.f32.mrf.mxu1  ;;  %v5037_v25 = vor.u32 %v5582_v48, %v5034_v2 }
 0x52d   :  { %v2576_v6 = vadd.f32 %v6211_v63, %v2563_v1 }
 0x52e   :  { %3200 = vmatpush.bf16.msra.mxu2 %v4925_v60  ;;  %3226 = vmatpush.bf16.msrb.mxu0 %v5053_v24  ;;  %v4949_v60 = vor.u32 %v5560_v46, %v4946_v57  ;;  %v5597_v24 = vld [vmem:[#allocation5 + $0x1a4] sm:$0xf0]  ;;  %v5604_v57 = vld [vmem:[#allocation5 + $0x1e4] sm:$0xf] }
 0x530   :  { %3213 = vmatpush.bf16.msra.mxu3 %v4989_v61  ;;  %v2551_v59 = vpop.f32.mrf.mxu2  ;;  %v5018_v61 = vld [vmem:[#allocation5 + $0x118] sm:$0xf0] }
 0x531   :  { %v5021_v62 = vor.u32 %v5578_v58, %v5018_v61  ;;  %v5072_v59 = vld [vmem:[#allocation5 + $0x180] sm:$0xf]  ;;  %v5600_v58 = vld [vmem:[#allocation5 + $0x1c4] sm:$0xf]  ;;  %v5106_v61 = vld [vmem:[#allocation5 + $0x1c8] sm:$0xf0] }
 0x532   :  { %3201 = vmatpush.bf16.msra.mxu2 %v4917_v20  ;;  %v2564_v44 = vpop.f32.mrf.mxu3  ;;  %3227 = vmatpush.bf16.msrb.mxu0 %v5045_v43  ;;  %v5128_v20 = vld [vmem:[#allocation5 + $0x1f0] sm:$0xf]  ;;  %v5073_v53 = vor.u32 %v5593_v39, %v5072_v59  ;;  %v5130_v43 = vld [vmem:[#allocation5 + $0x1f8] sm:$0xf0]  ;;  %v5109_v4 = vor.u32 %v5600_v58, %v5106_v61  ;;  %v5609_v61 = vld [vmem:[%s6354_s15 + $0x8] sm:$0xff] }
 0x533   :  { %v5129_v13 = vor.u32 %v5607_v10, %v5128_v20  ;;  %v5596_v20 = vld [vmem:[#allocation5 + $0x1a4] sm:$0xf] }
 0x534   :  { %3214 = vmatpush.bf16.msra.mxu3 %v4981_v14  ;;  %v5120_v14 = vld [vmem:[#allocation5 + $0x1e0] sm:$0xf] }
 0x535   :  { %3185 = vmatpush.bf16.msra.mxu1 %v5129_v13  ;;  %v5594_v13 = vld [vmem:[#allocation5 + $0x194] sm:$0xf] }
 0x536   :  { %3202 = vmatpush.bf16.msra.mxu2 %v4909_v18  ;;  %3228 = vmatpush.bf16.msrb.mxu0 %v5037_v25 }
 0x538   :  { %3215 = vmatpush.bf16.msra.mxu3 %v4973_v26  ;;  %v5113_v26 = vor.u32 %v5603_v45, %v5112_v23 }
 0x53a   :  { %3203 = vmatpush.bf16.msra.mxu2 %v4901_v49  ;;  %3229 = vmatpush.bf16.msrb.mxu0 %v5029_v55  ;;  %v5096_v49 = vld [vmem:[#allocation5 + $0x1b0] sm:$0xf] }
 0x53b   :  { %v5097_v36 = vor.u32 %v5599_v31, %v5096_v49 }
 0x53c   :  { %3216 = vmatpush.bf16.msra.mxu3 %v4965_v50  ;;  %v5088_v50 = vld [vmem:[#allocation5 + $0x1a0] sm:$0xf] }
 0x53d   :  { %v5089_v38 = vor.u32 %v5597_v24, %v5088_v50 }
 0x53e   :  { %3204 = vmatpush.bf16.msra.mxu2 %v4893_v52  ;;  %3230 = vmatpush.bf16.msrb.mxu0 %v5021_v62  ;;  %v5595_v52 = vld [vmem:[#allocation5 + $0x194] sm:$0xf0] }
 0x53f   :  { %v5081_v56 = vor.u32 %v5595_v52, %v5080_v32 }
 0x540   :  { %3217 = vmatpush.bf16.msra.mxu3 %v4957_v42  ;;  %v5606_v42 = vld [vmem:[#allocation5 + $0x1f4] sm:$0xf] }
 0x541   :  { %v5133_v44 = vor.u32 %v5606_v42, %v5130_v43 }
 0x542   :  { %3205 = vmatpush.bf16.msra.mxu2 %v4885_v47  ;;  %v2627_v3 = vpop.f32.mrf.mxu0  ;;  %3231 = vmatpush.bf16.msrb.mxu0 %v5013_v7  ;;  %v5122_v47 = vld [vmem:[#allocation5 + $0x1e8] sm:$0xf0]  ;;  %v5686_v7 = vld [vmem:[%s6351_s12] sm:$0xf] }
 0x543   :  { %v5125_v48 = vor.u32 %v5604_v57, %v5122_v47  ;;  %v1047_v10 = vperm.slane %v5686_v7, 3  ;;  %v5623_v57 = vld [vmem:[%s6354_s15 + $0x78] sm:$0xff]  ;;  %v5614_v47 = vld [vmem:[%s6354_s15 + $0x30] sm:$0xff] }
 0x544   :  { %3218 = vmatpush.bf16.msra.mxu3 %v4949_v60  ;;  %v2640_v11 = vpop.f32.mrf.mxu1  ;;  %v5117_v60 = vor.u32 %v5602_v12, %v5114_v51  ;;  %v5611_v12 = vld [vmem:[%s6354_s15 + $0x18] sm:$0xff] }
 0x545   :  { %3206 = vmatmul.bf16.vlgmr.msra.gmra.mxu2 %v6205_v41  ;;  %v2589_v41 = vadd.f32 %v6213_v9, %v2576_v6  ;;  %v5105_v9 = vor.u32 %v5601_v16, %v5104_v29  ;;  %v5090_v6 = vld [vmem:[#allocation5 + $0x1a8] sm:$0xf0] }
 0x547   :  { %3219 = vmatmul.bf16.vlgmr.msra.gmra.mxu3 %v6207_v40  ;;  %v5121_v40 = vor.u32 %v5605_v15, %v5120_v14 }
 0x548   :  { %v2601_v17 = vpop.f32.mrf.mxu2  ;;  %3399 = vmatpush.bf16.msrb.mxu3 %v5623_v57  ;;  %v5663_v57 = vld [vmem:[%s6356_s17] ss:$0 sm:$0xff] }
 0x549   :  { %v2602_v18 = vadd.f32 %v2601_v17, %v2589_v41  ;;  %3186 = vmatpush.bf16.msra.mxu1 %v5121_v40  ;;  %v5082_v41 = vld [vmem:[#allocation5 + $0x198] sm:$0xf0]  ;;  %v5592_v17 = vld [vmem:[#allocation5 + $0x184] sm:$0xf]  ;;  %v5074_v40 = vld [vmem:[#allocation5 + $0x188] sm:$0xf0] }
 0x54a   :  { %v2614_v19 = vpop.f32.mrf.mxu3  ;;  %v2629_v21 = vpop.f32.mrf.mxu0  ;;  %v5085_v15 = vor.u32 %v5594_v13, %v5082_v41 }
 0x54b   :  { %v2615_v22 = vadd.f32 %v2614_v19, %v2602_v18  ;;  %v5077_v19 = vor.u32 %v5592_v17, %v5074_v40 }
 0x54c   :  { %v2642_v63 = vpop.f32.mrf.mxu1 }
 0x54d   :  { %v2628_v27 = vadd.f32 %v2627_v3, %v2615_v22  ;;  %3187 = vmatpush.bf16.msra.mxu1 %v5113_v26  ;;  %v5598_v3 = vld [vmem:[#allocation5 + $0x1b4] sm:$0xf] }
 0x54e   :  { %v5101_v34 = vor.u32 %v5598_v3, %v5098_v5  ;;  %v5619_v3 = vld [vmem:[%s6354_s15 + $0x58] sm:$0xff]  ;;  %v5618_v5 = vld [vmem:[%s6354_s15 + $0x50] sm:$0xff] }
 0x54f   :  { %v2641_v28 = vadd.f32 %v2640_v11, %v2628_v27  ;;  %v5093_v11 = vor.u32 %v5596_v20, %v5090_v6  ;;  %v5616_v20 = vld [vmem:[%s6354_s15 + $0x40] sm:$0xff] }
 0x550   :  { %v2603_v30 = vpop.f32.mrf.mxu2 }
 0x551   :  { %v2750_v54 = vmax.f32 %v2641_v28, 0.0  ;;  %3188 = vmatpush.bf16.msra.mxu1 %v5105_v9 }
 0x552   :  { %v2616_v33 = vpop.f32.mrf.mxu3 }
 0x553   :  { %v2754_v37 = vpack.c.bf16 %v2750_v54, %v2750_v54 }
 0x555   :  { %3180 = vmatmul.bf16.vlgmr.msra.gmra.mxu0 %v2754_v37  ;;  %3189 = vmatpush.bf16.msra.mxu1 %v5097_v36  ;;  %v2820_v36 = vld [vmem:[%s6353_s14] sm:$0x3]  ;;  %s5775_s14 = smov [#allocation7]  }
 0x556   :  { %v2823_v59 = vperm.slane %v2820_v36, 1  ;;  %s3627_s7 = sshll.u32 %s5775_s14, 4  ;;  %s3628_s7 = int_to_ptr.vmem [resolvable:$true] %s3627_s7 }
 0x559   :  { %3190 = vmatpush.bf16.msra.mxu1 %v5089_v38 }
 0x55d   :  { %3191 = vmatpush.bf16.msra.mxu1 %v5081_v56 }
 0x561   :  { %3192 = vmatpush.bf16.msra.mxu1 %v5073_v53 }
 0x562   :  { %v2679_v0 = vpop.f32.mrf.mxu0 }
 0x564   :  { %v2692_v46 = vpop.f32.mrf.mxu1 }
 0x565   :  { %3237 = vmatpush.bf16.msrb.mxu1 %v5133_v44  ;;  %3232 = vmatmul.bf16.vlgmr.msrb.gmra.mxu0 %v2754_v37  ;;  %v2822_v37 = vperm.slane %v2820_v36, 0  ;;  %v5628_v36 = vld [vmem:[%s6358_s19 + $0x20] sm:$0xff] }
 0x568   :  { %v2653_v2 = vpop.f32.mrf.mxu2 }
 0x569   :  { %3238 = vmatpush.bf16.msrb.mxu1 %v5125_v48  ;;  %v2654_v14 = vadd.f32 %v2653_v2, %v1047_v10  ;;  %v5622_v48 = vld [vmem:[%s6354_s15 + $0x70] sm:$0xff]  ;;  %v5613_v2 = vld [vmem:[%s6354_s15 + $0x28] sm:$0xff] }
 0x56a   :  { %v2666_v25 = vpop.f32.mrf.mxu3  ;;  %v2681_v35 = vpop.f32.mrf.mxu0  ;;  %3400 = vmatpush.bf16.msrb.mxu3 %v5622_v48 }
 0x56b   :  { %v2667_v18 = vadd.f32 %v2666_v25, %v2654_v14  ;;  %v5612_v35 = vld [vmem:[%s6354_s15 + $0x20] sm:$0xff] }
 0x56c   :  { %v2694_v55 = vpop.f32.mrf.mxu1 }
 0x56d   :  { %3239 = vmatpush.bf16.msrb.mxu1 %v5117_v60  ;;  %v2680_v22 = vadd.f32 %v2679_v0, %v2667_v18  ;;  %v5610_v60 = vld [vmem:[%s6354_s15 + $0x10] sm:$0xff] }
 0x56f   :  { %v2693_v45 = vadd.f32 %v2692_v46, %v2680_v22  ;;  %v5615_v46 = vld [vmem:[%s6354_s15 + $0x38] sm:$0xff] }
 0x570   :  { %v2655_v62 = vpop.f32.mrf.mxu2  ;;  %3386 = vmatpush.bf16.msrb.mxu2 %v5615_v46 }
 0x571   :  { %3240 = vmatpush.bf16.msrb.mxu1 %v5109_v4  ;;  %v5621_v4 = vld [vmem:[%s6354_s15 + $0x68] sm:$0xff]  ;;  %v5608_v62 = vld [vmem:[%s6354_s15] sm:$0xff] }
 0x572   :  { %v2668_v1 = vpop.f32.mrf.mxu3  ;;  %3401 = vmatpush.bf16.msrb.mxu3 %v5621_v4 }
 0x573   :  { %v5620_v1 = vld [vmem:[%s6354_s15 + $0x60] sm:$0xff] }
 0x574   :  { %3387 = vmatpush.bf16.msrb.mxu2 %v5614_v47 }
 0x575   :  { %3241 = vmatpush.bf16.msrb.mxu1 %v5101_v34  ;;  %v5617_v34 = vld [vmem:[%s6354_s15 + $0x48] sm:$0xff] }
 0x576   :  { %3402 = vmatpush.bf16.msrb.mxu3 %v5620_v1 }
 0x578   :  { %3388 = vmatpush.bf16.msrb.mxu2 %v5613_v2  ;;  %v5664_v2 = vld [vmem:[%s6357_s18] ss:$0 sm:$0xff] }
 0x579   :  { %3242 = vmatpush.bf16.msrb.mxu1 %v5093_v11 }
 0x57a   :  { %3403 = vmatpush.bf16.msrb.mxu3 %v5619_v3 }
 0x57c   :  { %3389 = vmatpush.bf16.msrb.mxu2 %v5612_v35 }
 0x57d   :  { %3243 = vmatpush.bf16.msrb.mxu1 %v5085_v15 }
 0x57e   :  { %3404 = vmatpush.bf16.msrb.mxu3 %v5618_v5  ;;  %v5666_v5 = vld [vmem:[%s6361_s22] ss:$0 sm:$0xff] }
 0x580   :  { %3390 = vmatpush.bf16.msrb.mxu2 %v5611_v12 }
 0x581   :  { %3244 = vmatpush.bf16.msrb.mxu1 %v5077_v19 }
 0x582   :  { %v2731_v21 = vpop.f32.mrf.mxu0  ;;  %3405 = vmatpush.bf16.msrb.mxu3 %v5617_v34 }
 0x584   :  { %v2744_v23 = vpop.f32.mrf.mxu1  ;;  %3391 = vmatpush.bf16.msrb.mxu2 %v5610_v60  ;;  %v5637_v60 = vld [vmem:[%s6362_s23 + $0x8] sm:$0xff] }
 0x586   :  { %3406 = vmatpush.bf16.msrb.mxu3 %v5616_v20 }
 0x588   :  { %v2705_v63 = vpop.f32.mrf.mxu2  ;;  %3392 = vmatpush.bf16.msrb.mxu2 %v5609_v61 }
 0x589   :  { %v2706_v26 = vadd.f32 %v2705_v63, %v2693_v45 }
 0x58a   :  { %v2718_v27 = vpop.f32.mrf.mxu3  ;;  %v2733_v28 = vpop.f32.mrf.mxu0 }
 0x58b   :  { %v2719_v29 = vadd.f32 %v2718_v27, %v2706_v26 }
 0x58c   :  { %v2746_v16 = vpop.f32.mrf.mxu1  ;;  %3393 = vmatpush.bf16.msrb.mxu2 %v5608_v62 }
 0x58d   :  { %v2732_v30 = vadd.f32 %v2731_v21, %v2719_v29  ;;  %v5631_v29 = vld [vmem:[%s6358_s19 + $0x38] sm:$0xff] }
 0x58e   :  { %3514 = vmatpush.bf16.msra.mxu0 %v5631_v29 }
 0x58f   :  { %v2745_v9 = vadd.f32 %v2744_v23, %v2732_v30  ;;  %v5662_v23 = vld [vmem:[%s6355_s16] ss:$0 sm:$0xff] }
 0x590   :  { %v2707_v49 = vpop.f32.mrf.mxu2 }
 0x591   :  { %v2751_v31 = vmax.f32 %v2745_v9, 0.0 }
 0x592   :  { %v2720_v54 = vpop.f32.mrf.mxu3 }
 0x593   :  { %v2755_v33 = vpack.c.bf16 %v2751_v31, %v2751_v31  ;;  %v5630_v54 = vld [vmem:[%s6358_s19 + $0x30] sm:$0xff] }
 0x594   :  { %3515 = vmatpush.bf16.msra.mxu0 %v5630_v54 }
 0x595   :  { %3193 = vmatmul.bf16.vlgmr.msra.gmra.mxu1 %v2755_v33 }
 0x5a5   :  { %3245 = vmatmul.bf16.vlgmr.msrb.gmra.mxu1 %v2755_v33  ;;  %v5629_v33 = vld [vmem:[%s6358_s19 + $0x28] sm:$0xff] }
 0x5a6   :  { %3516 = vmatpush.bf16.msra.mxu0 %v5629_v33 }
 0x5a8   :  { %v3155_v50 = vpop.f32.mrf.mxu2 }
 0x5a9   :  { %v3156_v24 = vadd.f32 %v3155_v50, %v2822_v37  ;;  %v5627_v37 = vld [vmem:[%s6358_s19 + $0x18] sm:$0xff]  ;;  %v5626_v50 = vld [vmem:[%s6358_s19 + $0x10] sm:$0xff] }
 0x5aa   :  { %v3168_v38 = vpop.f32.mrf.mxu3  ;;  %3517 = vmatpush.bf16.msra.mxu0 %v5628_v36 }
 0x5ab   :  { %v3169_v32 = vadd.f32 %v3168_v38, %v3156_v24  ;;  %v5625_v24 = vld [vmem:[%s6358_s19 + $0x8] sm:$0xff]  ;;  %v5624_v38 = vld [vmem:[%s6358_s19] sm:$0xff] }
 0x5ae   :  { %3518 = vmatpush.bf16.msra.mxu0 %v5627_v37 }
 0x5b0   :  { %v3157_v52 = vpop.f32.mrf.mxu2 }
 0x5b2   :  { %v3170_v56 = vpop.f32.mrf.mxu3  ;;  %3519 = vmatpush.bf16.msra.mxu0 %v5626_v50 }
 0x5b6   :  { %3520 = vmatpush.bf16.msra.mxu0 %v5625_v24 }
 0x5ba   :  { %3521 = vmatpush.bf16.msra.mxu0 %v5624_v38 }
 0x5c8   :  { %v3207_v39 = vpop.f32.mrf.mxu2 }
 0x5c9   :  { %v3208_v0 = vadd.f32 %v3207_v39, %v2823_v59  ;;  %v5634_v59 = vld [vmem:[%s6360_s21 + $0x10] sm:$0xff] }
 0x5ca   :  { %v3220_v53 = vpop.f32.mrf.mxu3 }
 0x5cb   :  { %v3221_v42 = vadd.f32 %v3220_v53, %v3208_v0  ;;  %v5633_v0 = vld [vmem:[%s6360_s21 + $0x8] sm:$0xff] }
 0x5d0   :  { %v3209_v43 = vpop.f32.mrf.mxu2 }
 0x5d2   :  { %v3222_v44 = vpop.f32.mrf.mxu3  ;;  %v3181_v25 = vpop.f32.mrf.mxu0 }
 0x5d3   :  { %v3182_v6 = vadd.f32 %v3181_v25, %v3169_v32  ;;  %v5635_v32 = vld [vmem:[%s6360_s21 + $0x18] sm:$0xff] }
 0x5d4   :  { %3573 = vmatpush.bf16.msra.mxu1 %v5635_v32 }
 0x5d8   :  { %3574 = vmatpush.bf16.msra.mxu1 %v5634_v59 }
 0x5da   :  { %v3183_v51 = vpop.f32.mrf.mxu0 }
 0x5db   :  { %v5632_v51 = vld [vmem:[%s6360_s21] sm:$0xff] }
 0x5dc   :  { %3575 = vmatpush.bf16.msra.mxu1 %v5633_v0 }
 0x5e0   :  { %3576 = vmatpush.bf16.msra.mxu1 %v5632_v51 }
 0x5e2   :  { %v3233_v55 = vpop.f32.mrf.mxu0 }
 0x5e3   :  { %v3234_v14 = vadd.f32 %v3233_v55, %v3221_v42  ;;  %v5636_v55 = vld [vmem:[%s6362_s23] sm:$0xff] }
 0x5e4   :  { %3614 = vmatpush.bf16.msrb.mxu1 %v5637_v60 }
 0x5e8   :  { %3615 = vmatpush.bf16.msrb.mxu1 %v5636_v55 }
 0x5ea   :  { %v3235_v58 = vpop.f32.mrf.mxu0 }
 0x5eb   :  { %v5665_v58 = vld [vmem:[%s6359_s20] ss:$0 sm:$0xff] }
 0x612   :  { %v3194_v7 = vpop.f32.mrf.mxu1 }
 0x613   :  { %v3195_v10 = vadd.f32 %v3194_v7, %v3182_v6 }
 0x615   :  { %v3250_v11 = vmax.f32 %v3195_v10, 0.0 }
 0x617   :  { %v3252_v13 = vpack.c.bf16 %v3250_v11, %v3250_v11  ;;  %v5667_v11 = vld [vmem:[%s6363_s24] ss:$0 sm:$0xff] }
 0x619   :  { %3394 = vmatmul.bf16.vlgmr.msrb.gmra.mxu2 %v3252_v13 }
 0x61a   :  { %v3196_v41 = vpop.f32.mrf.mxu1 }
 0x622   :  { %v3246_v15 = vpop.f32.mrf.mxu1 }
 0x623   :  { %v3247_v17 = vadd.f32 %v3246_v15, %v3234_v14 }
 0x625   :  { %v3251_v40 = vmax.f32 %v3247_v17, 0.0 }
 0x627   :  { %v3253_v18 = vpack.c.bf16 %v3251_v40, %v3251_v40 }
 0x629   :  { %3407 = vmatmul.bf16.vlgmr.msrb.gmra.mxu3 %v3253_v18 }
 0x62a   :  { %v3248_v19 = vpop.f32.mrf.mxu1 }
 0x69c   :  { %v3395_v21 = vpop.f32.mrf.mxu2 }
 0x69d   :  { %v3396_v45 = vadd.f32 %v5662_v23, %v3395_v21 }
 0x6a4   :  { %v3397_v22 = vpop.f32.mrf.mxu2 }
 0x6ac   :  { %v3408_v63 = vpop.f32.mrf.mxu3 }
 0x6ad   :  { %v3409_v26 = vadd.f32 %v3408_v63, %v3396_v45 }
 0x6af   :  { %v3413_v27 = vsel %vm3412_vm6, %v3409_v26, 0.0 }
 0x6b0   :  { %3414 = vadd.xlane.f32.xlu2 %v3413_v27 }
 0x6b4   :  { %v3410_v28 = vpop.f32.mrf.mxu3 }
 0x723   :  { %v3415_v16 = vpop.xlane.xlu2 %3414 }
 0x724   :  { %v3416_v30 = vmul.f32 %v3415_v16, %v5923_v8 }
 0x726   :  { %v3417_v9 = vsub.f32 %v3409_v26, %v3416_v30 }
 0x728   :  { %v3418_v49 = vmul.f32 %v3417_v9, %v3417_v9 }
 0x72a   :  { %v3419_v31 = vsel %vm3412_vm6, %v3418_v49, 0.0 }
 0x72b   :  { %3420 = vadd.xlane.f32.xlu0 %v3419_v31 }
 0x79e   :  { %v3421_v52 = vpop.xlane.xlu0 %3420 }
 0x79f   :  { %v3422_v56 = vmul.f32 %v3421_v52, %v5923_v8 }
 0x7a1   :  { %v3423_v39 = vadd.f32 1e-05, %v3422_v56 }
 0x7a3   :  { %5684 = vrsqrt.f32 %v3423_v39  ;;  %vm3430_vm8 = vweird.f32 %v3423_v39 }
 0x7a9   :  { %v5685_v53 = vpop.eup %5684 }
 0x7aa   :  { %v3425_v42 = vmul.f32 %v5685_v53, %v3423_v39  ;;  %vm3431_vm7 = vweird.f32 %v5685_v53 }
 0x7ab   :  { %vm3432_vm9 = vmor %vm3430_vm8, %vm3431_vm7 }
 0x7ac   :  { %v3426_v43 = vmul.f32 %v5685_v53, %v3425_v42 }
 0x7ae   :  { %v3427_v44 = vmul.f32 0.5, %v3426_v43 }
 0x7b0   :  { %v3428_v46 = vsub.f32 1.5, %v3427_v44 }
 0x7b2   :  { %v3429_v8 = vmul.f32 %v5685_v53, %v3428_v46 }
 0x7b4   :  { %v3433_v47 = vsel %vm3432_vm9, %v5685_v53, %v3429_v8 }
 0x7b5   :  { %v3434_v48 = vmul.f32 %v3433_v47, %v3417_v9 }
 0x7b7   :  { %v3439_v25 = vmul.f32 %v5663_v57, %v3434_v48 }
 0x7b9   :  { %v3444_v35 = vadd.f32 %v5664_v2, %v3439_v25 }
 0x7bb   :  { %v3445_v12 = vpack.c.bf16 %v3444_v35, %v3444_v35 }
 0x7bd   :  { %3522 = vmatmul.bf16.vlgmr.msra.gmra.mxu0 %v3445_v12 }
 0x83a   :  { %v3523_v61 = vpop.f32.mrf.mxu0 }
 0x83b   :  { %v3524_v4 = vadd.f32 %v5665_v58, %v3523_v61 }
 0x83d   :  { %v3527_v62 = vmax.f32 %v3524_v4, 0.0 }
 0x83f   :  { %v3528_v1 = vpack.c.bf16 %v3527_v62, %v3527_v62 }
 0x841   :  { %5246 = vmatmul.msk.bf16.vlgmr.msra.gmra.mxu1 %vm3565_vm10, %v3528_v1 }
 0x842   :  { %v3525_v3 = vpop.f32.mrf.mxu0 }
 0x8be   :  { %v3578_v34 = vpop.f32.mrf.mxu1 }
 0x8bf   :  { %v3579_v20 = vadd.f32 %v5666_v5, %v3578_v34 }
 0x8c1   :  { %v3582_v6 = vmax.f32 %v3579_v20, 0.0 }
 0x8c3   :  { %v3583_v7 = vpack.c.bf16 %v3582_v6, %v3582_v6 }
 0x8c5   :  { %5255 = vmatmul.msk.bf16.vlgmr.msrb.gmra.mxu1 %vm3604_vm11, %v3583_v7 }
 0x8c6   :  { %v3580_v10 = vpop.f32.mrf.mxu1 }
 0x942   :  { %v3617_v13 = vpop.f32.mrf.mxu1 }
 0x943   :  { %v3618_v41 = vadd.f32 %v5667_v11, %v3617_v13 }
 0x945   :  { %3621 = vst [vmem:[#allocation7] sm:$0x3] %v3618_v41 }
 0x946   :  { %3632 = dma.vmem_to_hbm [thread:$0]  %s3628_s7, 32, %s3630_s4, [#allocation4]  }
 0x94a   :  { %v3619_v14 = vpop.f32.mrf.mxu1 }
 0x94b   :  { %5763 = dma.done.wait [#allocation4], 32  }
 0x94c   :  { %5764 = vsyncadd [#allocation4], 4294967264 }
 0x94d   :  { %3641 = vsyncpa [#allocation3], 1 }
 0x94e   :  { %3642 = vsyncpa [#allocation6], 1 }
 0x94f   :  { %3643 = vsyncpa [#allocation4], 1 }

</bundles_post_ra>
